<compile_context>
chip_gen: v5e
topology: v5e:2x2
jax: 0.10.0
libtpu: 0.0.40
codegen_flags: <defaults>
</compile_context>

<pallas_src>
import functools

import jax
import jax.numpy as jnp
import numpy as np
from jax import lax
from jax.experimental import pallas as pl
from jax.experimental.pallas import tpu as pltpu

EPS = 1e-5
LANE = 128


# ---------------------------------------------------------------------------
# small helpers
# ---------------------------------------------------------------------------
def _pad_to(x, m):
    return ((x + m - 1) // m) * m


def _row_pad(m):
    """Row padding target: keep big M tiles for big M, minimal pad for small."""
    if m >= 512:
        return _pad_to(m, 512)
    if m >= 256:
        return _pad_to(m, 256)
    return _pad_to(m, 128)


def _tile_div(dim):
    """Largest tile in {512,256,128} dividing dim (dim is a 128-multiple)."""
    for c in (512, 256, 128):
        if dim >= c and dim % c == 0:
            return c
    return dim


def _vmem_limit():
    # v5e/v6e have 128 MiB physical VMEM, v7x only 64 MiB: stay well below both.
    try:
        cap = pltpu.get_tpu_info().vmem_capacity_bytes
        return int(min(cap // 2, 48 * 1024 * 1024))
    except Exception:
        return 32 * 1024 * 1024


def _pad_mat(w, rows, cols):
    return jnp.pad(w, ((0, rows - w.shape[0]), (0, cols - w.shape[1])))


def _pad_vec(v, n):
    return jnp.pad(v, (0, n - v.shape[0]))


# ---------------------------------------------------------------------------
# Pallas kernels
# ---------------------------------------------------------------------------
def _mm_kernel(x_ref, w_ref, y_ref, sum_ref, sq_ref, acc_ref):
    """Tiled matmul, f32 accumulator, bf16 output + per-M-tile BN partials."""
    k = pl.program_id(2)

    @pl.when(k == 0)
    def _():
        acc_ref[...] = jnp.zeros_like(acc_ref)

    acc_ref[...] += jnp.dot(x_ref[...], w_ref[...],
                            preferred_element_type=jnp.float32)

    @pl.when(k == pl.num_programs(2) - 1)
    def _():
        acc = acc_ref[...]
        y_ref[...] = acc.astype(y_ref.dtype)
        s = jnp.sum(acc, axis=0, keepdims=True)
        q = jnp.sum(acc * acc, axis=0, keepdims=True)
        sum_ref[...] = jnp.broadcast_to(s, sum_ref.shape)
        sq_ref[...] = jnp.broadcast_to(q, sq_ref.shape)


def _mm_fused_kernel(x_ref, w_ref, sc_ref, sh_ref, y_ref, sum_ref, sq_ref,
                     acc_ref, *, tm, m_true, need_mask):
    """Matmul whose LHS gets the previous layer's BN+ReLU applied on the fly.

    lhs = relu(x * scale_k + shift_k); rows >= m_true are masked to zero so
    padded rows cannot pollute this layer's BN statistics.
    """
    k = pl.program_id(2)

    @pl.when(k == 0)
    def _():
        acc_ref[...] = jnp.zeros_like(acc_ref)

    lhs = jnp.maximum(
        x_ref[...].astype(jnp.float32) * sc_ref[...] + sh_ref[...], 0.0)
    if need_mask:
        rows = (pl.program_id(0) * tm
                + lax.broadcasted_iota(jnp.int32, (tm, 1), 0))
        lhs = jnp.where(rows < m_true, lhs, 0.0)
    acc_ref[...] += jnp.dot(lhs.astype(jnp.bfloat16), w_ref[...],
                            preferred_element_type=jnp.float32)

    @pl.when(k == pl.num_programs(2) - 1)
    def _():
        acc = acc_ref[...]
        y_ref[...] = acc.astype(y_ref.dtype)
        s = jnp.sum(acc, axis=0, keepdims=True)
        q = jnp.sum(acc * acc, axis=0, keepdims=True)
        sum_ref[...] = jnp.broadcast_to(s, sum_ref.shape)
        sq_ref[...] = jnp.broadcast_to(q, sq_ref.shape)


def _conv3x3_kernel(v_ref, w_ref, y_ref, sum_ref, sq_ref, *, stride, Ho, Wo):
    """Tap-fused 3x3 conv for one image.

    The wrapper provides v_ref as stride-parity planes so every one of the 9
    taps is a *static contiguous* slice of VMEM (no strided loads, no im2col
    in HBM). All 9 shifted-window matmuls accumulate into one f32 value.
    """
    cout = w_ref.shape[-1]
    acc = jnp.zeros((Ho * Wo, cout), jnp.float32)
    for ki in range(3):
        for kj in range(3):
            plane = (ki % stride) * stride + (kj % stride)
            r0, c0 = ki // stride, kj // stride
            win = v_ref[plane, r0:r0 + Ho, c0:c0 + Wo, :]
            lhs = win.reshape(Ho * Wo, win.shape[-1])
            acc = acc + jnp.dot(lhs, w_ref[ki * 3 + kj],
                                preferred_element_type=jnp.float32)
    y_ref[...] = acc.astype(y_ref.dtype)
    s = jnp.sum(acc, axis=0, keepdims=True)
    q = jnp.sum(acc * acc, axis=0, keepdims=True)
    sum_ref[...] = jnp.broadcast_to(s, sum_ref.shape)
    sq_ref[...] = jnp.broadcast_to(q, sq_ref.shape)


def _bn_add_relu_kernel(y_ref, s_ref, t_ref, r_ref, rs_ref, rt_ref, o_ref):
    """out = relu( BN(y) + BN(residual) ), both inputs bf16, folded BN."""
    a = y_ref[...].astype(jnp.float32) * s_ref[...] + t_ref[...]
    b = r_ref[...].astype(jnp.float32) * rs_ref[...] + rt_ref[...]
    o_ref[...] = jnp.maximum(a + b, 0.0).astype(o_ref.dtype)


# ---------------------------------------------------------------------------
# pallas_call wrappers
# ---------------------------------------------------------------------------
def matmul_stats(x, w, lhs_affine=None, m_true=None):
    """y = op(x) @ w (bf16 ops, f32 MXU accumulate, bf16 y) + BN partial stats.

    If lhs_affine=(scale, shift) is given, op(x) = relu(x*scale + shift) is
    applied per input channel on the fly (previous layer's BN+ReLU fused into
    this matmul's LHS read).
    """
    M, K = x.shape
    _, C = w.shape
    tm, tk, tn = _tile_div(M), _tile_div(K), _tile_div(C)
    # keep >= 2 parallel (m, n) blocks when possible (v7x megacore: 2 TCs)
    if (M // tm) * (C // tn) < 2 and tm > 128:
        tm //= 2
    nm, nn, nk = M // tm, C // tn, K // tk

    def k_spec(shape, index_map):
        # deeper buffering on the K-streamed operands (helps v5e/v7x where
        # per-step DMA ~ MXU time); guarded for jax versions w/o pipeline_mode
        if nk >= 2:
            try:
                return pl.BlockSpec(shape, index_map,
                                    pipeline_mode=pl.Buffered(3))
            except TypeError:
                return pl.BlockSpec(shape, index_map)
        return pl.BlockSpec(shape, index_map)

    x_spec = k_spec((tm, tk), lambda m, n, k: (m, k))
    w_spec = k_spec((tk, tn), lambda m, n, k: (k, n))
    out_specs = [pl.BlockSpec((tm, tn), lambda m, n, k: (m, n)),
                 pl.BlockSpec((8, tn), lambda m, n, k: (m, n)),
                 pl.BlockSpec((8, tn), lambda m, n, k: (m, n))]
    out_shape = (jax.ShapeDtypeStruct((M, C), jnp.bfloat16),
                 jax.ShapeDtypeStruct((nm * 8, C), jnp.float32),
                 jax.ShapeDtypeStruct((nm * 8, C), jnp.float32))

    if lhs_affine is None:
        kern = _mm_kernel
        in_specs = [x_spec, w_spec]
        args = (x.astype(jnp.bfloat16), w.astype(jnp.bfloat16))
    else:
        scale, shift = lhs_affine
        mt = M if m_true is None else m_true
        kern = functools.partial(_mm_fused_kernel, tm=tm, m_true=mt,
                                 need_mask=(mt < M))
        row_spec = pl.BlockSpec((1, tk), lambda m, n, k: (0, k))
        in_specs = [x_spec, w_spec, row_spec, row_spec]
        args = (x.astype(jnp.bfloat16), w.astype(jnp.bfloat16),
                scale.reshape(1, K).astype(jnp.float32),
                shift.reshape(1, K).astype(jnp.float32))

    y, psum, psq = pl.pallas_call(
        kern,
        out_shape=out_shape,
        grid_spec=pltpu.PrefetchScalarGridSpec(
            num_scalar_prefetch=0,
            grid=(nm, nn, nk),
            in_specs=in_specs,
            out_specs=out_specs,
            scratch_shapes=[pltpu.VMEM((tm, tn), jnp.float32)]),
        compiler_params=pltpu.CompilerParams(
            dimension_semantics=("parallel", "parallel", "arbitrary"),
            vmem_limit_bytes=_vmem_limit()),
    )(*args)

    total = psum.reshape(nm, 8, C)[:, 0, :].sum(axis=0)
    total_sq = psq.reshape(nm, 8, C)[:, 0, :].sum(axis=0)
    return y, total, total_sq


def conv3x3_stats(h_nhwc, w2, stride):
    """3x3 conv, padding=1, given stride (tap-fused, no im2col in HBM).

    Returns flat (N*Ho*Wo, Cout) bf16 output + per-channel sum / sum-of-squares.
    """
    N, H, W, C = h_nhwc.shape
    Cout = w2.shape[-1]
    Ho = (H + 2 - 3) // stride + 1
    Wo = (W + 2 - 3) // stride + 1

    xp = jnp.pad(h_nhwc, ((0, 0), (1, 1), (1, 1), (0, 0)))
    if stride == 1:
        Hv, Wv = H + 2, W + 2
        v = xp.reshape(N, 1, Hv, Wv, C)
    else:  # stride == 2: parity planes -> every tap is a contiguous slice
        Hp, Wp = H + 2, W + 2
        xp = jnp.pad(xp, ((0, 0), (0, Hp % 2), (0, Wp % 2), (0, 0)))
        Hv, Wv = xp.shape[1] // 2, xp.shape[2] // 2
        v = xp.reshape(N, Hv, 2, Wv, 2, C).transpose(0, 2, 4, 1, 3, 5)
    ss = stride * stride
    v = v.reshape(N * ss, Hv, Wv, C).astype(jnp.bfloat16)
    w2r = w2.reshape(9, C, Cout).astype(jnp.bfloat16)

    y, psum, psq = pl.pallas_call(
        functools.partial(_conv3x3_kernel, stride=stride, Ho=Ho, Wo=Wo),
        out_shape=(jax.ShapeDtypeStruct((N * Ho * Wo, Cout), jnp.bfloat16),
                   jax.ShapeDtypeStruct((N * 8, Cout), jnp.float32),
                   jax.ShapeDtypeStruct((N * 8, Cout), jnp.float32)),
        grid_spec=pltpu.PrefetchScalarGridSpec(
            num_scalar_prefetch=0,
            grid=(N,),
            in_specs=[pl.BlockSpec((ss, Hv, Wv, C), lambda n: (n, 0, 0, 0)),
                      pl.BlockSpec((9, C, Cout), lambda n: (0, 0, 0))],
            out_specs=[pl.BlockSpec((Ho * Wo, Cout), lambda n: (n, 0)),
                       pl.BlockSpec((8, Cout), lambda n: (n, 0)),
                       pl.BlockSpec((8, Cout), lambda n: (n, 0))]),
        compiler_params=pltpu.CompilerParams(
            dimension_semantics=("parallel",),
            vmem_limit_bytes=_vmem_limit()),
    )(v, w2r)

    total = psum.reshape(N, 8, Cout)[:, 0, :].sum(axis=0)
    total_sq = psq.reshape(N, 8, Cout)[:, 0, :].sum(axis=0)
    return y, total, total_sq


def bn_add_relu(y, scale, shift, r, rscale, rshift):
    M, C = y.shape
    tm, tn = _tile_div(M), _tile_div(C)
    big = pl.BlockSpec((tm, tn), lambda m, n: (m, n))
    row = pl.BlockSpec((1, tn), lambda m, n: (0, n))
    return pl.pallas_call(
        _bn_add_relu_kernel,
        out_shape=jax.ShapeDtypeStruct((M, C), jnp.float32),
        grid_spec=pltpu.PrefetchScalarGridSpec(
            num_scalar_prefetch=0, grid=(M // tm, C // tn),
            in_specs=[big, row, row, big, row, row],
            out_specs=big),
        compiler_params=pltpu.CompilerParams(
            dimension_semantics=("parallel", "parallel"),
            vmem_limit_bytes=_vmem_limit()),
    )(y, scale.reshape(1, C).astype(jnp.float32),
      shift.reshape(1, C).astype(jnp.float32),
      r, rscale.reshape(1, C).astype(jnp.float32),
      rshift.reshape(1, C).astype(jnp.float32))


def _bn_scale_shift(total, total_sq, gamma, beta, m_true):
    """Fold batch statistics + gamma/beta into a single (scale, shift)."""
    mean = total / m_true
    # TODO(synk): a Chan/Welford-style combine of per-tile (count, mean, M2)
    # partials would be more robust than E[x^2]-E[x]^2 for huge activations.
    var = jnp.maximum(total_sq / m_true - mean * mean, 0.0)
    scale = gamma * lax.rsqrt(var + EPS)
    shift = beta - mean * scale
    return scale, shift


# ---------------------------------------------------------------------------
# im2col fallback (only used when the tap-fused conv's layout guard fails)
# ---------------------------------------------------------------------------
def im2col_3x3(x_nhwc, stride):
    N, H, W, C = x_nhwc.shape
    Ho = (H + 2 - 3) // stride + 1
    Wo = (W + 2 - 3) // stride + 1
    xp = jnp.pad(x_nhwc, ((0, 0), (1, 1), (1, 1), (0, 0)))
    patches = []
    for ki in range(3):
        for kj in range(3):
            patches.append(
                xp[:, ki:ki + (Ho - 1) * stride + 1:stride,
                      kj:kj + (Wo - 1) * stride + 1:stride, :])
    cols = jnp.concatenate(patches, axis=-1)
    return cols.reshape(N * Ho * Wo, 9 * C), Ho, Wo


# ---------------------------------------------------------------------------
# BottleNeck forward
# ---------------------------------------------------------------------------
def bottleneck_forward(params, x_nchw, stride):
    N, Cin, H, W = x_nchw.shape
    C = params["w1"].shape[1]        # out_channels
    Ce = params["w3"].shape[1]       # out_channels * expansion
    Ho = (H + 2 - 3) // stride + 1
    Wo = (W + 2 - 3) // stride + 1

    Cin_p = _pad_to(Cin, LANE)
    C_p = _pad_to(C, LANE)
    Ce_p = _pad_to(Ce, LANE)

    M1, M2 = N * H * W, N * Ho * Wo
    M1p, M2p = _row_pad(M1), _row_pad(M2)

    # cast input to bf16 exactly once; all activations stay bf16 in HBM
    x = jnp.transpose(x_nchw, (0, 2, 3, 1)).astype(jnp.bfloat16)      # NHWC
    x_p = jnp.pad(x, ((0, 0), (0, 0), (0, 0), (0, Cin_p - Cin)))
    x_flat = jnp.pad(x_p.reshape(M1, Cin_p), ((0, M1p - M1), (0, 0)))

    # --- conv1 (1x1): matmul + BN1 partial stats (bf16 y1) ---
    w1p = _pad_mat(params["w1"], Cin_p, C_p)
    y1, s1, q1 = matmul_stats(x_flat, w1p)
    sc1, sh1 = _bn_scale_shift(s1, q1, _pad_vec(params["g1"], C_p),
                               _pad_vec(params["b1"], C_p), M1)

    # --- conv2 (3x3, stride, pad=1) ---
    # BN1 + ReLU are folded into the plain-JAX construction of conv2's input
    # view, so XLA fuses them with the spatial pad / parity shuffle: no
    # standalone BN-apply pass over h1 exists.
    h1 = jnp.maximum(y1[:M1].astype(jnp.float32) * sc1 + sh1, 0.0)
    h1 = h1.astype(jnp.bfloat16).reshape(N, H, W, C_p)
    w2p = jnp.pad(params["w2"],
                  ((0, 0), (0, 0), (0, C_p - C), (0, C_p - C)))

    tap_ok = stride in (1, 2) and ((Ho * Wo) % 8 == 0 or N == 1)
    if tap_ok:
        y2, s2, q2 = conv3x3_stats(h1, w2p, stride)          # (M2, C_p) bf16
    else:
        # TODO(synk): fallback still materializes 9x im2col columns in HBM.
        cols, _, _ = im2col_3x3(h1, stride)
        cols = jnp.pad(cols, ((0, M2p - M2), (0, 0)))
        y2, s2, q2 = matmul_stats(cols, w2p.reshape(9 * C_p, C_p))
        y2 = y2[:M2]
    sc2, sh2 = _bn_scale_shift(s2, q2, _pad_vec(params["g2"], C_p),
                               _pad_vec(params["b2"], C_p), M2)

    # --- conv3 (1x1): BN2 + ReLU fused into this matmul's LHS read ---
    y2p = jnp.pad(y2, ((0, M2p - y2.shape[0]), (0, 0)))
    w3p = _pad_mat(params["w3"], C_p, Ce_p)
    y3, s3, q3 = matmul_stats(y2p, w3p, lhs_affine=(sc2, sh2), m_true=M2)
    sc3, sh3 = _bn_scale_shift(s3, q3, _pad_vec(params["g3"], Ce_p),
                               _pad_vec(params["b3"], Ce_p), M2)

    # --- shortcut path ---
    if stride != 1 or Cin != Ce:
        xs = x_p[:, ::stride, ::stride, :].reshape(M2, Cin_p)
        xs = jnp.pad(xs, ((0, M2p - M2), (0, 0)))
        wsp = _pad_mat(params["ws"], Cin_p, Ce_p)
        ys, ss_, qs_ = matmul_stats(xs, wsp)
        scs, shs = _bn_scale_shift(ss_, qs_, _pad_vec(params["gs"], Ce_p),
                                   _pad_vec(params["bs"], Ce_p), M2)
        r, rs, rt = ys, scs, shs
    else:
        # identity shortcut: stride==1 and Cin==Ce => M1p==M2p and Cin_p==Ce_p
        r = x_flat
        rs = jnp.ones((Ce_p,), jnp.float32)
        rt = jnp.zeros((Ce_p,), jnp.float32)

    # --- fused BN(conv3) + BN(shortcut) + residual add + ReLU ---
    out = bn_add_relu(y3, sc3, sh3, r, rs, rt)               # (M2p, Ce_p) f32
    out = out[:M2, :Ce].reshape(N, Ho, Wo, Ce)
    return jnp.transpose(out, (0, 3, 1, 2))                  # NCHW


# ---------------------------------------------------------------------------
# Pure-JAX f32 reference (for correctness check)
# ---------------------------------------------------------------------------
def bottleneck_reference(params, x_nchw, stride):
    x = jnp.transpose(x_nchw, (0, 2, 3, 1)).astype(jnp.float32)

    def bn(y, g, b):
        mean = jnp.mean(y, axis=(0, 1, 2), keepdims=True)
        var = jnp.mean(jnp.square(y - mean), axis=(0, 1, 2), keepdims=True)
        return (y - mean) * lax.rsqrt(var + EPS) * g + b

    h = jnp.einsum('nhwc,cd->nhwd', x, params['w1'])
    h = jax.nn.relu(bn(h, params['g1'], params['b1']))
    h = lax.conv_general_dilated(h, params['w2'], (stride, stride),
                                 ((1, 1), (1, 1)),
                                 dimension_numbers=('NHWC', 'HWIO', 'NHWC'))
    h = jax.nn.relu(bn(h, params['g2'], params['b2']))
    h = jnp.einsum('nhwc,cd->nhwd', h, params['w3'])
    h = bn(h, params['g3'], params['b3'])

    Cin = x.shape[-1]
    Ce = params['w3'].shape[1]
    s = x[:, ::stride, ::stride, :]
    if stride != 1 or Cin != Ce:
        s = jnp.einsum('nhwc,cd->nhwd', s, params['ws'])
        s = bn(s, params['gs'], params['bs'])
    out = jax.nn.relu(h + s)
    return jnp.transpose(out, (0, 3, 1, 2))


# ---------------------------------------------------------------------------
# Deterministic parameter init (shapes per BottleNeck.__init__)
# ---------------------------------------------------------------------------
def init_params(key, in_channels, out_channels):
    C, Ce = out_channels, 4 * out_channels               # expansion = 4
    ks = jax.random.split(key, 4)
    return {
        'w1': jax.random.normal(ks[0], (in_channels, C), jnp.float32) * 0.1,
        'w2': jax.random.normal(ks[1], (3, 3, C, C), jnp.float32) * 0.1,   # HWIO
        'w3': jax.random.normal(ks[2], (C, Ce), jnp.float32) * 0.1,
        'ws': jax.random.normal(ks[3], (in_channels, Ce), jnp.float32) * 0.1,
        'g1': jnp.ones((C,), jnp.float32), 'b1': jnp.zeros((C,), jnp.float32),
        'g2': jnp.ones((C,), jnp.float32), 'b2': jnp.zeros((C,), jnp.float32),
        'g3': jnp.ones((Ce,), jnp.float32), 'b3': jnp.zeros((Ce,), jnp.float32),
        'gs': jnp.ones((Ce,), jnp.float32), 'bs': jnp.zeros((Ce,), jnp.float32),
    }


if __name__ == "__main__":
    key = jax.random.PRNGKey(0)
    fwd = jax.jit(bottleneck_forward, static_argnums=2)
    ref = jax.jit(bottleneck_reference, static_argnums=2)

    # Case 1: projection shortcut (stride 2, channel change).
    k_x, k_p = jax.random.split(key)
    in_ch, out_ch, stride = 8, 8, 2
    x = jax.random.normal(k_x, (2, in_ch, 16, 16), jnp.float32)       # NCHW
    params = init_params(k_p, in_ch, out_ch)
    o = jax.block_until_ready(fwd(params, x, stride))
    r = jax.block_until_ready(ref(params, x, stride))
    assert o.shape == (2, out_ch * 4, 8, 8), o.shape
    np.testing.assert_allclose(np.asarray(o), np.asarray(r),
                               rtol=5e-2, atol=5e-2)

    # Case 2: identity shortcut (stride 1, in_channels == expansion*out).
    k_x2, k_p2 = jax.random.split(jax.random.PRNGKey(1))
    in_ch2, out_ch2, stride2 = 32, 8, 1
    x2 = jax.random.normal(k_x2, (2, in_ch2, 8, 8), jnp.float32)
    params2 = init_params(k_p2, in_ch2, out_ch2)
    o2 = jax.block_until_ready(fwd(params2, x2, stride2))
    r2 = jax.block_until_ready(ref(params2, x2, stride2))
    assert o2.shape == (2, out_ch2 * 4, 8, 8), o2.shape
    np.testing.assert_allclose(np.asarray(o2), np.asarray(r2),
                               rtol=5e-2, atol=5e-2)

    print("KERNEL_OK")
</pallas_src>

<mosaic_0001>
module attributes {stable_mosaic.version = 11 : i64} {
  func.func @_mm_kernel(%arg0: i32, %arg1: i32, %arg2: i32, %arg3: memref<256x128xbf16, #tpu.memory_space<vmem>>, %arg4: memref<128x128xbf16, #tpu.memory_space<vmem>>, %arg5: memref<256x128xbf16, #tpu.memory_space<vmem>>, %arg6: memref<8x128xf32, #tpu.memory_space<vmem>>, %arg7: memref<8x128xf32, #tpu.memory_space<vmem>>, %arg8: memref<256x128xf32, #tpu.memory_space<vmem>>) attributes {dimension_semantics = [#tpu.dimension_semantics<parallel>, #tpu.dimension_semantics<parallel>, #tpu.dimension_semantics<arbitrary>], iteration_bounds = array<i64: 2, 1, 1>, scalar_prefetch = 0 : i64, scratch_operands = 1 : i64, tpu.core_type = #tpu.core_type<tc>, window_params = [{transform_indices = @transform_0, window_bounds = array<i64: 256, 128>}, {transform_indices = @transform_1, window_bounds = array<i64: 128, 128>}, {transform_indices = @transform_2, window_bounds = array<i64: 256, 128>}, {transform_indices = @transform_3, window_bounds = array<i64: 8, 128>}, {transform_indices = @transform_4, window_bounds = array<i64: 8, 128>}]} {
    %c0_i32 = arith.constant 0 : i32
    %0 = arith.cmpi eq, %arg2, %c0_i32 : i32
    %1 = arith.extui %0 : i1 to i32
    %c0_i32_0 = arith.constant 0 : i32
    %2 = arith.cmpi ne, %1, %c0_i32_0 : i32
    scf.if %2 {
      %cst_10 = arith.constant 0.000000e+00 : f32
      %12 = vector.broadcast %cst_10 : f32 to vector<256x128xf32>
      %c0_11 = arith.constant 0 : index
      %c0_12 = arith.constant 0 : index
      %13 = vector.load %arg8[%c0_11, %c0_12] : memref<256x128xf32, #tpu.memory_space<vmem>>, vector<256x128xf32>
      tpu.vector_store %arg8[%c0_11, %c0_12], %12 {strides = array<i32>} : memref<256x128xf32, #tpu.memory_space<vmem>>, vector<256x128xf32>,
    } else {
    }
    %c0 = arith.constant 0 : index
    %c0_1 = arith.constant 0 : index
    %3 = vector.load %arg8[%c0, %c0_1] : memref<256x128xf32, #tpu.memory_space<vmem>>, vector<256x128xf32>
    %c0_2 = arith.constant 0 : index
    %c0_3 = arith.constant 0 : index
    %4 = vector.load %arg3[%c0_2, %c0_3] : memref<256x128xbf16, #tpu.memory_space<vmem>>, vector<256x128xbf16>
    %c0_4 = arith.constant 0 : index
    %c0_5 = arith.constant 0 : index
    %5 = vector.load %arg4[%c0_4, %c0_5] : memref<128x128xbf16, #tpu.memory_space<vmem>>, vector<128x128xbf16>
    %cst = arith.constant dense<0.000000e+00> : vector<256x128xf32>
    %6 = tpu.matmul %4, %5, %cst {dimension_numbers = #tpu.dot_dimension_numbers<[1], [0], [0], [1], [0, 0, 1, 1], [], []>} : vector<256x128xbf16>, vector<128x128xbf16>, vector<256x128xf32> -> vector<256x128xf32>
    %7 = arith.addf %3, %6 : vector<256x128xf32>
    %c0_6 = arith.constant 0 : index
    %c0_7 = arith.constant 0 : index
    %8 = vector.load %arg8[%c0_6, %c0_7] : memref<256x128xf32, #tpu.memory_space<vmem>>, vector<256x128xf32>
    tpu.vector_store %arg8[%c0_6, %c0_7], %7 {strides = array<i32>} : memref<256x128xf32, #tpu.memory_space<vmem>>, vector<256x128xf32>,
    %c0_i32_8 = arith.constant 0 : i32
    %9 = arith.cmpi eq, %arg2, %c0_i32_8 : i32
    %10 = arith.extui %9 : i1 to i32
    %c0_i32_9 = arith.constant 0 : i32
    %11 = arith.cmpi ne, %10, %c0_i32_9 : i32
    scf.if %11 {
      %c0_10 = arith.constant 0 : index
      %c0_11 = arith.constant 0 : index
      %12 = vector.load %arg8[%c0_10, %c0_11] : memref<256x128xf32, #tpu.memory_space<vmem>>, vector<256x128xf32>
      %13 = arith.truncf %12 : vector<256x128xf32> to vector<256x128xbf16>
      %c0_12 = arith.constant 0 : index
      %c0_13 = arith.constant 0 : index
      %14 = vector.load %arg5[%c0_12, %c0_13] : memref<256x128xbf16, #tpu.memory_space<vmem>>, vector<256x128xbf16>
      tpu.vector_store %arg5[%c0_12, %c0_13], %13 {strides = array<i32>} : memref<256x128xbf16, #tpu.memory_space<vmem>>, vector<256x128xbf16>,
      %cst_14 = arith.constant dense<0.000000e+00> : vector<128xf32>
      %15 = vector.multi_reduction <add>, %12, %cst_14 [0] : vector<256x128xf32> to vector<128xf32>
      %16 = vector.shape_cast %15 : vector<128xf32> to vector<1x128xf32>
      %17 = arith.mulf %12, %12 : vector<256x128xf32>
      %cst_15 = arith.constant dense<0.000000e+00> : vector<128xf32>
      %18 = vector.multi_reduction <add>, %17, %cst_15 [0] : vector<256x128xf32> to vector<128xf32>
      %19 = vector.shape_cast %18 : vector<128xf32> to vector<1x128xf32>
      %20 = vector.shape_cast %16 : vector<1x128xf32> to vector<1x128xf32>
      %21 = vector.broadcast %20 : vector<1x128xf32> to vector<8x128xf32>
      %c0_16 = arith.constant 0 : index
      %c0_17 = arith.constant 0 : index
      %22 = vector.load %arg6[%c0_16, %c0_17] : memref<8x128xf32, #tpu.memory_space<vmem>>, vector<8x128xf32>
      tpu.vector_store %arg6[%c0_16, %c0_17], %21 {strides = array<i32>} : memref<8x128xf32, #tpu.memory_space<vmem>>, vector<8x128xf32>,
      %23 = vector.shape_cast %19 : vector<1x128xf32> to vector<1x128xf32>
      %24 = vector.broadcast %23 : vector<1x128xf32> to vector<8x128xf32>
      %c0_18 = arith.constant 0 : index
      %c0_19 = arith.constant 0 : index
      %25 = vector.load %arg7[%c0_18, %c0_19] : memref<8x128xf32, #tpu.memory_space<vmem>>, vector<8x128xf32>
      tpu.vector_store %arg7[%c0_18, %c0_19], %24 {strides = array<i32>} : memref<8x128xf32, #tpu.memory_space<vmem>>, vector<8x128xf32>,
    } else {
    }
    return
  }
  func.func @transform_0(%arg0: i32, %arg1: i32, %arg2: i32) -> (i32, i32) {
    %c0_i32 = arith.constant 0 : i32
    return %arg0, %arg2 : i32, i32
  }
  func.func @transform_1(%arg0: i32, %arg1: i32, %arg2: i32) -> (i32, i32) {
    %c0_i32 = arith.constant 0 : i32
    return %arg2, %arg1 : i32, i32
  }
  func.func @transform_2(%arg0: i32, %arg1: i32, %arg2: i32) -> (i32, i32) {
    %c0_i32 = arith.constant 0 : i32
    return %arg0, %arg1 : i32, i32
  }
  func.func @transform_3(%arg0: i32, %arg1: i32, %arg2: i32) -> (i32, i32) {
    %c0_i32 = arith.constant 0 : i32
    return %arg0, %arg1 : i32, i32
  }
  func.func @transform_4(%arg0: i32, %arg1: i32, %arg2: i32) -> (i32, i32) {
    %c0_i32 = arith.constant 0 : i32
    return %arg0, %arg1 : i32, i32
  }
}

module attributes {stable_mosaic.version = 11 : i64} {
  func.func @_conv3x3_kernel(%arg0: i32, %arg1: memref<4x9x9x128xbf16, #tpu.memory_space<vmem>>, %arg2: memref<9x128x128xbf16, #tpu.memory_space<vmem>>, %arg3: memref<64x128xbf16, #tpu.memory_space<vmem>>, %arg4: memref<8x128xf32, #tpu.memory_space<vmem>>, %arg5: memref<8x128xf32, #tpu.memory_space<vmem>>) attributes {dimension_semantics = [#tpu.dimension_semantics<parallel>], iteration_bounds = array<i64: 2>, scalar_prefetch = 0 : i64, scratch_operands = 0 : i64, tpu.core_type = #tpu.core_type<tc>, window_params = [{transform_indices = @transform_0, window_bounds = array<i64: 4, 9, 9, 128>}, {pipeline_mode = #tpu.pipeline_mode<synchronous>, transform_indices = @transform_1, window_bounds = array<i64: 9, 128, 128>}, {transform_indices = @transform_2, window_bounds = array<i64: 64, 128>}, {transform_indices = @transform_3, window_bounds = array<i64: 8, 128>}, {transform_indices = @transform_4, window_bounds = array<i64: 8, 128>}]} {
    %cst = arith.constant 0.000000e+00 : f32
    %0 = vector.broadcast %cst : f32 to vector<64x128xf32>
    %c0 = arith.constant 0 : index
    %c0_0 = arith.constant 0 : index
    %c0_1 = arith.constant 0 : index
    %c0_2 = arith.constant 0 : index
    %1 = vector.load %arg1[%c0, %c0_0, %c0_1, %c0_2] : memref<4x9x9x128xbf16, #tpu.memory_space<vmem>>, vector<1x8x8x128xbf16>
    %2 = vector.shape_cast %1 : vector<1x8x8x128xbf16> to vector<8x8x128xbf16>
    %3 = vector.shape_cast %2 : vector<8x8x128xbf16> to vector<64x128xbf16>
    %c0_3 = arith.constant 0 : index
    %c0_4 = arith.constant 0 : index
    %c0_5 = arith.constant 0 : index
    %4 = vector.load %arg2[%c0_3, %c0_4, %c0_5] : memref<9x128x128xbf16, #tpu.memory_space<vmem>>, vector<1x128x128xbf16>
    %5 = vector.shape_cast %4 : vector<1x128x128xbf16> to vector<128x128xbf16>
    %cst_6 = arith.constant dense<0.000000e+00> : vector<64x128xf32>
    %6 = tpu.matmul %3, %5, %cst_6 {dimension_numbers = #tpu.dot_dimension_numbers<[1], [0], [0], [1], [0, 0, 1, 1], [], []>} : vector<64x128xbf16>, vector<128x128xbf16>, vector<64x128xf32> -> vector<64x128xf32>
    %7 = arith.addf %0, %6 : vector<64x128xf32>
    %c1 = arith.constant 1 : index
    %c0_7 = arith.constant 0 : index
    %c0_8 = arith.constant 0 : index
    %c0_9 = arith.constant 0 : index
    %8 = vector.load %arg1[%c1, %c0_7, %c0_8, %c0_9] : memref<4x9x9x128xbf16, #tpu.memory_space<vmem>>, vector<1x8x8x128xbf16>
    %9 = vector.shape_cast %8 : vector<1x8x8x128xbf16> to vector<8x8x128xbf16>
    %10 = vector.shape_cast %9 : vector<8x8x128xbf16> to vector<64x128xbf16>
    %c1_10 = arith.constant 1 : index
    %c0_11 = arith.constant 0 : index
    %c0_12 = arith.constant 0 : index
    %11 = vector.load %arg2[%c1_10, %c0_11, %c0_12] : memref<9x128x128xbf16, #tpu.memory_space<vmem>>, vector<1x128x128xbf16>
    %12 = vector.shape_cast %11 : vector<1x128x128xbf16> to vector<128x128xbf16>
    %cst_13 = arith.constant dense<0.000000e+00> : vector<64x128xf32>
    %13 = tpu.matmul %10, %12, %cst_13 {dimension_numbers = #tpu.dot_dimension_numbers<[1], [0], [0], [1], [0, 0, 1, 1], [], []>} : vector<64x128xbf16>, vector<128x128xbf16>, vector<64x128xf32> -> vector<64x128xf32>
    %14 = arith.addf %7, %13 : vector<64x128xf32>
    %c0_14 = arith.constant 0 : index
    %c0_15 = arith.constant 0 : index
    %c1_16 = arith.constant 1 : index
    %c0_17 = arith.constant 0 : index
    %15 = vector.load %arg1[%c0_14, %c0_15, %c1_16, %c0_17] : memref<4x9x9x128xbf16, #tpu.memory_space<vmem>>, vector<1x8x8x128xbf16>
    %16 = vector.shape_cast %15 : vector<1x8x8x128xbf16> to vector<8x8x128xbf16>
    %17 = vector.shape_cast %16 : vector<8x8x128xbf16> to vector<64x128xbf16>
    %c2 = arith.constant 2 : index
    %c0_18 = arith.constant 0 : index
    %c0_19 = arith.constant 0 : index
    %18 = vector.load %arg2[%c2, %c0_18, %c0_19] : memref<9x128x128xbf16, #tpu.memory_space<vmem>>, vector<1x128x128xbf16>
    %19 = vector.shape_cast %18 : vector<1x128x128xbf16> to vector<128x128xbf16>
    %cst_20 = arith.constant dense<0.000000e+00> : vector<64x128xf32>
    %20 = tpu.matmul %17, %19, %cst_20 {dimension_numbers = #tpu.dot_dimension_numbers<[1], [0], [0], [1], [0, 0, 1, 1], [], []>} : vector<64x128xbf16>, vector<128x128xbf16>, vector<64x128xf32> -> vector<64x128xf32>
    %21 = arith.addf %14, %20 : vector<64x128xf32>
    %c2_21 = arith.constant 2 : index
    %c0_22 = arith.constant 0 : index
    %c0_23 = arith.constant 0 : index
    %c0_24 = arith.constant 0 : index
    %22 = vector.load %arg1[%c2_21, %c0_22, %c0_23, %c0_24] : memref<4x9x9x128xbf16, #tpu.memory_space<vmem>>, vector<1x8x8x128xbf16>
    %23 = vector.shape_cast %22 : vector<1x8x8x128xbf16> to vector<8x8x128xbf16>
    %24 = vector.shape_cast %23 : vector<8x8x128xbf16> to vector<64x128xbf16>
    %c3 = arith.constant 3 : index
    %c0_25 = arith.constant 0 : index
    %c0_26 = arith.constant 0 : index
    %25 = vector.load %arg2[%c3, %c0_25, %c0_26] : memref<9x128x128xbf16, #tpu.memory_space<vmem>>, vector<1x128x128xbf16>
    %26 = vector.shape_cast %25 : vector<1x128x128xbf16> to vector<128x128xbf16>
    %cst_27 = arith.constant dense<0.000000e+00> : vector<64x128xf32>
    %27 = tpu.matmul %24, %26, %cst_27 {dimension_numbers = #tpu.dot_dimension_numbers<[1], [0], [0], [1], [0, 0, 1, 1], [], []>} : vector<64x128xbf16>, vector<128x128xbf16>, vector<64x128xf32> -> vector<64x128xf32>
    %28 = arith.addf %21, %27 : vector<64x128xf32>
    %c3_28 = arith.constant 3 : index
    %c0_29 = arith.constant 0 : index
    %c0_30 = arith.constant 0 : index
    %c0_31 = arith.constant 0 : index
    %29 = vector.load %arg1[%c3_28, %c0_29, %c0_30, %c0_31] : memref<4x9x9x128xbf16, #tpu.memory_space<vmem>>, vector<1x8x8x128xbf16>
    %30 = vector.shape_cast %29 : vector<1x8x8x128xbf16> to vector<8x8x128xbf16>
    %31 = vector.shape_cast %30 : vector<8x8x128xbf16> to vector<64x128xbf16>
    %c4 = arith.constant 4 : index
    %c0_32 = arith.constant 0 : index
    %c0_33 = arith.constant 0 : index
    %32 = vector.load %arg2[%c4, %c0_32, %c0_33] : memref<9x128x128xbf16, #tpu.memory_space<vmem>>, vector<1x128x128xbf16>
    %33 = vector.shape_cast %32 : vector<1x128x128xbf16> to vector<128x128xbf16>
    %cst_34 = arith.constant dense<0.000000e+00> : vector<64x128xf32>
    %34 = tpu.matmul %31, %33, %cst_34 {dimension_numbers = #tpu.dot_dimension_numbers<[1], [0], [0], [1], [0, 0, 1, 1], [], []>} : vector<64x128xbf16>, vector<128x128xbf16>, vector<64x128xf32> -> vector<64x128xf32>
    %35 = arith.addf %28, %34 : vector<64x128xf32>
    %c2_35 = arith.constant 2 : index
    %c0_36 = arith.constant 0 : index
    %c1_37 = arith.constant 1 : index
    %c0_38 = arith.constant 0 : index
    %36 = vector.load %arg1[%c2_35, %c0_36, %c1_37, %c0_38] : memref<4x9x9x128xbf16, #tpu.memory_space<vmem>>, vector<1x8x8x128xbf16>
    %37 = vector.shape_cast %36 : vector<1x8x8x128xbf16> to vector<8x8x128xbf16>
    %38 = vector.shape_cast %37 : vector<8x8x128xbf16> to vector<64x128xbf16>
    %c5 = arith.constant 5 : index
    %c0_39 = arith.constant 0 : index
    %c0_40 = arith.constant 0 : index
    %39 = vector.load %arg2[%c5, %c0_39, %c0_40] : memref<9x128x128xbf16, #tpu.memory_space<vmem>>, vector<1x128x128xbf16>
    %40 = vector.shape_cast %39 : vector<1x128x128xbf16> to vector<128x128xbf16>
    %cst_41 = arith.constant dense<0.000000e+00> : vector<64x128xf32>
    %41 = tpu.matmul %38, %40, %cst_41 {dimension_numbers = #tpu.dot_dimension_numbers<[1], [0], [0], [1], [0, 0, 1, 1], [], []>} : vector<64x128xbf16>, vector<128x128xbf16>, vector<64x128xf32> -> vector<64x128xf32>
    %42 = arith.addf %35, %41 : vector<64x128xf32>
    %c0_42 = arith.constant 0 : index
    %c1_43 = arith.constant 1 : index
    %c0_44 = arith.constant 0 : index
    %c0_45 = arith.constant 0 : index
    %43 = vector.load %arg1[%c0_42, %c1_43, %c0_44, %c0_45] : memref<4x9x9x128xbf16, #tpu.memory_space<vmem>>, vector<1x8x8x128xbf16>
    %44 = vector.shape_cast %43 : vector<1x8x8x128xbf16> to vector<8x8x128xbf16>
    %45 = vector.shape_cast %44 : vector<8x8x128xbf16> to vector<64x128xbf16>
    %c6 = arith.constant 6 : index
    %c0_46 = arith.constant 0 : index
    %c0_47 = arith.constant 0 : index
    %46 = vector.load %arg2[%c6, %c0_46, %c0_47] : memref<9x128x128xbf16, #tpu.memory_space<vmem>>, vector<1x128x128xbf16>
    %47 = vector.shape_cast %46 : vector<1x128x128xbf16> to vector<128x128xbf16>
    %cst_48 = arith.constant dense<0.000000e+00> : vector<64x128xf32>
    %48 = tpu.matmul %45, %47, %cst_48 {dimension_numbers = #tpu.dot_dimension_numbers<[1], [0], [0], [1], [0, 0, 1, 1], [], []>} : vector<64x128xbf16>, vector<128x128xbf16>, vector<64x128xf32> -> vector<64x128xf32>
    %49 = arith.addf %42, %48 : vector<64x128xf32>
    %c1_49 = arith.constant 1 : index
    %c1_50 = arith.constant 1 : index
    %c0_51 = arith.constant 0 : index
    %c0_52 = arith.constant 0 : index
    %50 = vector.load %arg1[%c1_49, %c1_50, %c0_51, %c0_52] : memref<4x9x9x128xbf16, #tpu.memory_space<vmem>>, vector<1x8x8x128xbf16>
    %51 = vector.shape_cast %50 : vector<1x8x8x128xbf16> to vector<8x8x128xbf16>
    %52 = vector.shape_cast %51 : vector<8x8x128xbf16> to vector<64x128xbf16>
    %c7 = arith.constant 7 : index
    %c0_53 = arith.constant 0 : index
    %c0_54 = arith.constant 0 : index
    %53 = vector.load %arg2[%c7, %c0_53, %c0_54] : memref<9x128x128xbf16, #tpu.memory_space<vmem>>, vector<1x128x128xbf16>
    %54 = vector.shape_cast %53 : vector<1x128x128xbf16> to vector<128x128xbf16>
    %cst_55 = arith.constant dense<0.000000e+00> : vector<64x128xf32>
    %55 = tpu.matmul %52, %54, %cst_55 {dimension_numbers = #tpu.dot_dimension_numbers<[1], [0], [0], [1], [0, 0, 1, 1], [], []>} : vector<64x128xbf16>, vector<128x128xbf16>, vector<64x128xf32> -> vector<64x128xf32>
    %56 = arith.addf %49, %55 : vector<64x128xf32>
    %c0_56 = arith.constant 0 : index
    %c1_57 = arith.constant 1 : index
    %c1_58 = arith.constant 1 : index
    %c0_59 = arith.constant 0 : index
    %57 = vector.load %arg1[%c0_56, %c1_57, %c1_58, %c0_59] : memref<4x9x9x128xbf16, #tpu.memory_space<vmem>>, vector<1x8x8x128xbf16>
    %58 = vector.shape_cast %57 : vector<1x8x8x128xbf16> to vector<8x8x128xbf16>
    %59 = vector.shape_cast %58 : vector<8x8x128xbf16> to vector<64x128xbf16>
    %c8 = arith.constant 8 : index
    %c0_60 = arith.constant 0 : index
    %c0_61 = arith.constant 0 : index
    %60 = vector.load %arg2[%c8, %c0_60, %c0_61] : memref<9x128x128xbf16, #tpu.memory_space<vmem>>, vector<1x128x128xbf16>
    %61 = vector.shape_cast %60 : vector<1x128x128xbf16> to vector<128x128xbf16>
    %cst_62 = arith.constant dense<0.000000e+00> : vector<64x128xf32>
    %62 = tpu.matmul %59, %61, %cst_62 {dimension_numbers = #tpu.dot_dimension_numbers<[1], [0], [0], [1], [0, 0, 1, 1], [], []>} : vector<64x128xbf16>, vector<128x128xbf16>, vector<64x128xf32> -> vector<64x128xf32>
    %63 = arith.addf %56, %62 : vector<64x128xf32>
    %64 = arith.truncf %63 : vector<64x128xf32> to vector<64x128xbf16>
    %c0_63 = arith.constant 0 : index
    %c0_64 = arith.constant 0 : index
    %65 = vector.load %arg3[%c0_63, %c0_64] : memref<64x128xbf16, #tpu.memory_space<vmem>>, vector<64x128xbf16>
    tpu.vector_store %arg3[%c0_63, %c0_64], %64 {strides = array<i32>} : memref<64x128xbf16, #tpu.memory_space<vmem>>, vector<64x128xbf16>,
    %cst_65 = arith.constant dense<0.000000e+00> : vector<128xf32>
    %66 = vector.multi_reduction <add>, %63, %cst_65 [0] : vector<64x128xf32> to vector<128xf32>
    %67 = vector.shape_cast %66 : vector<128xf32> to vector<1x128xf32>
    %68 = arith.mulf %63, %63 : vector<64x128xf32>
    %cst_66 = arith.constant dense<0.000000e+00> : vector<128xf32>
    %69 = vector.multi_reduction <add>, %68, %cst_66 [0] : vector<64x128xf32> to vector<128xf32>
    %70 = vector.shape_cast %69 : vector<128xf32> to vector<1x128xf32>
    %71 = vector.shape_cast %67 : vector<1x128xf32> to vector<1x128xf32>
    %72 = vector.broadcast %71 : vector<1x128xf32> to vector<8x128xf32>
    %c0_67 = arith.constant 0 : index
    %c0_68 = arith.constant 0 : index
    %73 = vector.load %arg4[%c0_67, %c0_68] : memref<8x128xf32, #tpu.memory_space<vmem>>, vector<8x128xf32>
    tpu.vector_store %arg4[%c0_67, %c0_68], %72 {strides = array<i32>} : memref<8x128xf32, #tpu.memory_space<vmem>>, vector<8x128xf32>,
    %74 = vector.shape_cast %70 : vector<1x128xf32> to vector<1x128xf32>
    %75 = vector.broadcast %74 : vector<1x128xf32> to vector<8x128xf32>
    %c0_69 = arith.constant 0 : index
    %c0_70 = arith.constant 0 : index
    %76 = vector.load %arg5[%c0_69, %c0_70] : memref<8x128xf32, #tpu.memory_space<vmem>>, vector<8x128xf32>
    tpu.vector_store %arg5[%c0_69, %c0_70], %75 {strides = array<i32>} : memref<8x128xf32, #tpu.memory_space<vmem>>, vector<8x128xf32>,
    return
  }
  func.func @transform_0(%arg0: i32) -> (i32, i32, i32, i32) {
    %c0_i32 = arith.constant 0 : i32
    %c0_i32_0 = arith.constant 0 : i32
    %c0_i32_1 = arith.constant 0 : i32
    %c0_i32_2 = arith.constant 0 : i32
    return %arg0, %c0_i32, %c0_i32_0, %c0_i32_1 : i32, i32, i32, i32
  }
  func.func @transform_1(%arg0: i32) -> (i32, i32, i32) {
    %c0_i32 = arith.constant 0 : i32
    %c0_i32_0 = arith.constant 0 : i32
    %c0_i32_1 = arith.constant 0 : i32
    %c0_i32_2 = arith.constant 0 : i32
    return %c0_i32, %c0_i32_0, %c0_i32_1 : i32, i32, i32
  }
  func.func @transform_2(%arg0: i32) -> (i32, i32) {
    %c0_i32 = arith.constant 0 : i32
    %c0_i32_0 = arith.constant 0 : i32
    return %arg0, %c0_i32 : i32, i32
  }
  func.func @transform_3(%arg0: i32) -> (i32, i32) {
    %c0_i32 = arith.constant 0 : i32
    %c0_i32_0 = arith.constant 0 : i32
    return %arg0, %c0_i32 : i32, i32
  }
  func.func @transform_4(%arg0: i32) -> (i32, i32) {
    %c0_i32 = arith.constant 0 : i32
    %c0_i32_0 = arith.constant 0 : i32
    return %arg0, %c0_i32 : i32, i32
  }
}

module attributes {stable_mosaic.version = 11 : i64} {
  func.func @_mm_fused_kernel(%arg0: i32, %arg1: i32, %arg2: i32, %arg3: memref<128x128xbf16, #tpu.memory_space<vmem>>, %arg4: memref<128x128xbf16, #tpu.memory_space<vmem>>, %arg5: memref<1x128xf32, #tpu.memory_space<vmem>>, %arg6: memref<1x128xf32, #tpu.memory_space<vmem>>, %arg7: memref<128x128xbf16, #tpu.memory_space<vmem>>, %arg8: memref<8x128xf32, #tpu.memory_space<vmem>>, %arg9: memref<8x128xf32, #tpu.memory_space<vmem>>, %arg10: memref<128x128xf32, #tpu.memory_space<vmem>>) attributes {dimension_semantics = [#tpu.dimension_semantics<parallel>, #tpu.dimension_semantics<parallel>, #tpu.dimension_semantics<arbitrary>], iteration_bounds = array<i64: 1, 1, 1>, scalar_prefetch = 0 : i64, scratch_operands = 1 : i64, tpu.core_type = #tpu.core_type<tc>, window_params = [{transform_indices = @transform_0, window_bounds = array<i64: 128, 128>}, {transform_indices = @transform_1, window_bounds = array<i64: 128, 128>}, {transform_indices = @transform_2, window_bounds = array<i64: 1, 128>}, {transform_indices = @transform_3, window_bounds = array<i64: 1, 128>}, {transform_indices = @transform_4, window_bounds = array<i64: 128, 128>}, {transform_indices = @transform_5, window_bounds = array<i64: 8, 128>}, {transform_indices = @transform_6, window_bounds = array<i64: 8, 128>}]} {
    %c0_i32 = arith.constant 0 : i32
    %0 = arith.cmpi eq, %arg2, %c0_i32 : i32
    %1 = arith.extui %0 : i1 to i32
    %c0_i32_0 = arith.constant 0 : i32
    %2 = arith.cmpi ne, %1, %c0_i32_0 : i32
    scf.if %2 {
      %cst_15 = arith.constant 0.000000e+00 : f32
      %22 = vector.broadcast %cst_15 : f32 to vector<128x128xf32>
      %c0_16 = arith.constant 0 : index
      %c0_17 = arith.constant 0 : index
      %23 = vector.load %arg10[%c0_16, %c0_17] : memref<128x128xf32, #tpu.memory_space<vmem>>, vector<128x128xf32>
      tpu.vector_store %arg10[%c0_16, %c0_17], %22 {strides = array<i32>} : memref<128x128xf32, #tpu.memory_space<vmem>>, vector<128x128xf32>,
    } else {
    }
    %c0 = arith.constant 0 : index
    %c0_1 = arith.constant 0 : index
    %3 = vector.load %arg3[%c0, %c0_1] : memref<128x128xbf16, #tpu.memory_space<vmem>>, vector<128x128xbf16>
    %4 = arith.extf %3 : vector<128x128xbf16> to vector<128x128xf32>
    %c0_2 = arith.constant 0 : index
    %c0_3 = arith.constant 0 : index
    %5 = vector.load %arg5[%c0_2, %c0_3] : memref<1x128xf32, #tpu.memory_space<vmem>>, vector<1x128xf32>
    %6 = vector.broadcast %5 : vector<1x128xf32> to vector<128x128xf32>
    %7 = arith.mulf %4, %6 : vector<128x128xf32>
    %c0_4 = arith.constant 0 : index
    %c0_5 = arith.constant 0 : index
    %8 = vector.load %arg6[%c0_4, %c0_5] : memref<1x128xf32, #tpu.memory_space<vmem>>, vector<1x128xf32>
    %9 = vector.broadcast %8 : vector<1x128xf32> to vector<128x128xf32>
    %10 = arith.addf %7, %9 : vector<128x128xf32>
    %cst = arith.constant 0.000000e+00 : f32
    %11 = vector.broadcast %cst : f32 to vector<128x128xf32>
    %12 = arith.maximumf %10, %11 : vector<128x128xf32>
    %c0_6 = arith.constant 0 : index
    %c0_7 = arith.constant 0 : index
    %13 = vector.load %arg10[%c0_6, %c0_7] : memref<128x128xf32, #tpu.memory_space<vmem>>, vector<128x128xf32>
    %14 = arith.truncf %12 : vector<128x128xf32> to vector<128x128xbf16>
    %c0_8 = arith.constant 0 : index
    %c0_9 = arith.constant 0 : index
    %15 = vector.load %arg4[%c0_8, %c0_9] : memref<128x128xbf16, #tpu.memory_space<vmem>>, vector<128x128xbf16>
    %cst_10 = arith.constant dense<0.000000e+00> : vector<128x128xf32>
    %16 = tpu.matmul %14, %15, %cst_10 {dimension_numbers = #tpu.dot_dimension_numbers<[1], [0], [0], [1], [0, 0, 1, 1], [], []>} : vector<128x128xbf16>, vector<128x128xbf16>, vector<128x128xf32> -> vector<128x128xf32>
    %17 = arith.addf %13, %16 : vector<128x128xf32>
    %c0_11 = arith.constant 0 : index
    %c0_12 = arith.constant 0 : index
    %18 = vector.load %arg10[%c0_11, %c0_12] : memref<128x128xf32, #tpu.memory_space<vmem>>, vector<128x128xf32>
    tpu.vector_store %arg10[%c0_11, %c0_12], %17 {strides = array<i32>} : memref<128x128xf32, #tpu.memory_space<vmem>>, vector<128x128xf32>,
    %c0_i32_13 = arith.constant 0 : i32
    %19 = arith.cmpi eq, %arg2, %c0_i32_13 : i32
    %20 = arith.extui %19 : i1 to i32
    %c0_i32_14 = arith.constant 0 : i32
    %21 = arith.cmpi ne, %20, %c0_i32_14 : i32
    scf.if %21 {
      %c0_15 = arith.constant 0 : index
      %c0_16 = arith.constant 0 : index
      %22 = vector.load %arg10[%c0_15, %c0_16] : memref<128x128xf32, #tpu.memory_space<vmem>>, vector<128x128xf32>
      %23 = arith.truncf %22 : vector<128x128xf32> to vector<128x128xbf16>
      %c0_17 = arith.constant 0 : index
      %c0_18 = arith.constant 0 : index
      %24 = vector.load %arg7[%c0_17, %c0_18] : memref<128x128xbf16, #tpu.memory_space<vmem>>, vector<128x128xbf16>
      tpu.vector_store %arg7[%c0_17, %c0_18], %23 {strides = array<i32>} : memref<128x128xbf16, #tpu.memory_space<vmem>>, vector<128x128xbf16>,
      %cst_19 = arith.constant dense<0.000000e+00> : vector<128xf32>
      %25 = vector.multi_reduction <add>, %22, %cst_19 [0] : vector<128x128xf32> to vector<128xf32>
      %26 = vector.shape_cast %25 : vector<128xf32> to vector<1x128xf32>
      %27 = arith.mulf %22, %22 : vector<128x128xf32>
      %cst_20 = arith.constant dense<0.000000e+00> : vector<128xf32>
      %28 = vector.multi_reduction <add>, %27, %cst_20 [0] : vector<128x128xf32> to vector<128xf32>
      %29 = vector.shape_cast %28 : vector<128xf32> to vector<1x128xf32>
      %30 = vector.shape_cast %26 : vector<1x128xf32> to vector<1x128xf32>
      %31 = vector.broadcast %30 : vector<1x128xf32> to vector<8x128xf32>
      %c0_21 = arith.constant 0 : index
      %c0_22 = arith.constant 0 : index
      %32 = vector.load %arg8[%c0_21, %c0_22] : memref<8x128xf32, #tpu.memory_space<vmem>>, vector<8x128xf32>
      tpu.vector_store %arg8[%c0_21, %c0_22], %31 {strides = array<i32>} : memref<8x128xf32, #tpu.memory_space<vmem>>, vector<8x128xf32>,
      %33 = vector.shape_cast %29 : vector<1x128xf32> to vector<1x128xf32>
      %34 = vector.broadcast %33 : vector<1x128xf32> to vector<8x128xf32>
      %c0_23 = arith.constant 0 : index
      %c0_24 = arith.constant 0 : index
      %35 = vector.load %arg9[%c0_23, %c0_24] : memref<8x128xf32, #tpu.memory_space<vmem>>, vector<8x128xf32>
      tpu.vector_store %arg9[%c0_23, %c0_24], %34 {strides = array<i32>} : memref<8x128xf32, #tpu.memory_space<vmem>>, vector<8x128xf32>,
    } else {
    }
    return
  }
  func.func @transform_0(%arg0: i32, %arg1: i32, %arg2: i32) -> (i32, i32) {
    %c0_i32 = arith.constant 0 : i32
    return %arg0, %arg2 : i32, i32
  }
  func.func @transform_1(%arg0: i32, %arg1: i32, %arg2: i32) -> (i32, i32) {
    %c0_i32 = arith.constant 0 : i32
    return %arg2, %arg1 : i32, i32
  }
  func.func @transform_2(%arg0: i32, %arg1: i32, %arg2: i32) -> (i32, i32) {
    %c0_i32 = arith.constant 0 : i32
    %c0_i32_0 = arith.constant 0 : i32
    return %c0_i32, %arg2 : i32, i32
  }
  func.func @transform_3(%arg0: i32, %arg1: i32, %arg2: i32) -> (i32, i32) {
    %c0_i32 = arith.constant 0 : i32
    %c0_i32_0 = arith.constant 0 : i32
    return %c0_i32, %arg2 : i32, i32
  }
  func.func @transform_4(%arg0: i32, %arg1: i32, %arg2: i32) -> (i32, i32) {
    %c0_i32 = arith.constant 0 : i32
    return %arg0, %arg1 : i32, i32
  }
  func.func @transform_5(%arg0: i32, %arg1: i32, %arg2: i32) -> (i32, i32) {
    %c0_i32 = arith.constant 0 : i32
    return %arg0, %arg1 : i32, i32
  }
  func.func @transform_6(%arg0: i32, %arg1: i32, %arg2: i32) -> (i32, i32) {
    %c0_i32 = arith.constant 0 : i32
    return %arg0, %arg1 : i32, i32
  }
}

module attributes {stable_mosaic.version = 11 : i64} {
  func.func @_mm_kernel(%arg0: i32, %arg1: i32, %arg2: i32, %arg3: memref<128x128xbf16, #tpu.memory_space<vmem>>, %arg4: memref<128x128xbf16, #tpu.memory_space<vmem>>, %arg5: memref<128x128xbf16, #tpu.memory_space<vmem>>, %arg6: memref<8x128xf32, #tpu.memory_space<vmem>>, %arg7: memref<8x128xf32, #tpu.memory_space<vmem>>, %arg8: memref<128x128xf32, #tpu.memory_space<vmem>>) attributes {dimension_semantics = [#tpu.dimension_semantics<parallel>, #tpu.dimension_semantics<parallel>, #tpu.dimension_semantics<arbitrary>], iteration_bounds = array<i64: 1, 1, 1>, scalar_prefetch = 0 : i64, scratch_operands = 1 : i64, tpu.core_type = #tpu.core_type<tc>, window_params = [{transform_indices = @transform_0, window_bounds = array<i64: 128, 128>}, {transform_indices = @transform_1, window_bounds = array<i64: 128, 128>}, {transform_indices = @transform_2, window_bounds = array<i64: 128, 128>}, {transform_indices = @transform_3, window_bounds = array<i64: 8, 128>}, {transform_indices = @transform_4, window_bounds = array<i64: 8, 128>}]} {
    %c0_i32 = arith.constant 0 : i32
    %0 = arith.cmpi eq, %arg2, %c0_i32 : i32
    %1 = arith.extui %0 : i1 to i32
    %c0_i32_0 = arith.constant 0 : i32
    %2 = arith.cmpi ne, %1, %c0_i32_0 : i32
    scf.if %2 {
      %cst_10 = arith.constant 0.000000e+00 : f32
      %12 = vector.broadcast %cst_10 : f32 to vector<128x128xf32>
      %c0_11 = arith.constant 0 : index
      %c0_12 = arith.constant 0 : index
      %13 = vector.load %arg8[%c0_11, %c0_12] : memref<128x128xf32, #tpu.memory_space<vmem>>, vector<128x128xf32>
      tpu.vector_store %arg8[%c0_11, %c0_12], %12 {strides = array<i32>} : memref<128x128xf32, #tpu.memory_space<vmem>>, vector<128x128xf32>,
    } else {
    }
    %c0 = arith.constant 0 : index
    %c0_1 = arith.constant 0 : index
    %3 = vector.load %arg8[%c0, %c0_1] : memref<128x128xf32, #tpu.memory_space<vmem>>, vector<128x128xf32>
    %c0_2 = arith.constant 0 : index
    %c0_3 = arith.constant 0 : index
    %4 = vector.load %arg3[%c0_2, %c0_3] : memref<128x128xbf16, #tpu.memory_space<vmem>>, vector<128x128xbf16>
    %c0_4 = arith.constant 0 : index
    %c0_5 = arith.constant 0 : index
    %5 = vector.load %arg4[%c0_4, %c0_5] : memref<128x128xbf16, #tpu.memory_space<vmem>>, vector<128x128xbf16>
    %cst = arith.constant dense<0.000000e+00> : vector<128x128xf32>
    %6 = tpu.matmul %4, %5, %cst {dimension_numbers = #tpu.dot_dimension_numbers<[1], [0], [0], [1], [0, 0, 1, 1], [], []>} : vector<128x128xbf16>, vector<128x128xbf16>, vector<128x128xf32> -> vector<128x128xf32>
    %7 = arith.addf %3, %6 : vector<128x128xf32>
    %c0_6 = arith.constant 0 : index
    %c0_7 = arith.constant 0 : index
    %8 = vector.load %arg8[%c0_6, %c0_7] : memref<128x128xf32, #tpu.memory_space<vmem>>, vector<128x128xf32>
    tpu.vector_store %arg8[%c0_6, %c0_7], %7 {strides = array<i32>} : memref<128x128xf32, #tpu.memory_space<vmem>>, vector<128x128xf32>,
    %c0_i32_8 = arith.constant 0 : i32
    %9 = arith.cmpi eq, %arg2, %c0_i32_8 : i32
    %10 = arith.extui %9 : i1 to i32
    %c0_i32_9 = arith.constant 0 : i32
    %11 = arith.cmpi ne, %10, %c0_i32_9 : i32
    scf.if %11 {
      %c0_10 = arith.constant 0 : index
      %c0_11 = arith.constant 0 : index
      %12 = vector.load %arg8[%c0_10, %c0_11] : memref<128x128xf32, #tpu.memory_space<vmem>>, vector<128x128xf32>
      %13 = arith.truncf %12 : vector<128x128xf32> to vector<128x128xbf16>
      %c0_12 = arith.constant 0 : index
      %c0_13 = arith.constant 0 : index
      %14 = vector.load %arg5[%c0_12, %c0_13] : memref<128x128xbf16, #tpu.memory_space<vmem>>, vector<128x128xbf16>
      tpu.vector_store %arg5[%c0_12, %c0_13], %13 {strides = array<i32>} : memref<128x128xbf16, #tpu.memory_space<vmem>>, vector<128x128xbf16>,
      %cst_14 = arith.constant dense<0.000000e+00> : vector<128xf32>
      %15 = vector.multi_reduction <add>, %12, %cst_14 [0] : vector<128x128xf32> to vector<128xf32>
      %16 = vector.shape_cast %15 : vector<128xf32> to vector<1x128xf32>
      %17 = arith.mulf %12, %12 : vector<128x128xf32>
      %cst_15 = arith.constant dense<0.000000e+00> : vector<128xf32>
      %18 = vector.multi_reduction <add>, %17, %cst_15 [0] : vector<128x128xf32> to vector<128xf32>
      %19 = vector.shape_cast %18 : vector<128xf32> to vector<1x128xf32>
      %20 = vector.shape_cast %16 : vector<1x128xf32> to vector<1x128xf32>
      %21 = vector.broadcast %20 : vector<1x128xf32> to vector<8x128xf32>
      %c0_16 = arith.constant 0 : index
      %c0_17 = arith.constant 0 : index
      %22 = vector.load %arg6[%c0_16, %c0_17] : memref<8x128xf32, #tpu.memory_space<vmem>>, vector<8x128xf32>
      tpu.vector_store %arg6[%c0_16, %c0_17], %21 {strides = array<i32>} : memref<8x128xf32, #tpu.memory_space<vmem>>, vector<8x128xf32>,
      %23 = vector.shape_cast %19 : vector<1x128xf32> to vector<1x128xf32>
      %24 = vector.broadcast %23 : vector<1x128xf32> to vector<8x128xf32>
      %c0_18 = arith.constant 0 : index
      %c0_19 = arith.constant 0 : index
      %25 = vector.load %arg7[%c0_18, %c0_19] : memref<8x128xf32, #tpu.memory_space<vmem>>, vector<8x128xf32>
      tpu.vector_store %arg7[%c0_18, %c0_19], %24 {strides = array<i32>} : memref<8x128xf32, #tpu.memory_space<vmem>>, vector<8x128xf32>,
    } else {
    }
    return
  }
  func.func @transform_0(%arg0: i32, %arg1: i32, %arg2: i32) -> (i32, i32) {
    %c0_i32 = arith.constant 0 : i32
    return %arg0, %arg2 : i32, i32
  }
  func.func @transform_1(%arg0: i32, %arg1: i32, %arg2: i32) -> (i32, i32) {
    %c0_i32 = arith.constant 0 : i32
    return %arg2, %arg1 : i32, i32
  }
  func.func @transform_2(%arg0: i32, %arg1: i32, %arg2: i32) -> (i32, i32) {
    %c0_i32 = arith.constant 0 : i32
    return %arg0, %arg1 : i32, i32
  }
  func.func @transform_3(%arg0: i32, %arg1: i32, %arg2: i32) -> (i32, i32) {
    %c0_i32 = arith.constant 0 : i32
    return %arg0, %arg1 : i32, i32
  }
  func.func @transform_4(%arg0: i32, %arg1: i32, %arg2: i32) -> (i32, i32) {
    %c0_i32 = arith.constant 0 : i32
    return %arg0, %arg1 : i32, i32
  }
}

module attributes {stable_mosaic.version = 11 : i64} {
  func.func @_bn_add_relu_kernel(%arg0: i32, %arg1: i32, %arg2: memref<128x128xbf16, #tpu.memory_space<vmem>>, %arg3: memref<1x128xf32, #tpu.memory_space<vmem>>, %arg4: memref<1x128xf32, #tpu.memory_space<vmem>>, %arg5: memref<128x128xbf16, #tpu.memory_space<vmem>>, %arg6: memref<1x128xf32, #tpu.memory_space<vmem>>, %arg7: memref<1x128xf32, #tpu.memory_space<vmem>>, %arg8: memref<128x128xf32, #tpu.memory_space<vmem>>) attributes {dimension_semantics = [#tpu.dimension_semantics<parallel>, #tpu.dimension_semantics<parallel>], iteration_bounds = array<i64: 1, 1>, scalar_prefetch = 0 : i64, scratch_operands = 0 : i64, tpu.core_type = #tpu.core_type<tc>, window_params = [{transform_indices = @transform_0, window_bounds = array<i64: 128, 128>}, {transform_indices = @transform_1, window_bounds = array<i64: 1, 128>}, {transform_indices = @transform_2, window_bounds = array<i64: 1, 128>}, {transform_indices = @transform_3, window_bounds = array<i64: 128, 128>}, {transform_indices = @transform_4, window_bounds = array<i64: 1, 128>}, {transform_indices = @transform_5, window_bounds = array<i64: 1, 128>}, {transform_indices = @transform_6, window_bounds = array<i64: 128, 128>}]} {
    %c0 = arith.constant 0 : index
    %c0_0 = arith.constant 0 : index
    %0 = vector.load %arg2[%c0, %c0_0] : memref<128x128xbf16, #tpu.memory_space<vmem>>, vector<128x128xbf16>
    %1 = arith.extf %0 : vector<128x128xbf16> to vector<128x128xf32>
    %c0_1 = arith.constant 0 : index
    %c0_2 = arith.constant 0 : index
    %2 = vector.load %arg3[%c0_1, %c0_2] : memref<1x128xf32, #tpu.memory_space<vmem>>, vector<1x128xf32>
    %3 = vector.broadcast %2 : vector<1x128xf32> to vector<128x128xf32>
    %4 = arith.mulf %1, %3 : vector<128x128xf32>
    %c0_3 = arith.constant 0 : index
    %c0_4 = arith.constant 0 : index
    %5 = vector.load %arg4[%c0_3, %c0_4] : memref<1x128xf32, #tpu.memory_space<vmem>>, vector<1x128xf32>
    %6 = vector.broadcast %5 : vector<1x128xf32> to vector<128x128xf32>
    %7 = arith.addf %4, %6 : vector<128x128xf32>
    %c0_5 = arith.constant 0 : index
    %c0_6 = arith.constant 0 : index
    %8 = vector.load %arg5[%c0_5, %c0_6] : memref<128x128xbf16, #tpu.memory_space<vmem>>, vector<128x128xbf16>
    %9 = arith.extf %8 : vector<128x128xbf16> to vector<128x128xf32>
    %c0_7 = arith.constant 0 : index
    %c0_8 = arith.constant 0 : index
    %10 = vector.load %arg6[%c0_7, %c0_8] : memref<1x128xf32, #tpu.memory_space<vmem>>, vector<1x128xf32>
    %11 = vector.broadcast %10 : vector<1x128xf32> to vector<128x128xf32>
    %12 = arith.mulf %9, %11 : vector<128x128xf32>
    %c0_9 = arith.constant 0 : index
    %c0_10 = arith.constant 0 : index
    %13 = vector.load %arg7[%c0_9, %c0_10] : memref<1x128xf32, #tpu.memory_space<vmem>>, vector<1x128xf32>
    %14 = vector.broadcast %13 : vector<1x128xf32> to vector<128x128xf32>
    %15 = arith.addf %12, %14 : vector<128x128xf32>
    %16 = arith.addf %7, %15 : vector<128x128xf32>
    %cst = arith.constant 0.000000e+00 : f32
    %17 = vector.broadcast %cst : f32 to vector<128x128xf32>
    %18 = arith.maximumf %16, %17 : vector<128x128xf32>
    %c0_11 = arith.constant 0 : index
    %c0_12 = arith.constant 0 : index
    %19 = vector.load %arg8[%c0_11, %c0_12] : memref<128x128xf32, #tpu.memory_space<vmem>>, vector<128x128xf32>
    tpu.vector_store %arg8[%c0_11, %c0_12], %18 {strides = array<i32>} : memref<128x128xf32, #tpu.memory_space<vmem>>, vector<128x128xf32>,
    return
  }
  func.func @transform_0(%arg0: i32, %arg1: i32) -> (i32, i32) {
    %c0_i32 = arith.constant 0 : i32
    return %arg0, %arg1 : i32, i32
  }
  func.func @transform_1(%arg0: i32, %arg1: i32) -> (i32, i32) {
    %c0_i32 = arith.constant 0 : i32
    %c0_i32_0 = arith.constant 0 : i32
    return %c0_i32, %arg1 : i32, i32
  }
  func.func @transform_2(%arg0: i32, %arg1: i32) -> (i32, i32) {
    %c0_i32 = arith.constant 0 : i32
    %c0_i32_0 = arith.constant 0 : i32
    return %c0_i32, %arg1 : i32, i32
  }
  func.func @transform_3(%arg0: i32, %arg1: i32) -> (i32, i32) {
    %c0_i32 = arith.constant 0 : i32
    return %arg0, %arg1 : i32, i32
  }
  func.func @transform_4(%arg0: i32, %arg1: i32) -> (i32, i32) {
    %c0_i32 = arith.constant 0 : i32
    %c0_i32_0 = arith.constant 0 : i32
    return %c0_i32, %arg1 : i32, i32
  }
  func.func @transform_5(%arg0: i32, %arg1: i32) -> (i32, i32) {
    %c0_i32 = arith.constant 0 : i32
    %c0_i32_0 = arith.constant 0 : i32
    return %c0_i32, %arg1 : i32, i32
  }
  func.func @transform_6(%arg0: i32, %arg1: i32) -> (i32, i32) {
    %c0_i32 = arith.constant 0 : i32
    return %arg0, %arg1 : i32, i32
  }
}

</mosaic_0001>

<bundles_post_ra>
// kernel: bottleneck_forward.5
= control target key start
LH: loop header
LB: loop body
LE: loop exit
PB: predicated region body
PF: predicated region fallthrough
CT: control target
= control target key end

     0   :  { %s1436_s15 = smov 0   ;;  %s1438_s16 = smov 0   ;;  %s1667_s0 = inlined_call_operand.vmem [shape: bf16[512,128], index: 0, kind: input, shape index: {}]   ;;  %s1668_s1 = inlined_call_operand.vmem [shape: bf16[128,128], index: 1, kind: input, shape index: {}]   ;;  %s1669_s2 = inlined_call_operand.vmem [shape: bf16[512,128], index: 2, kind: output, shape index: {0}]   ;;  %s1670_s3 = inlined_call_operand.vmem [shape: f32[16,128], index: 3, kind: output, shape index: {1}]   ;;  %s1671_s4 = inlined_call_operand.vmem [shape: f32[16,128], index: 4, kind: output, shape index: {2}]  }
   0x1   :  { %s1440_s17 = smov 0  }
   0x2 LB: > { %s34_s18 = sadd.s32 1, %s1405_s16  ;;  %p1115_p0 = scmp.ge.s32.totalorder %s1409_s17, 1  ;;  %s1409_s17 = sphi %s1440_s17, %s15_s17   ;;  %s1405_s16 = sphi %s1438_s16, %s1673_s16   ;;  %s1401_s15 = sphi %s1436_s15, %s1672_s15  }
   0x3   : > { %p36_p1 = scmp.ge.s32.totalorder %s34_s18, 2  ;;  %p214_p2 = scmp.lt.s32.totalorder %s1409_s17, 3 }
   0x5   : > { %s1675_s18 = smov (%p36_p1, %s34_s18), 0  ;;  %p215_p3 = pnand %p1115_p0, %p214_p2 }
   0x6   : > { %s1116_s27 = sshll.u32 (!%p215_p3), %s1401_s15, 5  ;;  %p295_p5 = scmp.lt.s32.totalorder (!%p215_p3), %s1401_s15, 1 }
   0x7   : > { %218 = sbr.rel (%p215_p3) target bundleno = 291 (0x123), region = 28  ;;  %p269_p4 = scmp.lt.s32.totalorder (!%p215_p3), %s1116_s27, 63 }
   0xc   : > { %v1243_v0 = vld [vmem:[%s1668_s1 + $0x38] sm:$0xff]  ;;  %v1242_v1 = vld [vmem:[%s1668_s1 + $0x30] sm:$0xff]  ;;  %v1241_v2 = vld [vmem:[%s1668_s1 + $0x28] sm:$0xff]  ;;  %s1677_s27 = smov (!%p269_p4, %s1116_s27), 63  ;;  %s1679_s15 = smov (!%p295_p5, %s1401_s15), 1 }
   0xd   : > { %569 = vmatpush.bf16.msra.mxu0 %v1243_v0  ;;  %1339 = vmatpush.bf16.msra.mxu1 %v1243_v0  ;;  %v1240_v3 = vld [vmem:[%s1668_s1 + $0x20] sm:$0xff]  ;;  %v1239_v4 = vld [vmem:[%s1668_s1 + $0x18] sm:$0xff]  ;;  %v1238_v5 = vld [vmem:[%s1668_s1 + $0x10] sm:$0xff]  ;;  %s1117_s8 = sshll.u32 %s1677_s27, 2  ;;  %s1120_s21 = sshll.u32 %s1679_s15, 3 }
   0xe   : > { %1340 = vmatpush.bf16.msra.mxu2 %v1243_v0  ;;  %1341 = vmatpush.bf16.msra.mxu3 %v1243_v0  ;;  %v1237_v6 = vld [vmem:[%s1668_s1 + $0x8] sm:$0xff]  ;;  %v1236_v7 = vld [vmem:[%s1668_s1] sm:$0xff]  ;;  %s1489_s13 = scalar_lea.vmem %s1667_s0, %s1117_s8  ;;  %s1516_s20 = scalar_lea.vmem %s1669_s2, %s1117_s8 }
   0xf   : > { %v1220_v8 = vld [vmem:[%s1489_s13] sm:$0xff]  ;;  %v1221_v12 = vld [vmem:[%s1489_s13 + $0x8] sm:$0xff]  ;;  %v1222_v16 = vld [vmem:[%s1489_s13 + $0x10] sm:$0xff]  ;;  %s301_s24 = scalar_lea.vmem %s1670_s3, %s1120_s21  ;;  %s308_s27 = scalar_lea.vmem %s1671_s4, %s1120_s21 }
  0x10   : > { %v1224_v9 = vld [vmem:[%s1489_s13 + $0x20] sm:$0xff]  ;;  %v1225_v13 = vld [vmem:[%s1489_s13 + $0x28] sm:$0xff]  ;;  %v1226_v17 = vld [vmem:[%s1489_s13 + $0x30] sm:$0xff] }
  0x11   : > { %570 = vmatpush.bf16.msra.mxu0 %v1242_v1  ;;  %1342 = vmatpush.bf16.msra.mxu1 %v1242_v1  ;;  %v1228_v10 = vld [vmem:[%s1489_s13 + $0x40] sm:$0xff]  ;;  %v1229_v14 = vld [vmem:[%s1489_s13 + $0x48] sm:$0xff]  ;;  %v1230_v18 = vld [vmem:[%s1489_s13 + $0x50] sm:$0xff] }
  0x12   : > { %1343 = vmatpush.bf16.msra.mxu2 %v1242_v1  ;;  %1344 = vmatpush.bf16.msra.mxu3 %v1242_v1  ;;  %v1232_v11 = vld [vmem:[%s1489_s13 + $0x60] sm:$0xff]  ;;  %v1233_v15 = vld [vmem:[%s1489_s13 + $0x68] sm:$0xff]  ;;  %v1234_v19 = vld [vmem:[%s1489_s13 + $0x70] sm:$0xff] }
  0x13   : > { %v1223_v20 = vld [vmem:[%s1489_s13 + $0x18] sm:$0xff] }
  0x14   : > { %v1227_v21 = vld [vmem:[%s1489_s13 + $0x38] sm:$0xff] }
  0x15   : > { %571 = vmatpush.bf16.msra.mxu0 %v1241_v2  ;;  %1345 = vmatpush.bf16.msra.mxu1 %v1241_v2  ;;  %v1231_v22 = vld [vmem:[%s1489_s13 + $0x58] sm:$0xff] }
  0x16   : > { %1346 = vmatpush.bf16.msra.mxu2 %v1241_v2  ;;  %1347 = vmatpush.bf16.msra.mxu3 %v1241_v2  ;;  %v1235_v23 = vld [vmem:[%s1489_s13 + $0x78] sm:$0xff] }
  0x19   : > { %572 = vmatpush.bf16.msra.mxu0 %v1240_v3  ;;  %1348 = vmatpush.bf16.msra.mxu1 %v1240_v3 }
  0x1a   : > { %1349 = vmatpush.bf16.msra.mxu2 %v1240_v3  ;;  %1350 = vmatpush.bf16.msra.mxu3 %v1240_v3 }
  0x1d   : > { %573 = vmatpush.bf16.msra.mxu0 %v1239_v4  ;;  %1351 = vmatpush.bf16.msra.mxu1 %v1239_v4 }
  0x1e   : > { %1352 = vmatpush.bf16.msra.mxu2 %v1239_v4  ;;  %1353 = vmatpush.bf16.msra.mxu3 %v1239_v4 }
  0x21   : > { %574 = vmatpush.bf16.msra.mxu0 %v1238_v5  ;;  %1354 = vmatpush.bf16.msra.mxu1 %v1238_v5 }
  0x22   : > { %1355 = vmatpush.bf16.msra.mxu2 %v1238_v5  ;;  %1356 = vmatpush.bf16.msra.mxu3 %v1238_v5 }
  0x25   : > { %575 = vmatpush.bf16.msra.mxu0 %v1237_v6  ;;  %1357 = vmatpush.bf16.msra.mxu1 %v1237_v6 }
  0x26   : > { %1358 = vmatpush.bf16.msra.mxu2 %v1237_v6  ;;  %1359 = vmatpush.bf16.msra.mxu3 %v1237_v6 }
  0x29   : > { %576 = vmatpush.bf16.msra.mxu0 %v1236_v7  ;;  %1360 = vmatpush.bf16.msra.mxu1 %v1236_v7 }
  0x2a   : > { %1361 = vmatpush.bf16.msra.mxu2 %v1236_v7  ;;  %1362 = vmatpush.bf16.msra.mxu3 %v1236_v7 }
  0x2c   : > { %577 = vmatmul.bf16.vlgmr.msra.gmra.mxu0 %v1220_v8  ;;  %597 = vmatmul.bf16.vlgmr.msra.gmra.mxu1 %v1224_v9 }
  0x2d   : > { %617 = vmatmul.bf16.vlgmr.msra.gmra.mxu2 %v1228_v10  ;;  %637 = vmatmul.bf16.vlgmr.msra.gmra.mxu3 %v1232_v11 }
  0x3c   : > { %582 = vmatmul.bf16.gmra.mxu0 %v1221_v12  ;;  %602 = vmatmul.bf16.gmra.mxu1 %v1225_v13 }
  0x3d   : > { %622 = vmatmul.bf16.gmra.mxu2 %v1229_v14  ;;  %642 = vmatmul.bf16.gmra.mxu3 %v1233_v15 }
  0x4c   : > { %587 = vmatmul.bf16.gmra.mxu0 %v1222_v16  ;;  %607 = vmatmul.bf16.gmra.mxu1 %v1226_v17 }
  0x4d   : > { %627 = vmatmul.bf16.gmra.mxu2 %v1230_v18  ;;  %647 = vmatmul.bf16.gmra.mxu3 %v1234_v19 }
  0x5c   : > { %592 = vmatmul.bf16.gmra.mxu0 %v1223_v20  ;;  %612 = vmatmul.bf16.gmra.mxu1 %v1227_v21 }
  0x5d   : > { %632 = vmatmul.bf16.gmra.mxu2 %v1231_v22  ;;  %652 = vmatmul.bf16.gmra.mxu3 %v1235_v23 }
  0xa9   : > { %v578_v24 = vpop.f32.mrf.mxu0  ;;  %v1507_v25 = vpop.f32.mrf.mxu1 }
  0xaa   : > { %v858_v57 = vmul.f32 %v578_v24, %v578_v24 }
  0xb0   : > { %v1509_v26 = vpop.f32.mrf.mxu2  ;;  %v1522_v31 = vpop.f32.mrf.mxu3 }
  0xb1   : > { %v580_v27 = vpop.f32.mrf.mxu0  ;;  %v1518_v28 = vpop.f32.mrf.mxu1 }
  0xb2   : > { %v1247_v29 = vpack.c.bf16 %v580_v27, %v578_v24  ;;  %v1267_v30 = vpack.c.bf16 %v1518_v28, %v1507_v25  ;;  %v859_v56 = vmul.f32 %v580_v27, %v580_v27  ;;  %v821_v59 = vadd.f32 %v580_v27, %v578_v24 }
  0xb3   : > { %v866_v27 = vmul.f32 %v1507_v25, %v1507_v25 }
  0xb4   : > { %1248 = vst [vmem:[%s1516_s20] sm:$0xff] %v1247_v29   ;;  %v890_v60 = vadd.f32 %v859_v56, %v858_v57 }
  0xb5   : > { %1327 = vst [vmem:[%s1516_s20 + $0x20] sm:$0xff] %v1267_v30  }
  0xb8   : > { %v1526_v32 = vpop.f32.mrf.mxu2  ;;  %v1532_v36 = vpop.f32.mrf.mxu3 }
  0xb9   : > { %v583_v33 = vpop.f32.mrf.mxu0  ;;  %v1528_v34 = vpop.f32.mrf.mxu1  ;;  %v1287_v35 = vpack.c.bf16 %v1526_v32, %v1509_v26  ;;  %v1307_v37 = vpack.c.bf16 %v1532_v36, %v1522_v31 }
  0xba   : > { %v860_v58 = vmul.f32 %v583_v33, %v583_v33  ;;  %v822_v62 = vadd.f32 %v821_v59, %v583_v33 }
  0xbb   : > { %1331 = vst [vmem:[%s1516_s20 + $0x40] sm:$0xff] %v1287_v35  }
  0xbc   : > { %1335 = vst [vmem:[%s1516_s20 + $0x60] sm:$0xff] %v1307_v37   ;;  %v891_v0 = vadd.f32 %v890_v60, %v860_v58 }
  0xc0   : > { %v1538_v38 = vpop.f32.mrf.mxu2  ;;  %v1544_v43 = vpop.f32.mrf.mxu3 }
  0xc1   : > { %v585_v39 = vpop.f32.mrf.mxu0  ;;  %v1540_v40 = vpop.f32.mrf.mxu1 }
  0xc2   : > { %v1252_v41 = vpack.c.bf16 %v585_v39, %v583_v33  ;;  %v1272_v42 = vpack.c.bf16 %v1540_v40, %v1528_v34  ;;  %v861_v61 = vmul.f32 %v585_v39, %v585_v39  ;;  %v823_v5 = vadd.f32 %v822_v62, %v585_v39 }
  0xc3   : > { %v867_v33 = vmul.f32 %v1518_v28, %v1518_v28  ;;  %v868_v39 = vmul.f32 %v1528_v34, %v1528_v34 }
  0xc4   : > { %1324 = vst [vmem:[%s1516_s20 + $0x8] sm:$0xff] %v1252_v41   ;;  %v892_v7 = vadd.f32 %v891_v0, %v861_v61 }
  0xc5   : > { %1328 = vst [vmem:[%s1516_s20 + $0x28] sm:$0xff] %v1272_v42  }
  0xc8   : > { %v1548_v44 = vpop.f32.mrf.mxu2  ;;  %v1554_v48 = vpop.f32.mrf.mxu3 }
  0xc9   : > { %v588_v45 = vpop.f32.mrf.mxu0  ;;  %v1550_v46 = vpop.f32.mrf.mxu1  ;;  %v1292_v47 = vpack.c.bf16 %v1548_v44, %v1538_v38  ;;  %v1312_v49 = vpack.c.bf16 %v1554_v48, %v1544_v43 }
  0xca   : > { %v862_v1 = vmul.f32 %v588_v45, %v588_v45  ;;  %v824_v10 = vadd.f32 %v823_v5, %v588_v45  ;;  %v875_v5 = vmul.f32 %v1526_v32, %v1526_v32 }
  0xcb   : > { %1332 = vst [vmem:[%s1516_s20 + $0x48] sm:$0xff] %v1292_v47  }
  0xcc   : > { %1336 = vst [vmem:[%s1516_s20 + $0x68] sm:$0xff] %v1312_v49   ;;  %v893_v11 = vadd.f32 %v892_v7, %v862_v1 }
  0xd0   : > { %v1560_v50 = vpop.f32.mrf.mxu2  ;;  %v1566_v55 = vpop.f32.mrf.mxu3 }
  0xd1   : > { %v590_v51 = vpop.f32.mrf.mxu0  ;;  %v1562_v52 = vpop.f32.mrf.mxu1 }
  0xd2   : > { %v1257_v53 = vpack.c.bf16 %v590_v51, %v588_v45  ;;  %v1277_v54 = vpack.c.bf16 %v1562_v52, %v1550_v46  ;;  %v863_v8 = vmul.f32 %v590_v51, %v590_v51  ;;  %v825_v13 = vadd.f32 %v824_v10, %v590_v51 }
  0xd3   : > { %v871_v57 = vmul.f32 %v1562_v52, %v1562_v52  ;;  %v877_v10 = vmul.f32 %v1548_v44, %v1548_v44 }
  0xd4   : > { %1325 = vst [vmem:[%s1516_s20 + $0x10] sm:$0xff] %v1257_v53   ;;  %v894_v14 = vadd.f32 %v893_v11, %v863_v8 }
  0xd5   : > { %1329 = vst [vmem:[%s1516_s20 + $0x30] sm:$0xff] %v1277_v54   ;;  %v870_v54 = vmul.f32 %v1550_v46, %v1550_v46 }
  0xd8   : > { %v1570_v63 = vpop.f32.mrf.mxu2  ;;  %v1574_v6 = vpop.f32.mrf.mxu3 }
  0xd9   : > { %v593_v2 = vpop.f32.mrf.mxu0  ;;  %v613_v3 = vpop.f32.mrf.mxu1  ;;  %v1297_v4 = vpack.c.bf16 %v1570_v63, %v1560_v50  ;;  %v1317_v9 = vpack.c.bf16 %v1574_v6, %v1566_v55 }
  0xda   : > { %v864_v12 = vmul.f32 %v593_v2, %v593_v2  ;;  %v826_v15 = vadd.f32 %v825_v13, %v593_v2  ;;  %v872_v60 = vmul.f32 %v613_v3, %v613_v3 }
  0xdb   : > { %1333 = vst [vmem:[%s1516_s20 + $0x50] sm:$0xff] %v1297_v4  }
  0xdc   : > { %1337 = vst [vmem:[%s1516_s20 + $0x70] sm:$0xff] %v1317_v9   ;;  %v895_v17 = vadd.f32 %v894_v14, %v864_v12 }
  0xe0   : > { %v633_v16 = vpop.f32.mrf.mxu2  ;;  %v1580_v24 = vpop.f32.mrf.mxu3 }
  0xe1   : > { %v595_v18 = vpop.f32.mrf.mxu0  ;;  %v615_v19 = vpop.f32.mrf.mxu1 }
  0xe2   : > { %v1262_v20 = vpack.c.bf16 %v595_v18, %v593_v2  ;;  %v827_v21 = vadd.f32 %v826_v15, %v595_v18  ;;  %v865_v22 = vmul.f32 %v595_v18, %v595_v18  ;;  %v1282_v23 = vpack.c.bf16 %v615_v19, %v613_v3 }
  0xe3   : > { %v873_v1 = vmul.f32 %v615_v19, %v615_v19  ;;  %v874_v2 = vmul.f32 %v1509_v26, %v1509_v26  ;;  %v879_v15 = vmul.f32 %v1570_v63, %v1570_v63 }
  0xe4   : > { %1326 = vst [vmem:[%s1516_s20 + $0x18] sm:$0xff] %v1262_v20   ;;  %v828_v29 = vadd.f32 %v827_v21, %v1507_v25  ;;  %v896_v30 = vadd.f32 %v895_v17, %v865_v22  ;;  %v869_v25 = vmul.f32 %v1540_v40, %v1540_v40 }
  0xe5   : > { %1330 = vst [vmem:[%s1516_s20 + $0x38] sm:$0xff] %v1282_v23  }
  0xe6   : > { %v829_v35 = vadd.f32 %v828_v29, %v1518_v28  ;;  %v897_v37 = vadd.f32 %v896_v30, %v866_v27 }
  0xe8   : > { %v830_v41 = vadd.f32 %v829_v35, %v1528_v34  ;;  %v898_v42 = vadd.f32 %v897_v37, %v867_v33  ;;  %v635_v45 = vpop.f32.mrf.mxu2  ;;  %v1596_v53 = vpop.f32.mrf.mxu3  ;;  %v885_v35 = vmul.f32 %v1554_v48, %v1554_v48 }
  0xe9   : > { %v1302_v47 = vpack.c.bf16 %v635_v45, %v633_v16  ;;  %v1322_v28 = vpack.c.bf16 %v1596_v53, %v1580_v24  ;;  %v881_v22 = vmul.f32 %v635_v45, %v635_v45 }
  0xea   : > { %v899_v49 = vadd.f32 %v898_v42, %v868_v39  ;;  %v831_v51 = vadd.f32 %v830_v41, %v1540_v40  ;;  %v886_v39 = vmul.f32 %v1566_v55, %v1566_v55 }
  0xeb   : > { %1334 = vst [vmem:[%s1516_s20 + $0x58] sm:$0xff] %v1302_v47  }
  0xec   : > { %v832_v34 = vadd.f32 %v831_v51, %v1550_v46  ;;  %v900_v56 = vadd.f32 %v899_v49, %v869_v25  ;;  %1338 = vst [vmem:[%s1516_s20 + $0x78] sm:$0xff] %v1322_v28   ;;  %v888_v49 = vmul.f32 %v1580_v24, %v1580_v24 }
  0xee   : > { %v833_v58 = vadd.f32 %v832_v34, %v1562_v52  ;;  %v901_v59 = vadd.f32 %v900_v56, %v870_v54  ;;  %v876_v52 = vmul.f32 %v1538_v38, %v1538_v38 }
  0xf0   : > { %v834_v40 = vadd.f32 %v833_v58, %v613_v3  ;;  %v902_v61 = vadd.f32 %v901_v59, %v871_v57 }
  0xf2   : > { %v903_v62 = vadd.f32 %v902_v61, %v872_v60  ;;  %v835_v0 = vadd.f32 %v834_v40, %v615_v19  ;;  %v880_v19 = vmul.f32 %v633_v16, %v633_v16 }
  0xf4   : > { %v836_v4 = vadd.f32 %v835_v0, %v1509_v26  ;;  %v904_v46 = vadd.f32 %v903_v62, %v873_v1  ;;  %v878_v26 = vmul.f32 %v1560_v50, %v1560_v50 }
  0xf6   : > { %v837_v7 = vadd.f32 %v836_v4, %v1526_v32  ;;  %v905_v8 = vadd.f32 %v904_v46, %v874_v2 }
  0xf8   : > { %v838_v3 = vadd.f32 %v837_v7, %v1538_v38  ;;  %v906_v9 = vadd.f32 %v905_v8, %v875_v5 }
  0xfa   : > { %v907_v11 = vadd.f32 %v906_v9, %v876_v52  ;;  %v839_v12 = vadd.f32 %v838_v3, %v1548_v44  ;;  %v882_v44 = vmul.f32 %v1522_v31, %v1522_v31 }
  0xfc   : > { %v840_v13 = vadd.f32 %v839_v12, %v1560_v50  ;;  %v908_v14 = vadd.f32 %v907_v11, %v877_v10  ;;  %v883_v50 = vmul.f32 %v1532_v36, %v1532_v36 }
  0xfe   : > { %v841_v32 = vadd.f32 %v840_v13, %v1570_v63  ;;  %v909_v17 = vadd.f32 %v908_v14, %v878_v26  ;;  %v884_v63 = vmul.f32 %v1544_v43, %v1544_v43 }
 0x100   : > { %v910_v38 = vadd.f32 %v909_v17, %v879_v15  ;;  %v842_v18 = vadd.f32 %v841_v32, %v633_v16 }
 0x102   : > { %v911_v20 = vadd.f32 %v910_v38, %v880_v19  ;;  %v843_v21 = vadd.f32 %v842_v18, %v635_v45  ;;  %v887_v45 = vmul.f32 %v1574_v6, %v1574_v6 }
 0x104   : > { %v844_v23 = vadd.f32 %v843_v21, %v1522_v31  ;;  %v912_v27 = vadd.f32 %v911_v20, %v881_v22 }
 0x106   : > { %v845_v29 = vadd.f32 %v844_v23, %v1532_v36  ;;  %v913_v30 = vadd.f32 %v912_v27, %v882_v44 }
 0x108   : > { %v846_v16 = vadd.f32 %v845_v29, %v1544_v43  ;;  %v914_v33 = vadd.f32 %v913_v30, %v883_v50 }
 0x10a   : > { %v915_v37 = vadd.f32 %v914_v33, %v884_v63  ;;  %v847_v31 = vadd.f32 %v846_v16, %v1554_v48 }
 0x10c   : > { %v848_v36 = vadd.f32 %v847_v31, %v1566_v55  ;;  %v916_v41 = vadd.f32 %v915_v37, %v885_v35  ;;  %v889_v55 = vmul.f32 %v1596_v53, %v1596_v53 }
 0x10e   : > { %v849_v42 = vadd.f32 %v848_v36, %v1574_v6  ;;  %v917_v43 = vadd.f32 %v916_v41, %v886_v39 }
 0x110   : > { %v918_v47 = vadd.f32 %v917_v43, %v887_v45  ;;  %v850_v25 = vadd.f32 %v849_v42, %v1580_v24 }
 0x112   : > { %v919_v48 = vadd.f32 %v918_v47, %v888_v49  ;;  %v851_v51 = vadd.f32 %v850_v25, %v1596_v53 }
 0x114   : > { %v852_v28 = vrot.slane %v851_v51, 4  ;;  %v920_v54 = vadd.f32 %v919_v48, %v889_v55 }
 0x116   : > { %v853_v34 = vadd.f32 %v852_v28, %v851_v51  ;;  %v921_v56 = vrot.slane %v920_v54, 4 }
 0x118   : > { %v854_v6 = vrot.slane %v853_v34, 2  ;;  %v922_v57 = vadd.f32 %v921_v56, %v920_v54 }
 0x11a   : > { %v855_v58 = vadd.f32 %v854_v6, %v853_v34  ;;  %v923_v59 = vrot.slane %v922_v57, 2 }
 0x11c   : > { %v856_v40 = vrot.slane %v855_v58, 1  ;;  %v924_v60 = vadd.f32 %v923_v59, %v922_v57 }
 0x11e   : > { %v857_v24 = vadd.f32 %v856_v40, %v855_v58  ;;  %v925_v61 = vrot.slane %v924_v60, 1 }
 0x120   : > { %v926_v53 = vadd.f32 %v925_v61, %v924_v60  ;;  %927 = vst [vmem:[%s301_s24] sm:$0xff] %v857_v24 }
 0x122   : > { %928 = vst [vmem:[%s308_s27] sm:$0xff] %v926_v53 }
 0x123 PF: > { %s15_s17 = sadd.s32 1, %s1409_s17   ;;  %s1672_s15 = smov %s1405_s16 }
 0x124   : > { %p12_p6 = scmp.ge.s32.totalorder %s15_s17, 4   ;;  %s1673_s16 = smov %s1675_s18 }
 0x126   :  { %14 = sbr.rel (!%p12_p6) target bundleno = 2 (0x2), region = 93 }

// kernel: bottleneck_forward.7
= control target key start
LH: loop header
LB: loop body
LE: loop exit
PB: predicated region body
PF: predicated region fallthrough
CT: control target
= control target key end

     0   :  { %s733_s1 = inlined_call_operand.vmem [shape: bf16[128,128], index: 1, kind: input, shape index: {}]   ;;  %s734_s2 = inlined_call_operand.vmem [shape: f32[1,128], index: 2, kind: input, shape index: {}]   ;;  %s735_s3 = inlined_call_operand.vmem [shape: f32[1,128], index: 3, kind: input, shape index: {}]   ;;  %s736_s0 = inlined_call_operand.vmem [shape: bf16[128,128], index: 0, kind: input, shape index: {}]   ;;  %s737_s4 = inlined_call_operand.vmem [shape: bf16[128,128], index: 4, kind: output, shape index: {0}]   ;;  %s738_s5 = inlined_call_operand.vmem [shape: f32[8,128], index: 5, kind: output, shape index: {1}]   ;;  %s739_s6 = inlined_call_operand.vmem [shape: f32[8,128], index: 6, kind: output, shape index: {2}]  }
   0x1   :  { %v459_v0 = vld [vmem:[%s733_s1 + $0x38] sm:$0xff]  ;;  %v458_v1 = vld [vmem:[%s733_s1 + $0x30] sm:$0xff]  ;;  %v457_v2 = vld [vmem:[%s733_s1 + $0x28] sm:$0xff] }
   0x2   :  { %216 = vmatpush.bf16.msra.mxu0 %v459_v0  ;;  %546 = vmatpush.bf16.msra.mxu1 %v459_v0  ;;  %v461_v3 = vld [vmem:[%s736_s0] sm:$0xff]   ;;  %v533_v5 = vld [vmem:[%s736_s0 + $0x10] sm:$0xff]   ;;  %v455_v15 = vld [vmem:[%s733_s1 + $0x18] sm:$0xff] }
   0x3   :  { %547 = vmatpush.bf16.msra.mxu2 %v459_v0  ;;  %548 = vmatpush.bf16.msra.mxu3 %v459_v0  ;;  %v456_v4 = vld [vmem:[%s733_s1 + $0x20] sm:$0xff]  ;;  %v537_v7 = vld [vmem:[%s736_s0 + $0x30] sm:$0xff]   ;;  %v462_v8 = vunpack.c.l.bf16 %v461_v3  ;;  %v463_v9 = vunpack.c.h.bf16 %v461_v3  ;;  %v470_v11 = vunpack.c.l.bf16 %v533_v5  ;;  %v471_v12 = vunpack.c.h.bf16 %v533_v5  ;;  %v453_v34 = vld [vmem:[%s733_s1 + $0x8] sm:$0xff] }
   0x4   :  { %v535_v6 = vld [vmem:[%s736_s0 + $0x20] sm:$0xff]   ;;  %v486_v16 = vunpack.c.l.bf16 %v537_v7  ;;  %v487_v17 = vunpack.c.h.bf16 %v537_v7  ;;  %v454_v25 = vld [vmem:[%s733_s1 + $0x10] sm:$0xff]  ;;  %v532_v43 = vld [vmem:[%s736_s0 + $0x8] sm:$0xff]  }
   0x5   :  { %v634_v10 = vld [vmem:[%s734_s2] ss:$0 sm:$0xff]  ;;  %v478_v13 = vunpack.c.l.bf16 %v535_v6  ;;  %v479_v14 = vunpack.c.h.bf16 %v535_v6  ;;  %v534_v44 = vld [vmem:[%s736_s0 + $0x18] sm:$0xff]   ;;  %v536_v48 = vld [vmem:[%s736_s0 + $0x28] sm:$0xff]   ;;  %v466_v51 = vunpack.c.l.bf16 %v532_v43  ;;  %v467_v52 = vunpack.c.h.bf16 %v532_v43 }
   0x6   :  { %217 = vmatpush.bf16.msra.mxu0 %v458_v1  ;;  %549 = vmatpush.bf16.msra.mxu1 %v458_v1  ;;  %v76_v18 = vmul.f32 %v634_v10, %v462_v8  ;;  %v77_v19 = vmul.f32 %v634_v10, %v463_v9  ;;  %v644_v20 = vld [vmem:[%s735_s3] ss:$0 sm:$0xff]  ;;  %v80_v21 = vmul.f32 %v634_v10, %v470_v11  ;;  %v538_v49 = vld [vmem:[%s736_s0 + $0x38] sm:$0xff]   ;;  %v474_v53 = vunpack.c.l.bf16 %v534_v44 }
   0x7   :  { %550 = vmatpush.bf16.msra.mxu2 %v458_v1  ;;  %551 = vmatpush.bf16.msra.mxu3 %v458_v1  ;;  %v81_v22 = vmul.f32 %v634_v10, %v471_v12  ;;  %v84_v23 = vmul.f32 %v634_v10, %v478_v13  ;;  %v85_v24 = vmul.f32 %v634_v10, %v479_v14  ;;  %v452_v45 = vld [vmem:[%s733_s1] sm:$0xff]  ;;  %v475_v56 = vunpack.c.h.bf16 %v534_v44 }
   0x8   :  { %v88_v26 = vmul.f32 %v634_v10, %v486_v16  ;;  %v89_v27 = vmul.f32 %v634_v10, %v487_v17  ;;  %v96_v28 = vadd.f32 %v644_v20, %v76_v18  ;;  %v97_v29 = vadd.f32 %v644_v20, %v77_v19 }
   0x9   :  { %v100_v30 = vadd.f32 %v644_v20, %v80_v21  ;;  %v101_v31 = vadd.f32 %v644_v20, %v81_v22  ;;  %v104_v32 = vadd.f32 %v644_v20, %v84_v23  ;;  %v105_v33 = vadd.f32 %v644_v20, %v85_v24 }
   0xa   :  { %218 = vmatpush.bf16.msra.mxu0 %v457_v2  ;;  %552 = vmatpush.bf16.msra.mxu1 %v457_v2  ;;  %v108_v35 = vadd.f32 %v644_v20, %v88_v26  ;;  %v109_v36 = vadd.f32 %v644_v20, %v89_v27  ;;  %v112_v37 = vmax.f32 %v96_v28, 0.0  ;;  %v113_v38 = vmax.f32 %v97_v29, 0.0 }
   0xb   :  { %553 = vmatpush.bf16.msra.mxu2 %v457_v2  ;;  %554 = vmatpush.bf16.msra.mxu3 %v457_v2  ;;  %v116_v39 = vmax.f32 %v100_v30, 0.0  ;;  %v117_v40 = vmax.f32 %v101_v31, 0.0  ;;  %v120_v41 = vmax.f32 %v104_v32, 0.0  ;;  %v121_v42 = vmax.f32 %v105_v33, 0.0 }
   0xc   :  { %v124_v46 = vmax.f32 %v108_v35, 0.0  ;;  %v125_v47 = vmax.f32 %v109_v36, 0.0  ;;  %v144_v50 = vpack.c.bf16 %v113_v38, %v112_v37  ;;  %v482_v57 = vunpack.c.l.bf16 %v536_v48 }
   0xd   :  { %v146_v54 = vpack.c.bf16 %v117_v40, %v116_v39  ;;  %v148_v55 = vpack.c.bf16 %v121_v42, %v120_v41  ;;  %v483_v59 = vunpack.c.h.bf16 %v536_v48  ;;  %v490_v60 = vunpack.c.l.bf16 %v538_v49 }
   0xe   :  { %219 = vmatpush.bf16.msra.mxu0 %v456_v4  ;;  %555 = vmatpush.bf16.msra.mxu1 %v456_v4  ;;  %v150_v58 = vpack.c.bf16 %v125_v47, %v124_v46  ;;  %v491_v61 = vunpack.c.h.bf16 %v538_v49  ;;  %v78_v62 = vmul.f32 %v634_v10, %v466_v51  ;;  %v79_v63 = vmul.f32 %v634_v10, %v467_v52 }
   0xf   :  { %556 = vmatpush.bf16.msra.mxu2 %v456_v4  ;;  %557 = vmatpush.bf16.msra.mxu3 %v456_v4  ;;  %v82_v0 = vmul.f32 %v634_v10, %v474_v53  ;;  %v83_v1 = vmul.f32 %v634_v10, %v475_v56  ;;  %v86_v2 = vmul.f32 %v634_v10, %v482_v57 }
  0x10   :  { %v87_v3 = vmul.f32 %v634_v10, %v483_v59  ;;  %v90_v4 = vmul.f32 %v634_v10, %v490_v60  ;;  %v91_v5 = vmul.f32 %v634_v10, %v491_v61  ;;  %v98_v6 = vadd.f32 %v644_v20, %v78_v62 }
  0x11   :  { %v99_v7 = vadd.f32 %v644_v20, %v79_v63  ;;  %v102_v8 = vadd.f32 %v644_v20, %v82_v0  ;;  %v103_v9 = vadd.f32 %v644_v20, %v83_v1  ;;  %v106_v11 = vadd.f32 %v644_v20, %v86_v2 }
  0x12   :  { %220 = vmatpush.bf16.msra.mxu0 %v455_v15  ;;  %558 = vmatpush.bf16.msra.mxu1 %v455_v15  ;;  %v107_v12 = vadd.f32 %v644_v20, %v87_v3  ;;  %v110_v13 = vadd.f32 %v644_v20, %v90_v4  ;;  %v111_v14 = vadd.f32 %v644_v20, %v91_v5 }
  0x13   :  { %559 = vmatpush.bf16.msra.mxu2 %v455_v15  ;;  %560 = vmatpush.bf16.msra.mxu3 %v455_v15  ;;  %v114_v15 = vmax.f32 %v98_v6, 0.0  ;;  %v115_v16 = vmax.f32 %v99_v7, 0.0  ;;  %v118_v17 = vmax.f32 %v102_v8, 0.0  ;;  %v119_v10 = vmax.f32 %v103_v9, 0.0 }
  0x14   :  { %v122_v18 = vmax.f32 %v106_v11, 0.0  ;;  %v123_v19 = vmax.f32 %v107_v12, 0.0  ;;  %v126_v21 = vmax.f32 %v110_v13, 0.0  ;;  %v127_v22 = vmax.f32 %v111_v14, 0.0 }
  0x15   :  { %v145_v23 = vpack.c.bf16 %v115_v16, %v114_v15  ;;  %v147_v24 = vpack.c.bf16 %v119_v10, %v118_v17 }
  0x16   :  { %221 = vmatpush.bf16.msra.mxu0 %v454_v25  ;;  %561 = vmatpush.bf16.msra.mxu1 %v454_v25  ;;  %v151_v26 = vpack.c.bf16 %v127_v22, %v126_v21 }
  0x17   :  { %562 = vmatpush.bf16.msra.mxu2 %v454_v25  ;;  %563 = vmatpush.bf16.msra.mxu3 %v454_v25  ;;  %v149_v25 = vpack.c.bf16 %v123_v19, %v122_v18 }
  0x1a   :  { %222 = vmatpush.bf16.msra.mxu0 %v453_v34  ;;  %564 = vmatpush.bf16.msra.mxu1 %v453_v34 }
  0x1b   :  { %565 = vmatpush.bf16.msra.mxu2 %v453_v34  ;;  %566 = vmatpush.bf16.msra.mxu3 %v453_v34 }
  0x1e   :  { %223 = vmatpush.bf16.msra.mxu0 %v452_v45  ;;  %567 = vmatpush.bf16.msra.mxu1 %v452_v45 }
  0x1f   :  { %568 = vmatpush.bf16.msra.mxu2 %v452_v45  ;;  %569 = vmatpush.bf16.msra.mxu3 %v452_v45 }
  0x21   :  { %224 = vmatmul.bf16.vlgmr.msra.gmra.mxu0 %v144_v50  ;;  %234 = vmatmul.bf16.vlgmr.msra.gmra.mxu1 %v146_v54 }
  0x22   :  { %244 = vmatmul.bf16.vlgmr.msra.gmra.mxu2 %v148_v55  ;;  %254 = vmatmul.bf16.vlgmr.msra.gmra.mxu3 %v150_v58 }
  0x31   :  { %229 = vmatmul.bf16.gmra.mxu0 %v145_v23  ;;  %239 = vmatmul.bf16.gmra.mxu1 %v147_v24 }
  0x32   :  { %249 = vmatmul.bf16.gmra.mxu2 %v149_v25  ;;  %259 = vmatmul.bf16.gmra.mxu3 %v151_v26 }
  0x9e   :  { %v225_v27 = vpop.f32.mrf.mxu0  ;;  %v235_v28 = vpop.f32.mrf.mxu1 }
  0x9f   :  { %v369_v41 = vmul.f32 %v225_v27, %v225_v27  ;;  %v373_v55 = vmul.f32 %v235_v28, %v235_v28 }
  0xa5   :  { %v245_v29 = vpop.f32.mrf.mxu2  ;;  %v697_v20 = vpop.f32.mrf.mxu3 }
  0xa6   :  { %v227_v30 = vpop.f32.mrf.mxu0  ;;  %v237_v31 = vpop.f32.mrf.mxu1  ;;  %v377_v7 = vmul.f32 %v245_v29, %v245_v29  ;;  %v381_v19 = vmul.f32 %v697_v20, %v697_v20 }
  0xa7   :  { %v495_v32 = vpack.c.bf16 %v227_v30, %v225_v27  ;;  %v505_v33 = vpack.c.bf16 %v237_v31, %v235_v28  ;;  %v370_v40 = vmul.f32 %v227_v30, %v227_v30  ;;  %v348_v43 = vadd.f32 %v227_v30, %v225_v27 }
  0xa8   :  { %v374_v58 = vmul.f32 %v237_v31, %v237_v31 }
  0xa9   :  { %496 = vst [vmem:[%s737_s4] sm:$0xff] %v495_v32   ;;  %v385_v44 = vadd.f32 %v370_v40, %v369_v41 }
  0xaa   :  { %540 = vst [vmem:[%s737_s4 + $0x10] sm:$0xff] %v505_v33  }
  0xad   :  { %v247_v34 = vpop.f32.mrf.mxu2  ;;  %v257_v35 = vpop.f32.mrf.mxu3 }
  0xae   :  { %v230_v36 = vpop.f32.mrf.mxu0  ;;  %v240_v37 = vpop.f32.mrf.mxu1  ;;  %v515_v38 = vpack.c.bf16 %v247_v34, %v245_v29  ;;  %v525_v39 = vpack.c.bf16 %v257_v35, %v697_v20  ;;  %v378_v11 = vmul.f32 %v247_v34, %v247_v34  ;;  %v382_v23 = vmul.f32 %v257_v35, %v257_v35 }
  0xaf   :  { %v371_v42 = vmul.f32 %v230_v36, %v230_v36  ;;  %v349_v45 = vadd.f32 %v348_v43, %v230_v36  ;;  %v375_v61 = vmul.f32 %v240_v37, %v240_v37 }
  0xb0   :  { %542 = vst [vmem:[%s737_s4 + $0x20] sm:$0xff] %v515_v38  }
  0xb1   :  { %544 = vst [vmem:[%s737_s4 + $0x30] sm:$0xff] %v525_v39   ;;  %v386_v48 = vadd.f32 %v385_v44, %v371_v42 }
  0xb5   :  { %v250_v46 = vpop.f32.mrf.mxu2  ;;  %v260_v47 = vpop.f32.mrf.mxu3 }
  0xb6   :  { %v232_v49 = vpop.f32.mrf.mxu0  ;;  %v242_v50 = vpop.f32.mrf.mxu1  ;;  %v379_v15 = vmul.f32 %v250_v46, %v250_v46  ;;  %v383_v27 = vmul.f32 %v260_v47, %v260_v47 }
  0xb7   :  { %v500_v51 = vpack.c.bf16 %v232_v49, %v230_v36  ;;  %v350_v52 = vadd.f32 %v349_v45, %v232_v49  ;;  %v372_v53 = vmul.f32 %v232_v49, %v232_v49  ;;  %v510_v54 = vpack.c.bf16 %v242_v50, %v240_v37 }
  0xb8   :  { %v376_v5 = vmul.f32 %v242_v50, %v242_v50 }
  0xb9   :  { %539 = vst [vmem:[%s737_s4 + $0x8] sm:$0xff] %v500_v51   ;;  %v351_v56 = vadd.f32 %v350_v52, %v235_v28  ;;  %v387_v57 = vadd.f32 %v386_v48, %v372_v53 }
  0xba   :  { %541 = vst [vmem:[%s737_s4 + $0x18] sm:$0xff] %v510_v54  }
  0xbb   :  { %v388_v59 = vadd.f32 %v387_v57, %v373_v55  ;;  %v352_v60 = vadd.f32 %v351_v56, %v237_v31 }
  0xbd   :  { %v353_v62 = vadd.f32 %v352_v60, %v240_v37  ;;  %v389_v63 = vadd.f32 %v388_v59, %v374_v58  ;;  %v252_v0 = vpop.f32.mrf.mxu2  ;;  %v262_v1 = vpop.f32.mrf.mxu3 }
  0xbe   :  { %v520_v2 = vpack.c.bf16 %v252_v0, %v250_v46  ;;  %v530_v3 = vpack.c.bf16 %v262_v1, %v260_v47  ;;  %v380_v18 = vmul.f32 %v252_v0, %v252_v0  ;;  %v384_v31 = vmul.f32 %v262_v1, %v262_v1 }
  0xbf   :  { %v354_v4 = vadd.f32 %v353_v62, %v242_v50  ;;  %v390_v6 = vadd.f32 %v389_v63, %v375_v61 }
  0xc0   :  { %543 = vst [vmem:[%s737_s4 + $0x28] sm:$0xff] %v520_v2  }
  0xc1   :  { %v355_v8 = vadd.f32 %v354_v4, %v245_v29  ;;  %v391_v9 = vadd.f32 %v390_v6, %v376_v5  ;;  %545 = vst [vmem:[%s737_s4 + $0x38] sm:$0xff] %v530_v3  }
  0xc3   :  { %v392_v12 = vadd.f32 %v391_v9, %v377_v7  ;;  %v356_v13 = vadd.f32 %v355_v8, %v247_v34 }
  0xc5   :  { %v357_v14 = vadd.f32 %v356_v13, %v250_v46  ;;  %v393_v16 = vadd.f32 %v392_v12, %v378_v11 }
  0xc7   :  { %v394_v17 = vadd.f32 %v393_v16, %v379_v15  ;;  %v358_v10 = vadd.f32 %v357_v14, %v252_v0 }
  0xc9   :  { %v359_v21 = vadd.f32 %v358_v10, %v697_v20  ;;  %v395_v22 = vadd.f32 %v394_v17, %v380_v18 }
  0xcb   :  { %v396_v24 = vadd.f32 %v395_v22, %v381_v19  ;;  %v360_v25 = vadd.f32 %v359_v21, %v257_v35 }
  0xcd   :  { %v361_v26 = vadd.f32 %v360_v25, %v260_v47  ;;  %v397_v28 = vadd.f32 %v396_v24, %v382_v23 }
  0xcf   :  { %v398_v29 = vadd.f32 %v397_v28, %v383_v27  ;;  %v362_v30 = vadd.f32 %v361_v26, %v262_v1 }
  0xd1   :  { %v363_v32 = vrot.slane %v362_v30, 4  ;;  %v399_v33 = vadd.f32 %v398_v29, %v384_v31 }
  0xd3   :  { %v364_v34 = vadd.f32 %v363_v32, %v362_v30  ;;  %v400_v36 = vrot.slane %v399_v33, 4 }
  0xd5   :  { %v365_v37 = vrot.slane %v364_v34, 2  ;;  %v401_v38 = vadd.f32 %v400_v36, %v399_v33 }
  0xd7   :  { %v366_v39 = vadd.f32 %v365_v37, %v364_v34  ;;  %v402_v40 = vrot.slane %v401_v38, 2 }
  0xd9   :  { %v367_v41 = vrot.slane %v366_v39, 1  ;;  %v403_v20 = vadd.f32 %v402_v40, %v401_v38 }
  0xdb   :  { %v368_v42 = vadd.f32 %v367_v41, %v366_v39  ;;  %v404_v43 = vrot.slane %v403_v20, 1 }
  0xdd   :  { %v405_v44 = vadd.f32 %v404_v43, %v403_v20  ;;  %406 = vst [vmem:[%s738_s5] sm:$0xff] %v368_v42 }
  0xdf   :  { %407 = vst [vmem:[%s739_s6] sm:$0xff] %v405_v44 }

// kernel: bottleneck_forward.6
= control target key start
LH: loop header
LB: loop body
LE: loop exit
PB: predicated region body
PF: predicated region fallthrough
CT: control target
= control target key end

     0   :  { %s2702_s15 = smov 0   ;;  %s3142_s0 = inlined_call_operand.vmem [shape: bf16[8,9,9,128], index: 0, kind: input, shape index: {}]   ;;  %s3143_s1 = inlined_call_operand.vmem [shape: bf16[9,128,128], index: 1, kind: input, shape index: {}]   ;;  %s3144_s2 = inlined_call_operand.vmem [shape: bf16[128,128], index: 2, kind: output, shape index: {0}]   ;;  %s3145_s3 = inlined_call_operand.vmem [shape: f32[16,128], index: 3, kind: output, shape index: {1}]   ;;  %s3146_s4 = inlined_call_operand.vmem [shape: f32[16,128], index: 4, kind: output, shape index: {2}]  }
   0x1 LB: > { %s2708_s16 = sadd.s32 4294967295, %s2675_s15   ;;  %p1932_p0 = scmp.ge.s32.totalorder %s2675_s15, 1  ;;  %s2675_s15 = sphi %s2702_s15, %s15_s15  }
   0x2   : > { %p169_p1 = scmp.lt.s32.totalorder %s2675_s15, 3 }
   0x4   : > { %p170_p2 = pnand %p1932_p0, %p169_p1 }
   0x5   : > { %s1933_s19 = sshll.u32 (!%p170_p2), %s2708_s16, 2  ;;  %p217_p5 = scmp.lt.s32.totalorder (!%p170_p2), %s2708_s16, 1 }
   0x6   : > { %173 = sbr.rel (%p170_p2) target bundleno = 346 (0x15a), region = 28  ;;  %p205_p3 = scmp.lt.s32.totalorder (!%p170_p2), %s1933_s19, 7 }
   0xb   : > { %v2548_v0 = vld [vmem:[%s3143_s1 + $0x78] sm:$0xff]  ;;  %v2547_v2 = vld [vmem:[%s3143_s1 + $0x70] sm:$0xff]  ;;  %s3150_s19 = smov (!%p205_p3, %s1933_s19), 7  ;;  %v2546_v6 = vld [vmem:[%s3143_s1 + $0x68] sm:$0xff]  ;;  %vm493_vm0 = vsmask.f32 3328 }
   0xc   : > { %v2556_v1 = vld [vmem:[%s3143_s1 + $0xb8] sm:$0xff]  ;;  %2644 = vmatpush.bf16.msra.mxu1 %v2548_v0  ;;  %347 = vmatpush.bf16.msra.mxu0 %v2548_v0  ;;  %v2555_v3 = vld [vmem:[%s3143_s1 + $0xb0] sm:$0xff]  ;;  %s2660_s30 = smul.u32 72, %s3150_s19  ;;  %v2554_v7 = vld [vmem:[%s3143_s1 + $0xa8] sm:$0xff]  ;;  %vm494_vm1 = vsmask.f32 7440 }
   0xd   : > { %689 = vmatpush.bf16.msra.mxu2 %v2556_v1  ;;  %v2568_v4 = vld [vmem:[%s3143_s1 + $0xf8] sm:$0xff]  ;;  %v2567_v5 = vld [vmem:[%s3143_s1 + $0xf0] sm:$0xff]  ;;  %v2566_v8 = vld [vmem:[%s3143_s1 + $0xe8] sm:$0xff] }
   0xe   : > { %824 = vmatpush.bf16.msra.mxu3 %v2568_v4  ;;  %s2740_s11 = scalar_lea.vmem %s3142_s0, %s2660_s30  ;;  %v2545_v10 = vld [vmem:[%s3143_s1 + $0x60] sm:$0xff]  ;;  %v2544_v23 = vld [vmem:[%s3143_s1 + $0x58] sm:$0xff]  ;;  %v2543_v31 = vld [vmem:[%s3143_s1 + $0x50] sm:$0xff] }
   0xf   : > { %v477_v9 = vld [vmem:[%s2740_s11] sm:$0xf]  ;;  %v479_v11 = vld [vmem:[%s2740_s11 + $0x8] sm:$0xf]  ;;  %v478_v16 = vld [vmem:[%s2740_s11 + $0x4] sm:$0x1] }
  0x10   : > { %2645 = vmatpush.bf16.msra.mxu1 %v2547_v2  ;;  %348 = vmatpush.bf16.msra.mxu0 %v2547_v2  ;;  %v2553_v12 = vld [vmem:[%s3143_s1 + $0xa0] sm:$0xff]  ;;  %v497_v13 = vshrl.u32 %v477_v9, 16  ;;  %v500_v14 = vshll.u32 %v477_v9, 16  ;;  %v511_v15 = vshrl.u32 %v479_v11, 16  ;;  %v480_v17 = vld [vmem:[%s2740_s11 + $0xc] sm:$0x1]  ;;  %vm2775_vm2 = vmor %vm493_vm0, %vm494_vm1 }
  0x11   : > { %690 = vmatpush.bf16.msra.mxu2 %v2555_v3  ;;  %v514_v18 = vshll.u32 %v479_v11, 16  ;;  %v2565_v19 = vld [vmem:[%s3143_s1 + $0xe0] sm:$0xff]  ;;  %v2552_v25 = vld [vmem:[%s3143_s1 + $0x98] sm:$0xff]  ;;  %v506_v27 = vshll.u32 %v478_v16, 16  ;;  %v520_v28 = vshll.u32 %v480_v17, 16  ;;  %v2551_v34 = vld [vmem:[%s3143_s1 + $0x90] sm:$0xff] }
  0x12   : > { %825 = vmatpush.bf16.msra.mxu3 %v2567_v5  ;;  %v499_v20 = vrot.slane %v497_v13, 4  ;;  %v502_v21 = vrot.slane %v500_v14, 5  ;;  %v513_v22 = vrot.slane %v511_v15, 4  ;;  %v2564_v30 = vld [vmem:[%s3143_s1 + $0xd8] sm:$0xff]  ;;  %v481_v32 = vld [vmem:[%s2740_s11 + $0x10] sm:$0xf] }
  0x13   : > { %v516_v24 = vrot.slane %v514_v18, 5  ;;  %v483_v33 = vld [vmem:[%s2740_s11 + $0x18] sm:$0xf]  ;;  %v508_v36 = vrot.slane %v506_v27, 5  ;;  %v522_v38 = vrot.slane %v520_v28, 5  ;;  %v2563_v40 = vld [vmem:[%s3143_s1 + $0xd0] sm:$0xff] }
  0x14   : > { %2646 = vmatpush.bf16.msra.mxu1 %v2546_v6  ;;  %349 = vmatpush.bf16.msra.mxu0 %v2546_v6  ;;  %v503_v26 = vor.u32 %v502_v21, %v499_v20  ;;  %v525_v41 = vshrl.u32 %v481_v32, 16  ;;  %v528_v42 = vshll.u32 %v481_v32, 16  ;;  %v539_v43 = vshrl.u32 %v483_v33, 16  ;;  %v2542_v45 = vld [vmem:[%s3143_s1 + $0x48] sm:$0xff]  ;;  %v2541_v49 = vld [vmem:[%s3143_s1 + $0x40] sm:$0xff]  ;;  %v2536_v63 = vld [vmem:[%s3143_s1 + $0x38] sm:$0xff] }
  0x15   : > { %691 = vmatpush.bf16.msra.mxu2 %v2554_v7  ;;  %v517_v29 = vor.u32 %v516_v24, %v513_v22  ;;  %v542_v44 = vshll.u32 %v483_v33, 16  ;;  %v2550_v46 = vld [vmem:[%s3143_s1 + $0x88] sm:$0xff]  ;;  %v2539_v51 = vld [vmem:[%s2740_s11 + $0x6c] sm:$0xf0]  ;;  %v482_v53 = vld [vmem:[%s2740_s11 + $0x14] sm:$0x1] }
  0x16   : > { %826 = vmatpush.bf16.msra.mxu3 %v2566_v8  ;;  %v504_v35 = vrot.slane %v503_v26, 4  ;;  %v1973_v50 = vld [vmem:[%s2740_s11 + $0x68] sm:$0xf]  ;;  %v527_v54 = vrot.slane %v525_v41, 4  ;;  %v530_v55 = vrot.slane %v528_v42, 5  ;;  %v541_v56 = vrot.slane %v539_v43, 4 }
  0x17   : > { %v518_v37 = vrot.slane %v517_v29, 4  ;;  %v2562_v52 = vld [vmem:[%s3143_s1 + $0xc8] sm:$0xff]  ;;  %v544_v57 = vrot.slane %v542_v44, 5  ;;  %v2537_v59 = vld [vmem:[%s2740_s11 + $0x4c] sm:$0xf0]  ;;  %v2549_v0 = vld [vmem:[%s3143_s1 + $0x80] sm:$0xff]  ;;  %v1974_v1 = vor.u32 %v2539_v51, %v1973_v50 }
  0x18   : > { %2647 = vmatpush.bf16.msra.mxu1 %v2545_v10  ;;  %350 = vmatpush.bf16.msra.mxu0 %v2545_v10  ;;  %v509_v47 = vsel %vm2775_vm2, %v504_v35, %v508_v36  ;;  %v1965_v58 = vld [vmem:[%s2740_s11 + $0x48] sm:$0xf]  ;;  %v484_v62 = vld [vmem:[%s2740_s11 + $0x1c] sm:$0x1]  ;;  %v534_v4 = vshll.u32 %v482_v53, 16  ;;  %v531_v6 = vor.u32 %v530_v55, %v527_v54  ;;  %v2561_v10 = vld [vmem:[%s3143_s1 + $0xc0] sm:$0xff] }
  0x19   : > { %692 = vmatpush.bf16.msra.mxu2 %v2553_v12  ;;  %v523_v48 = vsel %vm2775_vm2, %v518_v37, %v522_v38  ;;  %v625_v60 = vunpack.c.l.b16 %v509_v47  ;;  %v2580_v2 = vld [vmem:[%s3143_s1 + $0x138] sm:$0xff]  ;;  %v1966_v5 = vor.u32 %v2537_v59, %v1965_v58  ;;  %v545_v7 = vor.u32 %v544_v57, %v541_v56  ;;  %v2133_v11 = vld [vmem:[%s2740_s11 + $0x90] sm:$0xf]  ;;  %v2534_v22 = vld [vmem:[%s3143_s1 + $0x28] sm:$0xff] }
  0x1a   : > { %827 = vmatpush.bf16.msra.mxu3 %v2565_v19  ;;  %v626_v61 = vunpack.c.l.b16 %v523_v48  ;;  %v2600_v3 = vld [vmem:[%s3143_s1 + $0x1b8] sm:$0xff]  ;;  %v548_v8 = vshll.u32 %v484_v62, 16  ;;  %v2535_v13 = vld [vmem:[%s3143_s1 + $0x30] sm:$0xff]  ;;  %v536_v16 = vrot.slane %v534_v4, 5  ;;  %v532_v19 = vrot.slane %v531_v6, 4  ;;  %v2578_v26 = vld [vmem:[%s3143_s1 + $0x128] sm:$0xff] }
  0x1b   : > { %v2557_v12 = vld [vmem:[%s2740_s11 + $0x94] sm:$0xf0]  ;;  %v2579_v15 = vld [vmem:[%s3143_s1 + $0x130] sm:$0xff]  ;;  %v546_v20 = vrot.slane %v545_v7, 4  ;;  %v485_v24 = vld [vmem:[%s2740_s11 + $0x20] sm:$0xf] }
  0x1c   : > { %2648 = vmatpush.bf16.msra.mxu1 %v2544_v23  ;;  %351 = vmatpush.bf16.msra.mxu0 %v2544_v23  ;;  %v633_v9 = vpack.c.b16 %v626_v61, %v625_v60  ;;  %v2612_v14 = vld [vmem:[%s3143_s1 + $0x1f8] sm:$0xff]  ;;  %v2599_v17 = vld [vmem:[%s3143_s1 + $0x1b0] sm:$0xff]  ;;  %v2134_v18 = vor.u32 %v2557_v12, %v2133_v11  ;;  %v550_v21 = vrot.slane %v548_v8, 5  ;;  %v2598_v27 = vld [vmem:[%s3143_s1 + $0x1a8] sm:$0xff]  ;;  %v537_v28 = vsel %vm2775_vm2, %v532_v19, %v536_v16 }
  0x1d   : > { %693 = vmatpush.bf16.msra.mxu2 %v2552_v25  ;;  %v2611_v23 = vld [vmem:[%s3143_s1 + $0x1f0] sm:$0xff]  ;;  %v487_v25 = vld [vmem:[%s2740_s11 + $0x28] sm:$0xf]  ;;  %v2577_v36 = vld [vmem:[%s3143_s1 + $0x120] sm:$0xff]  ;;  %v627_v42 = vunpack.c.l.b16 %v537_v28 }
  0x1e   : > { %828 = vmatpush.bf16.msra.mxu3 %v2564_v30  ;;  %v551_v29 = vsel %vm2775_vm2, %v546_v20, %v550_v21  ;;  %v553_v30 = vshrl.u32 %v485_v24, 16  ;;  %v567_v32 = vshrl.u32 %v487_v25, 16  ;;  %v570_v33 = vshll.u32 %v487_v25, 16  ;;  %v2610_v35 = vld [vmem:[%s3143_s1 + $0x1e8] sm:$0xff]  ;;  %v2597_v37 = vld [vmem:[%s3143_s1 + $0x1a0] sm:$0xff]  ;;  %v2531_v62 = vld [vmem:[%s3143_s1 + $0x10] sm:$0xff] }
  0x1f   : > { %v1977_v38 = vld [vmem:[%s2740_s11 + $0x78] sm:$0xf]  ;;  %v628_v43 = vunpack.c.l.b16 %v551_v29  ;;  %v2538_v44 = vld [vmem:[%s2740_s11 + $0x5c] sm:$0xf0]  ;;  %v486_v50 = vld [vmem:[%s2740_s11 + $0x24] sm:$0x1] }
  0x20   : > { %2649 = vmatpush.bf16.msra.mxu1 %v2543_v31  ;;  %352 = vmatpush.bf16.msra.mxu0 %v2543_v31  ;;  %v556_v31 = vshll.u32 %v485_v24, 16  ;;  %v1969_v41 = vld [vmem:[%s2740_s11 + $0x58] sm:$0xf]  ;;  %v569_v47 = vrot.slane %v567_v32, 4  ;;  %v572_v48 = vrot.slane %v570_v33, 5  ;;  %v562_v59 = vshll.u32 %v486_v50, 16 }
  0x21   : > { %694 = vmatpush.bf16.msra.mxu2 %v2551_v34  ;;  %v2533_v34 = vld [vmem:[%s3143_s1 + $0x20] sm:$0xff]  ;;  %v488_v51 = vld [vmem:[%s2740_s11 + $0x2c] sm:$0x1]  ;;  %v1970_v54 = vor.u32 %v2538_v44, %v1969_v41  ;;  %v634_v55 = vpack.c.b16 %v628_v43, %v627_v42  ;;  %v2558_v57 = vld [vmem:[%s2740_s11 + $0xa4] sm:$0xf0] }
  0x22   : > { %829 = vmatpush.bf16.msra.mxu3 %v2563_v40  ;;  %v2540_v40 = vld [vmem:[%s2740_s11 + $0x7c] sm:$0xf0]  ;;  %v573_v60 = vor.u32 %v572_v48, %v569_v47  ;;  %v576_v61 = vshll.u32 %v488_v51, 16  ;;  %v2530_v6 = vld [vmem:[%s3143_s1 + $0x8] sm:$0xff]  ;;  %v2595_v11 = vld [vmem:[%s3143_s1 + $0x190] sm:$0xff] }
  0x23   : > { %v1978_v53 = vor.u32 %v2540_v40, %v1977_v38  ;;  %v2137_v56 = vld [vmem:[%s2740_s11 + $0xa0] sm:$0xf]  ;;  %v2574_v7 = vld [vmem:[%s3143_s1 + $0x108] sm:$0xff]  ;;  %v2588_v20 = vld [vmem:[%s3143_s1 + $0x178] sm:$0xff] }
  0x24   : > { %2650 = vmatpush.bf16.msra.mxu1 %v2542_v45  ;;  %353 = vmatpush.bf16.msra.mxu0 %v2542_v45  ;;  %v555_v45 = vrot.slane %v553_v30, 4  ;;  %v574_v4 = vrot.slane %v573_v60, 4  ;;  %v2609_v8 = vld [vmem:[%s3143_s1 + $0x1e0] sm:$0xff]  ;;  %v2525_v24 = vld [vmem:[%s2740_s11 + $0x4] sm:$0xf0]  ;;  %v2587_v33 = vld [vmem:[%s3143_s1 + $0x170] sm:$0xff] }
  0x25   : > { %695 = vmatpush.bf16.msra.mxu2 %v2550_v46  ;;  %v558_v46 = vrot.slane %v556_v31, 5  ;;  %v2573_v21 = vld [vmem:[%s3143_s1 + $0x100] sm:$0xff]  ;;  %v2205_v25 = vld [vmem:[%s2740_s11 + $0xd8] sm:$0xf]  ;;  %v2141_v40 = vld [vmem:[%s2740_s11 + $0xb0] sm:$0xf] }
  0x26   : > { %830 = vmatpush.bf16.msra.mxu3 %v2562_v52  ;;  %v2576_v52 = vld [vmem:[%s3143_s1 + $0x118] sm:$0xff]  ;;  %v2619_v42 = vld [vmem:[%s3143_s1 + $0x230] sm:$0xff]  ;;  %v2586_v47 = vld [vmem:[%s3143_s1 + $0x168] sm:$0xff] }
  0x27   : > { %v559_v58 = vor.u32 %v558_v46, %v555_v45  ;;  %v2559_v41 = vld [vmem:[%s2740_s11 + $0xb4] sm:$0xf0]  ;;  %v2594_v48 = vld [vmem:[%s3143_s1 + $0x188] sm:$0xff] }
  0x28   : > { %2651 = vmatpush.bf16.msra.mxu1 %v2541_v49  ;;  %354 = vmatpush.bf16.msra.mxu0 %v2541_v49  ;;  %v2532_v49 = vld [vmem:[%s3143_s1 + $0x18] sm:$0xff]  ;;  %v2618_v50 = vld [vmem:[%s3143_s1 + $0x228] sm:$0xff] }
  0x29   : > { %696 = vmatpush.bf16.msra.mxu2 %v2549_v0  ;;  %v2138_v0 = vor.u32 %v2558_v57, %v2137_v56  ;;  %v2607_v56 = vld [vmem:[%s3143_s1 + $0x1d0] sm:$0xff]  ;;  %v2585_v57 = vld [vmem:[%s3143_s1 + $0x160] sm:$0xff] }
  0x2a   : > { %831 = vmatpush.bf16.msra.mxu3 %v2561_v10  ;;  %v491_v10 = vld [vmem:[%s2740_s11 + $0x38] sm:$0xf] }
  0x2b   : > { %365 = vmatmul.bf16.vlgmr.msra.gmra.mxu1 %v1974_v1  ;;  %355 = vmatmul.bf16.vlgmr.msra.gmra.mxu0 %v1966_v5  ;;  %v2596_v1 = vld [vmem:[%s3143_s1 + $0x198] sm:$0xff]  ;;  %v578_v5 = vrot.slane %v576_v61, 5  ;;  %v598_v19 = vshll.u32 %v491_v10, 16 }
  0x2c   : > { %448 = vmatpush.bf16.msrb.mxu1 %v2536_v63  ;;  %959 = vmatpush.bf16.msrb.mxu0 %v2580_v2  ;;  %v2575_v63 = vld [vmem:[%s3143_s1 + $0x110] sm:$0xff]  ;;  %v560_v2 = vrot.slane %v559_v58, 4  ;;  %v2617_v58 = vld [vmem:[%s3143_s1 + $0x220] sm:$0xff] }
  0x2d   : > { %1340 = vmatpush.bf16.msrb.mxu2 %v2600_v3  ;;  %832 = vmatmul.bf16.vlgmr.msra.gmra.mxu3 %v2134_v18  ;;  %v564_v3 = vrot.slane %v562_v59, 5  ;;  %v595_v18 = vshrl.u32 %v491_v10, 16  ;;  %v600_v32 = vrot.slane %v598_v19, 5  ;;  %v2606_v59 = vld [vmem:[%s3143_s1 + $0x1c8] sm:$0xff] }
  0x2e   : > { %697 = vmatmul.bf16.vlgmr.msra.gmra.mxu2 %v633_v9  ;;  %1475 = vmatpush.bf16.msrb.mxu3 %v2612_v14  ;;  %v489_v9 = vld [vmem:[%s2740_s11 + $0x30] sm:$0xf]  ;;  %v2608_v14 = vld [vmem:[%s3143_s1 + $0x1d8] sm:$0xff]  ;;  %v2560_v10 = vld [vmem:[%s2740_s11 + $0xc4] sm:$0xf0] }
  0x2f   : > { %v565_v12 = vsel %vm2775_vm2, %v560_v2, %v564_v3  ;;  %v581_v16 = vshrl.u32 %v489_v9, 16  ;;  %v597_v31 = vrot.slane %v595_v18, 4  ;;  %v2570_v2 = vld [vmem:[%s2740_s11 + $0xec] sm:$0xf0]  ;;  %v2021_v18 = vld [vmem:[%s2740_s11 + $0x20] sm:$0xf] }
  0x30   : > { %449 = vmatpush.bf16.msrb.mxu1 %v2535_v13  ;;  %960 = vmatpush.bf16.msrb.mxu0 %v2579_v15  ;;  %v579_v13 = vsel %vm2775_vm2, %v574_v4, %v578_v5  ;;  %v2529_v15 = vld [vmem:[%s3143_s1] sm:$0xff]  ;;  %v2583_v5 = vld [vmem:[%s3143_s1 + $0x150] sm:$0xff]  ;;  %v2527_v19 = vld [vmem:[%s2740_s11 + $0x24] sm:$0xf0] }
  0x31   : > { %1341 = vmatpush.bf16.msrb.mxu2 %v2599_v17  ;;  %v584_v17 = vshll.u32 %v489_v9, 16  ;;  %v630_v28 = vunpack.c.l.b16 %v579_v13  ;;  %v583_v29 = vrot.slane %v581_v16, 4  ;;  %v601_v45 = vor.u32 %v600_v32, %v597_v31  ;;  %v2145_v9 = vld [vmem:[%s2740_s11 + $0xc0] sm:$0xf]  ;;  %v2616_v13 = vld [vmem:[%s3143_s1 + $0x218] sm:$0xff]  ;;  %v2615_v16 = vld [vmem:[%s3143_s1 + $0x210] sm:$0xff] }
  0x32   : > { %1476 = vmatpush.bf16.msrb.mxu3 %v2611_v23  ;;  %v2620_v23 = vld [vmem:[%s3143_s1 + $0x238] sm:$0xff]  ;;  %v2251_v31 = vld [vmem:[%s2740_s11 + $0x90] sm:$0xf] }
  0x33   : > { %v586_v30 = vrot.slane %v584_v17, 5  ;;  %v2614_v17 = vld [vmem:[%s3143_s1 + $0x208] sm:$0xff]  ;;  %v2253_v32 = vld [vmem:[%s2740_s11 + $0x98] sm:$0xf] }
  0x34   : > { %450 = vmatpush.bf16.msrb.mxu1 %v2534_v22  ;;  %961 = vmatpush.bf16.msrb.mxu0 %v2578_v26  ;;  %v2013_v22 = vld [vmem:[%s2740_s11] sm:$0xf] }
  0x35   : > { %1342 = vmatpush.bf16.msrb.mxu2 %v2598_v27  ;;  %v2569_v26 = vld [vmem:[%s2740_s11 + $0xdc] sm:$0xf0]  ;;  %v629_v27 = vunpack.c.l.b16 %v565_v12  ;;  %v587_v43 = vor.u32 %v586_v30, %v583_v29  ;;  %v2582_v12 = vld [vmem:[%s3143_s1 + $0x148] sm:$0xff] }
  0x36   : > { %1477 = vmatpush.bf16.msrb.mxu3 %v2610_v35  ;;  %v492_v35 = vld [vmem:[%s2740_s11 + $0x3c] sm:$0x1]  ;;  %v2613_v30 = vld [vmem:[%s3143_s1 + $0x200] sm:$0xff] }
  0x37   : > { %v635_v38 = vpack.c.b16 %v630_v28, %v629_v27  ;;  %v604_v46 = vshll.u32 %v492_v35, 16  ;;  %v588_v51 = vrot.slane %v587_v43, 4  ;;  %v2413_v27 = vld [vmem:[%s2740_s11 + $0x50] sm:$0xf]  ;;  %v2601_v28 = vld [vmem:[%s2740_s11 + $0x54] sm:$0xf0] }
  0x38   : > { %451 = vmatpush.bf16.msrb.mxu1 %v2533_v34  ;;  %962 = vmatpush.bf16.msrb.mxu0 %v2577_v36  ;;  %v490_v34 = vld [vmem:[%s2740_s11 + $0x34] sm:$0x1]  ;;  %v2014_v36 = vor.u32 %v2525_v24, %v2013_v22  ;;  %v2341_v22 = vld [vmem:[%s2740_s11 + $0x8] sm:$0xf]  ;;  %v2022_v24 = vor.u32 %v2527_v19, %v2021_v18  ;;  %v2414_v29 = vor.u32 %v2601_v28, %v2413_v27  ;;  %v1013_v35 = vshrl.u32 %v2251_v31, 16 }
  0x39   : > { %1343 = vmatpush.bf16.msrb.mxu2 %v2597_v37  ;;  %v2206_v37 = vor.u32 %v2569_v26, %v2205_v25  ;;  %v590_v44 = vshll.u32 %v490_v34, 16  ;;  %v2461_v34 = vld [vmem:[%s2740_s11 + $0x10] sm:$0xf]  ;;  %v2463_v18 = vld [vmem:[%s2740_s11 + $0x18] sm:$0xf] }
  0x3a   : > { %1478 = vmatpush.bf16.msrb.mxu3 %v2609_v8  ;;  %v1546_v43 = vshll.u32 %v2461_v34, 16  ;;  %v2465_v19 = vld [vmem:[%s2740_s11 + $0x20] sm:$0xf]  ;;  %v1557_v28 = vshrl.u32 %v2463_v18, 16 }
  0x3b   : > { %370 = vmatmul.bf16.gmra.mxu1 %v1978_v53  ;;  %360 = vmatmul.bf16.gmra.mxu0 %v1970_v54  ;;  %v602_v53 = vrot.slane %v601_v45, 4  ;;  %v606_v54 = vrot.slane %v604_v46, 5  ;;  %v2528_v45 = vld [vmem:[%s2740_s11 + $0x34] sm:$0xf0]  ;;  %v2217_v46 = vld [vmem:[%s2740_s11 + $0x108] sm:$0xf] }
  0x3c   : > { %452 = vmatpush.bf16.msrb.mxu1 %v2532_v49  ;;  %963 = vmatpush.bf16.msrb.mxu0 %v2576_v52  ;;  %v2142_v49 = vor.u32 %v2559_v41, %v2141_v40  ;;  %v592_v52 = vrot.slane %v590_v44, 5  ;;  %v2025_v44 = vld [vmem:[%s2740_s11 + $0x30] sm:$0xf] }
  0x3d   : > { %1344 = vmatpush.bf16.msrb.mxu2 %v2596_v1  ;;  %837 = vmatmul.bf16.gmra.mxu3 %v2138_v0  ;;  %v607_v61 = vsel %vm2775_vm2, %v602_v53, %v606_v54  ;;  %v2526_v0 = vld [vmem:[%s2740_s11 + $0x14] sm:$0xf0]  ;;  %v2209_v1 = vld [vmem:[%s2740_s11 + $0xe8] sm:$0xf] }
  0x3e   : > { %702 = vmatmul.bf16.gmra.mxu2 %v634_v55  ;;  %1479 = vmatpush.bf16.msrb.mxu3 %v2608_v14  ;;  %v2593_v55 = vld [vmem:[%s3143_s1 + $0x180] sm:$0xff]  ;;  %v593_v60 = vsel %vm2775_vm2, %v588_v51, %v592_v52  ;;  %v632_v4 = vunpack.c.l.b16 %v607_v61  ;;  %v1015_v51 = vrot.slane %v1013_v35, 4  ;;  %v2462_v61 = vld [vmem:[%s2740_s11 + $0x14] sm:$0x1] }
  0x3f   : > { %v631_v3 = vunpack.c.l.b16 %v593_v60  ;;  %v2605_v14 = vld [vmem:[%s3143_s1 + $0x1c0] sm:$0xff]  ;;  %v2460_v60 = vld [vmem:[%s2740_s11 + $0xc] sm:$0x1] }
  0x40   : > { %453 = vmatpush.bf16.msrb.mxu1 %v2531_v62  ;;  %964 = vmatpush.bf16.msrb.mxu0 %v2575_v63  ;;  %v2584_v62 = vld [vmem:[%s3143_s1 + $0x158] sm:$0xff]  ;;  %v2017_v63 = vld [vmem:[%s2740_s11 + $0x10] sm:$0xf] }
  0x41   : > { %1345 = vmatpush.bf16.msrb.mxu2 %v2595_v11  ;;  %v636_v8 = vpack.c.b16 %v632_v4, %v631_v3  ;;  %v2146_v11 = vor.u32 %v2560_v10, %v2145_v9  ;;  %v1552_v10 = vshll.u32 %v2462_v61, 16 }
  0x42   : > { %1480 = vmatpush.bf16.msrb.mxu3 %v2607_v56 }
  0x44   : > { %454 = vmatpush.bf16.msrb.mxu1 %v2530_v6  ;;  %965 = vmatpush.bf16.msrb.mxu0 %v2574_v7  ;;  %v2018_v6 = vor.u32 %v2526_v0, %v2017_v63  ;;  %v2210_v7 = vor.u32 %v2570_v2, %v2209_v1 }
  0x45   : > { %1346 = vmatpush.bf16.msrb.mxu2 %v2594_v48  ;;  %v2345_v48 = vld [vmem:[%s2740_s11 + $0x18] sm:$0xf] }
  0x46   : > { %1481 = vmatpush.bf16.msrb.mxu3 %v2606_v59  ;;  %v1548_v59 = vrot.slane %v1546_v43, 5  ;;  %v1559_v43 = vrot.slane %v1557_v28, 4 }
  0x48   : > { %455 = vmatpush.bf16.msrb.mxu1 %v2529_v15  ;;  %966 = vmatpush.bf16.msrb.mxu0 %v2573_v21  ;;  %v2581_v15 = vld [vmem:[%s3143_s1 + $0x140] sm:$0xff] }
  0x49   : > { %1347 = vmatpush.bf16.msrb.mxu2 %v2593_v55  ;;  %v2571_v21 = vld [vmem:[%s2740_s11 + $0xfc] sm:$0xf0] }
  0x4a   : > { %1482 = vmatpush.bf16.msrb.mxu3 %v2605_v14  ;;  %v2590_v55 = vld [vmem:[%s2740_s11 + $0x1c] sm:$0xf0]  ;;  %v2257_v14 = vld [vmem:[%s2740_s11 + $0xa8] sm:$0xf] }
  0x4b   : > { %456 = vmatmul.bf16.vlgmr.msrb.gmra.mxu1 %v2014_v36  ;;  %967 = vmatmul.bf16.vlgmr.msrb.gmra.mxu0 %v2206_v37  ;;  %v1016_v36 = vshll.u32 %v2251_v31, 16  ;;  %v1027_v37 = vshrl.u32 %v2253_v32, 16  ;;  %v2346_v2 = vor.u32 %v2590_v55, %v2345_v48  ;;  %v1058_v27 = vshll.u32 %v2257_v14, 16 }
  0x4c   : > { %1205 = vmatpush.bf16.msra.mxu1 %v2588_v20  ;;  %1721 = vmatpush.bf16.msra.mxu0 %v2620_v23  ;;  %v2213_v20 = vld [vmem:[%s2740_s11 + $0xf8] sm:$0xf]  ;;  %v1574_v31 = vshll.u32 %v2465_v19, 16 }
  0x4d   : > { %842 = vmatmul.bf16.gmra.mxu3 %v2142_v49  ;;  %2652 = vmatpush.bf16.msra.mxu2 %v2620_v23  ;;  %v2589_v23 = vld [vmem:[%s2740_s11 + $0xc] sm:$0xf0]  ;;  %v2214_v25 = vor.u32 %v2571_v21, %v2213_v20  ;;  %v2252_v49 = vld [vmem:[%s2740_s11 + $0x94] sm:$0x1]  ;;  %v1018_v52 = vrot.slane %v1016_v36, 5  ;;  %v1029_v53 = vrot.slane %v1027_v37, 4 }
  0x4e   : > { %707 = vmatmul.bf16.gmra.mxu2 %v635_v38  ;;  %v2342_v26 = vor.u32 %v2589_v23, %v2341_v22  ;;  %v1030_v38 = vshll.u32 %v2253_v32, 16  ;;  %v1022_v63 = vshll.u32 %v2252_v49, 16  ;;  %v1554_v23 = vrot.slane %v1552_v10, 5  ;;  %v2256_v36 = vld [vmem:[%s2740_s11 + $0xa4] sm:$0x1] }
  0x4f   : > { %v1019_v3 = vor.u32 %v1018_v52, %v1015_v51  ;;  %v2464_v51 = vld [vmem:[%s2740_s11 + $0x1c] sm:$0x1]  ;;  %v2466_v52 = vld [vmem:[%s2740_s11 + $0x24] sm:$0x1] }
  0x50   : > { %1206 = vmatpush.bf16.msra.mxu1 %v2587_v33  ;;  %1722 = vmatpush.bf16.msra.mxu0 %v2619_v42  ;;  %v2459_v33 = vld [vmem:[%s2740_s11 + $0x8] sm:$0xf]  ;;  %v1032_v54 = vrot.slane %v1030_v38, 5 }
  0x51   : > { %2653 = vmatpush.bf16.msra.mxu2 %v2619_v42  ;;  %v1529_v40 = vshrl.u32 %v2459_v33, 16  ;;  %v1532_v41 = vshll.u32 %v2459_v33, 16  ;;  %v1543_v42 = vshrl.u32 %v2461_v34, 16 }
  0x52   : > { %v1033_v4 = vor.u32 %v1032_v54, %v1029_v53  ;;  %v2349_v53 = vld [vmem:[%s2740_s11 + $0x28] sm:$0xf]  ;;  %v2591_v54 = vld [vmem:[%s2740_s11 + $0x2c] sm:$0xf0] }
  0x53   : > { %v1531_v56 = vrot.slane %v1529_v40, 4 }
  0x54   : > { %1207 = vmatpush.bf16.msra.mxu1 %v2586_v47  ;;  %1723 = vmatpush.bf16.msra.mxu0 %v2618_v50  ;;  %v2572_v47 = vld [vmem:[%s2740_s11 + $0x10c] sm:$0xf0] }
  0x55   : > { %2654 = vmatpush.bf16.msra.mxu2 %v2618_v50  ;;  %v2254_v50 = vld [vmem:[%s2740_s11 + $0x9c] sm:$0x1]  ;;  %v2218_v1 = vor.u32 %v2572_v47, %v2217_v46  ;;  %v1576_v46 = vrot.slane %v1574_v31, 5 }
  0x56   : > { %v1036_v0 = vshll.u32 %v2254_v50, 16 }
  0x58   : > { %1208 = vmatpush.bf16.msra.mxu1 %v2585_v57  ;;  %1724 = vmatpush.bf16.msra.mxu0 %v2617_v58  ;;  %v1534_v57 = vrot.slane %v1532_v41, 5  ;;  %v1060_v41 = vrot.slane %v1058_v27, 5 }
  0x59   : > { %2655 = vmatpush.bf16.msra.mxu2 %v2617_v58  ;;  %v1545_v58 = vrot.slane %v1543_v42, 4  ;;  %v2258_v42 = vld [vmem:[%s2740_s11 + $0xac] sm:$0x1] }
  0x5b   : > { %461 = vmatmul.bf16.gmra.mxu1 %v2018_v6  ;;  %972 = vmatmul.bf16.gmra.mxu0 %v2210_v7  ;;  %v2602_v6 = vld [vmem:[%s2740_s11 + $0x64] sm:$0xf0]  ;;  %v1535_v7 = vor.u32 %v1534_v57, %v1531_v56  ;;  %v1549_v9 = vor.u32 %v1548_v59, %v1545_v58  ;;  %v1050_v56 = vshll.u32 %v2256_v36, 16  ;;  %v1064_v58 = vshll.u32 %v2258_v42, 16  ;;  %v2260_v42 = vld [vmem:[%s2740_s11 + $0xb4] sm:$0x1] }
  0x5c   : > { %1209 = vmatpush.bf16.msra.mxu1 %v2584_v62  ;;  %1725 = vmatpush.bf16.msra.mxu0 %v2616_v13  ;;  %v2026_v62 = vor.u32 %v2528_v45, %v2025_v44 }
  0x5d   : > { %847 = vmatmul.bf16.gmra.mxu3 %v2146_v11  ;;  %2656 = vmatpush.bf16.msra.mxu2 %v2616_v13  ;;  %v1024_v11 = vrot.slane %v1022_v63, 5  ;;  %v2255_v13 = vld [vmem:[%s2740_s11 + $0xa0] sm:$0xf]  ;;  %v1536_v20 = vrot.slane %v1535_v7, 4  ;;  %v1550_v22 = vrot.slane %v1549_v9, 4  ;;  %v1066_v7 = vrot.slane %v1064_v58, 5 }
  0x5e   : > { %712 = vmatmul.bf16.gmra.mxu2 %v636_v8  ;;  %v1538_v8 = vshll.u32 %v2460_v60, 16  ;;  %v1566_v60 = vshll.u32 %v2464_v51, 16  ;;  %v2353_v51 = vld [vmem:[%s2740_s11 + $0x38] sm:$0xf]  ;;  %v2472_v58 = vld [vmem:[%s2740_s11 + $0x3c] sm:$0x1] }
  0x5f   : > { %v1555_v35 = vsel %vm2775_vm2, %v1550_v22, %v1554_v23 }
  0x60   : > { %1210 = vmatpush.bf16.msra.mxu1 %v2583_v5  ;;  %1726 = vmatpush.bf16.msra.mxu0 %v2615_v16  ;;  %v2417_v5 = vld [vmem:[%s2740_s11 + $0x60] sm:$0xf]  ;;  %v1540_v21 = vrot.slane %v1538_v8, 5  ;;  %v1658_v50 = vunpack.c.l.b16 %v1555_v35  ;;  %v1568_v9 = vrot.slane %v1566_v60, 5 }
  0x61   : > { %2657 = vmatpush.bf16.msra.mxu2 %v2615_v16  ;;  %v1034_v16 = vrot.slane %v1033_v4, 4 }
  0x62   : > { %v1541_v34 = vsel %vm2775_vm2, %v1536_v20, %v1540_v21  ;;  %v2471_v21 = vld [vmem:[%s2740_s11 + $0x38] sm:$0xf] }
  0x63   : > { %v1657_v49 = vunpack.c.l.b16 %v1541_v34  ;;  %v1616_v34 = vshll.u32 %v2471_v21, 16 }
  0x64   : > { %1211 = vmatpush.bf16.msra.mxu1 %v2582_v12  ;;  %1727 = vmatpush.bf16.msra.mxu0 %v2614_v17  ;;  %v1038_v12 = vrot.slane %v1036_v0, 5 }
  0x65   : > { %2658 = vmatpush.bf16.msra.mxu2 %v2614_v17  ;;  %v2418_v17 = vor.u32 %v2602_v6, %v2417_v5  ;;  %v1665_v0 = vpack.c.b16 %v1658_v50, %v1657_v49  ;;  %v1052_v5 = vrot.slane %v1050_v56, 5  ;;  %v2592_v56 = vld [vmem:[%s2740_s11 + $0x3c] sm:$0xf0] }
  0x66   : > { %v1039_v33 = vsel %vm2775_vm2, %v1034_v16, %v1038_v12  ;;  %v2259_v12 = vld [vmem:[%s2740_s11 + $0xb0] sm:$0xf] }
  0x67   : > { %v1142_v48 = vunpack.c.l.b16 %v1039_v33  ;;  %v2469_v16 = vld [vmem:[%s2740_s11 + $0x30] sm:$0xf]  ;;  %v1072_v20 = vshll.u32 %v2259_v12, 16  ;;  %v1613_v33 = vshrl.u32 %v2471_v21, 16 }
  0x68   : > { %1212 = vmatpush.bf16.msra.mxu1 %v2581_v15  ;;  %1728 = vmatpush.bf16.msra.mxu0 %v2613_v30  ;;  %v1020_v15 = vrot.slane %v1019_v3, 4  ;;  %v2603_v3 = vld [vmem:[%s2740_s11 + $0x74] sm:$0xf0] }
  0x69   : > { %2659 = vmatpush.bf16.msra.mxu2 %v2613_v30  ;;  %v1571_v30 = vshrl.u32 %v2465_v19, 16  ;;  %v1069_v19 = vshrl.u32 %v2259_v12, 16  ;;  %v1074_v36 = vrot.slane %v1072_v20, 5 }
  0x6a   : > { %v1025_v32 = vsel %vm2775_vm2, %v1020_v15, %v1024_v11  ;;  %v2467_v15 = vld [vmem:[%s2740_s11 + $0x28] sm:$0xf] }
  0x6b   : > { %466 = vmatmul.bf16.gmra.mxu1 %v2022_v24  ;;  %977 = vmatmul.bf16.gmra.mxu0 %v2214_v25  ;;  %v1041_v24 = vshrl.u32 %v2255_v13, 16  ;;  %v1044_v25 = vshll.u32 %v2255_v13, 16  ;;  %v1573_v45 = vrot.slane %v1571_v30, 4  ;;  %v1141_v47 = vunpack.c.l.b16 %v1025_v32 }
  0x6c   : > { %v1585_v27 = vshrl.u32 %v2467_v15, 16  ;;  %v1588_v28 = vshll.u32 %v2467_v15, 16  ;;  %v1602_v30 = vshll.u32 %v2469_v16, 16  ;;  %v1071_v35 = vrot.slane %v1069_v19, 4 }
  0x6d   : > { %1483 = vmatmul.bf16.vlgmr.msrb.gmra.mxu3 %v2414_v29  ;;  %v1560_v29 = vshll.u32 %v2463_v18, 16  ;;  %v1043_v37 = vrot.slane %v1041_v24, 4  ;;  %v1046_v38 = vrot.slane %v1044_v25, 5  ;;  %v1577_v61 = vor.u32 %v1576_v46, %v1573_v45  ;;  %v2468_v46 = vld [vmem:[%s2740_s11 + $0x2c] sm:$0x1] }
  0x6e   : > { %1348 = vmatmul.bf16.vlgmr.msrb.gmra.mxu2 %v2342_v26  ;;  %v1055_v26 = vshrl.u32 %v2257_v14, 16  ;;  %v1149_v63 = vpack.c.b16 %v1142_v48, %v1141_v47  ;;  %v2261_v14 = vld [vmem:[%s2740_s11 + $0xb8] sm:$0xf]  ;;  %v1587_v47 = vrot.slane %v1585_v27, 4  ;;  %v1590_v48 = vrot.slane %v1588_v28, 5 }
  0x6f   : > { %v1562_v44 = vrot.slane %v1560_v29, 5  ;;  %v1047_v55 = vor.u32 %v1046_v38, %v1043_v37  ;;  %v1578_v10 = vrot.slane %v1577_v61, 4  ;;  %v1083_v24 = vshrl.u32 %v2261_v14, 16  ;;  %v2265_v27 = vld [vmem:[%s2740_s11 + $0xc8] sm:$0xf] }
  0x70   : > { %v1057_v40 = vrot.slane %v1055_v26, 4  ;;  %v1086_v25 = vshll.u32 %v2261_v14, 16  ;;  %v2473_v26 = vld [vmem:[%s2740_s11 + $0x40] sm:$0xf]  ;;  %v1599_v29 = vshrl.u32 %v2469_v16, 16  ;;  %v1604_v50 = vrot.slane %v1602_v30, 5 }
  0x71   : > { %v1563_v59 = vor.u32 %v1562_v44, %v1559_v43  ;;  %v1048_v4 = vrot.slane %v1047_v55, 4  ;;  %v1627_v37 = vshrl.u32 %v2473_v26, 16  ;;  %v1630_v38 = vshll.u32 %v2473_v26, 16  ;;  %v2262_v43 = vld [vmem:[%s2740_s11 + $0xbc] sm:$0x1] }
  0x72   : > { %v1061_v57 = vor.u32 %v1060_v41, %v1057_v40  ;;  %v1085_v44 = vrot.slane %v1083_v24, 4  ;;  %v1088_v45 = vrot.slane %v1086_v25, 5  ;;  %v1601_v49 = vrot.slane %v1599_v29, 4  ;;  %v2263_v24 = vld [vmem:[%s2740_s11 + $0xc0] sm:$0xf] }
  0x73   : > { %v1564_v8 = vrot.slane %v1563_v59, 4  ;;  %v1629_v59 = vrot.slane %v1627_v37, 4  ;;  %v1632_v60 = vrot.slane %v1630_v38, 5  ;;  %v1078_v61 = vshll.u32 %v2260_v42, 16 }
  0x74   : > { %v1062_v6 = vrot.slane %v1061_v57, 4  ;;  %v1075_v57 = vor.u32 %v1074_v36, %v1071_v35  ;;  %v1111_v35 = vshrl.u32 %v2265_v27, 16  ;;  %v1114_v36 = vshll.u32 %v2265_v27, 16 }
  0x75   : > { %v1569_v22 = vsel %vm2775_vm2, %v1564_v8, %v1568_v9  ;;  %v2604_v8 = vld [vmem:[%s2740_s11 + $0x84] sm:$0xf0]  ;;  %v1633_v12 = vor.u32 %v1632_v60, %v1629_v59  ;;  %v1080_v14 = vrot.slane %v1078_v61, 5 }
  0x76   : > { %v1067_v18 = vsel %vm2775_vm2, %v1062_v6, %v1066_v7  ;;  %v1659_v40 = vunpack.c.l.b16 %v1569_v22  ;;  %v2354_v6 = vor.u32 %v2592_v56, %v2353_v51  ;;  %v2425_v7 = vld [vmem:[%s2740_s11 + $0x80] sm:$0xf] }
  0x77   : > { %v1144_v32 = vunpack.c.l.b16 %v1067_v18  ;;  %v2426_v18 = vor.u32 %v2604_v8, %v2425_v7  ;;  %v1634_v25 = vrot.slane %v1633_v12, 4 }
  0x7b   : > { %471 = vmatmul.bf16.gmra.mxu1 %v2026_v62  ;;  %982 = vmatmul.bf16.gmra.mxu0 %v2218_v1  ;;  %v1580_v62 = vshll.u32 %v2466_v52, 16  ;;  %v2350_v1 = vor.u32 %v2591_v54, %v2349_v53  ;;  %v2470_v52 = vld [vmem:[%s2740_s11 + $0x34] sm:$0x1]  ;;  %v1615_v53 = vrot.slane %v1613_v33, 4  ;;  %v1618_v54 = vrot.slane %v1616_v34, 5 }
  0x7c   : > { %v1100_v34 = vshll.u32 %v2263_v24, 16 }
  0x7d   : > { %1488 = vmatmul.bf16.gmra.mxu3 %v2418_v17  ;;  %v1582_v11 = vrot.slane %v1580_v62, 5  ;;  %v1053_v17 = vsel %vm2775_vm2, %v1048_v4, %v1052_v5  ;;  %v1089_v62 = vor.u32 %v1088_v45, %v1085_v44  ;;  %v1605_v4 = vor.u32 %v1604_v50, %v1601_v49  ;;  %v2266_v50 = vld [vmem:[%s2740_s11 + $0xcc] sm:$0x1] }
  0x7e   : > { %1353 = vmatmul.bf16.gmra.mxu2 %v2346_v2  ;;  %v2421_v2 = vld [vmem:[%s2740_s11 + $0x70] sm:$0xf]  ;;  %v1143_v31 = vunpack.c.l.b16 %v1053_v17  ;;  %v1608_v5 = vshll.u32 %v2470_v52, 16  ;;  %v1619_v9 = vor.u32 %v1618_v54, %v1615_v53  ;;  %v1116_v49 = vrot.slane %v1114_v36, 5 }
  0x7f   : > { %v2422_v13 = vor.u32 %v2603_v3, %v2421_v2  ;;  %v1583_v23 = vsel %vm2775_vm2, %v1578_v10, %v1582_v11  ;;  %v1591_v3 = vor.u32 %v1590_v48, %v1587_v47  ;;  %v1622_v10 = vshll.u32 %v2472_v58, 16 }
  0x80   : > { %v1660_v41 = vunpack.c.l.b16 %v1583_v23  ;;  %v1150_v55 = vpack.c.b16 %v1144_v32, %v1143_v31  ;;  %v1076_v11 = vrot.slane %v1075_v57, 4  ;;  %v1090_v15 = vrot.slane %v1089_v62, 4 }
  0x81   : > { %v1592_v19 = vrot.slane %v1591_v3, 4  ;;  %v1606_v20 = vrot.slane %v1605_v4, 4  ;;  %v1610_v21 = vrot.slane %v1608_v5, 5  ;;  %v1620_v22 = vrot.slane %v1619_v9, 4 }
  0x82   : > { %v1666_v2 = vpack.c.b16 %v1660_v41, %v1659_v40  ;;  %v1624_v23 = vrot.slane %v1622_v10, 5  ;;  %v1081_v28 = vsel %vm2775_vm2, %v1076_v11, %v1080_v14  ;;  %v1097_v32 = vshrl.u32 %v2263_v24, 16 }
  0x83   : > { %v1611_v31 = vsel %vm2775_vm2, %v1606_v20, %v1610_v21  ;;  %v1145_v38 = vunpack.c.l.b16 %v1081_v28  ;;  %v1102_v47 = vrot.slane %v1100_v34, 5  ;;  %v1113_v48 = vrot.slane %v1111_v35, 4 }
  0x84   : > { %v1625_v33 = vsel %vm2775_vm2, %v1620_v22, %v1624_v23  ;;  %v1662_v42 = vunpack.c.l.b16 %v1611_v31  ;;  %v1099_v44 = vrot.slane %v1097_v32, 4  ;;  %v1120_v59 = vshll.u32 %v2266_v50, 16 }
  0x85   : > { %v1117_v58 = vor.u32 %v1116_v49, %v1113_v48 }
  0x86   : > { %v1103_v57 = vor.u32 %v1102_v47, %v1099_v44 }
  0x87   : > { %v1118_v62 = vrot.slane %v1117_v58, 4 }
  0x88   : > { %v1104_v60 = vrot.slane %v1103_v57, 4 }
  0x8b   : > { %1213 = vmatmul.bf16.vlgmr.msra.gmra.mxu1 %v1149_v63  ;;  %1729 = vmatmul.bf16.vlgmr.msra.gmra.mxu0 %v1665_v0  ;;  %v1092_v63 = vshll.u32 %v2262_v43, 16  ;;  %v1594_v0 = vshll.u32 %v2468_v46, 16  ;;  %v1663_v43 = vunpack.c.l.b16 %v1625_v33  ;;  %v2264_v46 = vld [vmem:[%s2740_s11 + $0xc4] sm:$0x1] }
  0x8c   : > { %v1106_v53 = vshll.u32 %v2264_v46, 16 }
  0x8d   : > { %1493 = vmatmul.bf16.gmra.mxu3 %v2422_v13  ;;  %v1094_v16 = vrot.slane %v1092_v63, 5  ;;  %v1596_v17 = vrot.slane %v1594_v0, 5  ;;  %v1122_v63 = vrot.slane %v1120_v59, 5 }
  0x8e   : > { %1358 = vmatmul.bf16.gmra.mxu2 %v2350_v1  ;;  %v2474_v1 = vld [vmem:[%s2740_s11 + $0x44] sm:$0x1]  ;;  %v1108_v61 = vrot.slane %v1106_v53, 5  ;;  %s1935_s11 = sshll.u32 %s2708_s16, 3  ;;  %s3154_s16 = smov (!%p217_p5, %s2708_s16), 1 }
  0x8f   : > { %v1636_v13 = vshll.u32 %v2474_v1, 16  ;;  %v1095_v29 = vsel %vm2775_vm2, %v1090_v15, %v1094_v16  ;;  %v1597_v30 = vsel %vm2775_vm2, %v1592_v19, %v1596_v17  ;;  %v1123_v4 = vsel %vm2775_vm2, %v1118_v62, %v1122_v63  ;;  %p212_p4 = scmp.lt.s32.totalorder %s1935_s11, 15  ;;  %s1937_s5 = sshll.u32 %s3154_s16, 3 }
  0x90   : > { %v1146_v40 = vunpack.c.l.b16 %v1095_v29  ;;  %v1661_v41 = vunpack.c.l.b16 %v1597_v30  ;;  %v1109_v3 = vsel %vm2775_vm2, %v1104_v60, %v1108_v61  ;;  %v1148_v7 = vunpack.c.l.b16 %v1123_v4  ;;  %s220_s8 = scalar_lea.vmem %s3145_s3, %s1937_s5  ;;  %s224_s12 = scalar_lea.vmem %s3146_s4, %s1937_s5 }
  0x91   : > { %v1638_v26 = vrot.slane %v1636_v13, 5  ;;  %s3152_s11 = smov (!%p212_p4, %s1935_s11), 15 }
  0x92   : > { %v1151_v51 = vpack.c.b16 %v1146_v40, %v1145_v38  ;;  %v1667_v52 = vpack.c.b16 %v1662_v42, %v1661_v41  ;;  %s1936_s27 = sshll.u32 %s3152_s11, 2 }
  0x93   : > { %v1639_v37 = vsel %vm2775_vm2, %v1634_v25, %v1638_v26  ;;  %s3113_s30 = scalar_lea.vmem %s3144_s2, %s1936_s27 }
  0x94   : > { %v1664_v45 = vunpack.c.l.b16 %v1639_v37 }
  0x96   : > { %v1668_v56 = vpack.c.b16 %v1664_v45, %v1663_v43 }
  0x9b   : > { %1218 = vmatmul.bf16.gmra.mxu1 %v1150_v55  ;;  %1734 = vmatmul.bf16.gmra.mxu0 %v1666_v2 }
  0x9d   : > { %1498 = vmatmul.bf16.gmra.mxu3 %v2426_v18 }
  0x9e   : > { %1363 = vmatmul.bf16.gmra.mxu2 %v2354_v6  ;;  %v1147_v6 = vunpack.c.l.b16 %v1109_v3 }
  0xa0   : > { %v1152_v8 = vpack.c.b16 %v1148_v7, %v1147_v6 }
  0xa8   : > { %v366_v54 = vpop.f32.mrf.mxu1  ;;  %v356_v55 = vpop.f32.mrf.mxu0 }
  0xab   : > { %1223 = vmatmul.bf16.gmra.mxu1 %v1151_v51  ;;  %1739 = vmatmul.bf16.gmra.mxu0 %v1667_v52 }
  0xae   : > { %1744 = vmatmul.bf16.vlgmr.msra.gmra.mxu2 %v1668_v56 }
  0xb0   : > { %v368_v1 = vpop.f32.mrf.mxu1  ;;  %v358_v2 = vpop.f32.mrf.mxu0 }
  0xb1   : > { %v698_v0 = vpop.f32.mrf.mxu2  ;;  %v833_v5 = vpop.f32.mrf.mxu3 }
  0xb8   : > { %v371_v10 = vpop.f32.mrf.mxu1  ;;  %v361_v11 = vpop.f32.mrf.mxu0 }
  0xb9   : > { %v700_v9 = vpop.f32.mrf.mxu2  ;;  %v3082_v12 = vpop.f32.mrf.mxu3 }
  0xbb   : > { %1228 = vmatmul.bf16.gmra.mxu1 %v1152_v8 }
  0xc0   : > { %v373_v14 = vpop.f32.mrf.mxu1  ;;  %v363_v15 = vpop.f32.mrf.mxu0 }
  0xc1   : > { %v703_v13 = vpop.f32.mrf.mxu2  ;;  %v838_v16 = vpop.f32.mrf.mxu3 }
  0xc8   : > { %v457_v18 = vpop.f32.mrf.mxu1  ;;  %v968_v19 = vpop.f32.mrf.mxu0 }
  0xc9   : > { %v705_v17 = vpop.f32.mrf.mxu2  ;;  %v458_v20 = vadd.f32 %v457_v18, %v356_v55  ;;  %v3084_v21 = vpop.f32.mrf.mxu3 }
  0xcb   : > { %v718_v39 = vadd.f32 %v698_v0, %v458_v20 }
  0xcd   : > { %v853_v22 = vadd.f32 %v833_v5, %v718_v39 }
  0xcf   : > { %v988_v23 = vadd.f32 %v968_v19, %v853_v22 }
  0xd0   : > { %v459_v25 = vpop.f32.mrf.mxu1  ;;  %v970_v26 = vpop.f32.mrf.mxu0 }
  0xd1   : > { %v708_v24 = vpop.f32.mrf.mxu2  ;;  %v460_v27 = vadd.f32 %v459_v25, %v358_v2  ;;  %v843_v29 = vpop.f32.mrf.mxu3 }
  0xd3   : > { %v719_v28 = vadd.f32 %v700_v9, %v460_v27 }
  0xd8   : > { %v462_v31 = vpop.f32.mrf.mxu1  ;;  %v973_v32 = vpop.f32.mrf.mxu0 }
  0xd9   : > { %v710_v30 = vpop.f32.mrf.mxu2  ;;  %v463_v33 = vadd.f32 %v462_v31, %v361_v11  ;;  %v3086_v38 = vpop.f32.mrf.mxu3  ;;  %v854_v11 = vadd.f32 %v3082_v12, %v719_v28 }
  0xdb   : > { %v720_v34 = vadd.f32 %v703_v13, %v463_v33 }
  0xdd   : > { %v855_v35 = vadd.f32 %v838_v16, %v720_v34 }
  0xdf   : > { %v990_v36 = vadd.f32 %v973_v32, %v855_v35 }
  0xe0   : > { %v464_v40 = vpop.f32.mrf.mxu1  ;;  %v3088_v41 = vpop.f32.mrf.mxu0 }
  0xe1   : > { %v713_v37 = vpop.f32.mrf.mxu2  ;;  %v465_v42 = vadd.f32 %v464_v40, %v363_v15  ;;  %v3090_v48 = vpop.f32.mrf.mxu3 }
  0xe3   : > { %v721_v43 = vadd.f32 %v705_v17, %v465_v42 }
  0xe8   : > { %v467_v45 = vpop.f32.mrf.mxu1  ;;  %v978_v46 = vpop.f32.mrf.mxu0 }
  0xe9   : > { %v715_v44 = vpop.f32.mrf.mxu2  ;;  %v468_v47 = vadd.f32 %v467_v45, %v366_v54  ;;  %v3098_v58 = vpop.f32.mrf.mxu3 }
  0xeb   : > { %v722_v49 = vadd.f32 %v708_v24, %v468_v47 }
  0xed   : > { %v857_v50 = vadd.f32 %v843_v29, %v722_v49 }
  0xef   : > { %v3092_v51 = vadd.f32 %v978_v46, %v857_v50 }
  0xf0   : > { %v469_v53 = vpop.f32.mrf.mxu1  ;;  %v3094_v55 = vpop.f32.mrf.mxu0 }
  0xf1   : > { %v1349_v52 = vpop.f32.mrf.mxu2  ;;  %v470_v56 = vadd.f32 %v469_v53, %v368_v1  ;;  %v1484_v63 = vpop.f32.mrf.mxu3 }
  0xf3   : > { %v3096_v57 = vadd.f32 %v710_v30, %v470_v56  ;;  %v856_v30 = vadd.f32 %v3084_v21, %v721_v43 }
  0xf8   : > { %v472_v60 = vpop.f32.mrf.mxu1  ;;  %v3100_v61 = vpop.f32.mrf.mxu0 }
  0xf9   : > { %v1351_v59 = vpop.f32.mrf.mxu2  ;;  %v473_v54 = vadd.f32 %v472_v60, %v371_v10  ;;  %v1486_v1 = vpop.f32.mrf.mxu3  ;;  %v989_v10 = vadd.f32 %v970_v26, %v854_v11 }
  0xfb   : > { %v3102_v62 = vadd.f32 %v713_v37, %v473_v54  ;;  %v991_v37 = vadd.f32 %v3088_v41, %v856_v30 }
 0x100   : > { %v474_v2 = vpop.f32.mrf.mxu1  ;;  %v3104_v3 = vpop.f32.mrf.mxu0 }
 0x101   : > { %v1354_v0 = vpop.f32.mrf.mxu2  ;;  %v475_v4 = vadd.f32 %v474_v2, %v373_v14  ;;  %v1489_v19 = vpop.f32.mrf.mxu3 }
 0x103   : > { %v3106_v5 = vadd.f32 %v715_v44, %v475_v4 }
 0x108   : > { %v1214_v6 = vpop.f32.mrf.mxu1  ;;  %v1730_v7 = vpop.f32.mrf.mxu0 }
 0x109   : > { %v1234_v8 = vadd.f32 %v1214_v6, %v988_v23  ;;  %v1356_v9 = vpop.f32.mrf.mxu2  ;;  %v1491_v33 = vpop.f32.mrf.mxu3 }
 0x10b   : > { %v1369_v13 = vadd.f32 %v1349_v52, %v1234_v8 }
 0x10d   : > { %v1504_v15 = vadd.f32 %v1484_v63, %v1369_v13  ;;  %v858_v63 = vadd.f32 %v3086_v38, %v3096_v57 }
 0x10f   : > { %v1750_v20 = vadd.f32 %v1730_v7, %v1504_v15 }
 0x110   : > { %v1216_v16 = vpop.f32.mrf.mxu1  ;;  %v1732_v17 = vpop.f32.mrf.mxu0 }
 0x111   : > { %v1235_v18 = vadd.f32 %v1216_v16, %v989_v10  ;;  %v1359_v39 = vpop.f32.mrf.mxu2  ;;  %v1787_v23 = vmul.f32 %v1750_v20, %v1750_v20  ;;  %v1494_v52 = vpop.f32.mrf.mxu3 }
 0x113   : > { %v1370_v14 = vadd.f32 %v1351_v59, %v1235_v18 }
 0x115   : > { %v1505_v22 = vadd.f32 %v1486_v1, %v1370_v14  ;;  %v993_v1 = vadd.f32 %v3094_v55, %v858_v63 }
 0x117   : > { %v1751_v24 = vadd.f32 %v1732_v17, %v1505_v22 }
 0x118   : > { %v1219_v12 = vpop.f32.mrf.mxu1  ;;  %v1735_v25 = vpop.f32.mrf.mxu0 }
 0x119   : > { %v2624_v26 = vpack.c.bf16 %v1751_v24, %v1750_v20  ;;  %v1774_v27 = vadd.f32 %v1751_v24, %v1750_v20  ;;  %v1788_v28 = vmul.f32 %v1751_v24, %v1751_v24  ;;  %v1236_v29 = vadd.f32 %v1219_v12, %v990_v36  ;;  %v1361_v35 = vpop.f32.mrf.mxu2  ;;  %v1496_v7 = vpop.f32.mrf.mxu3 }
 0x11a   : > { %v860_v24 = vadd.f32 %v3098_v58, %v3106_v5 }
 0x11b   : > { %2625 = vst [vmem:[%s3113_s30] sm:$0xff] %v2624_v26   ;;  %v1795_v31 = vadd.f32 %v1788_v28, %v1787_v23  ;;  %v1371_v32 = vadd.f32 %v1354_v0, %v1236_v29 }
 0x11d   : > { %v1506_v34 = vadd.f32 %v1489_v19, %v1371_v32 }
 0x11f   : > { %v1752_v40 = vadd.f32 %v1735_v25, %v1506_v34  ;;  %v995_v25 = vadd.f32 %v3104_v3, %v860_v24 }
 0x120   : > { %v1221_v42 = vpop.f32.mrf.mxu1  ;;  %v1737_v44 = vpop.f32.mrf.mxu0 }
 0x121   : > { %v1775_v45 = vadd.f32 %v1774_v27, %v1752_v40  ;;  %v1789_v46 = vmul.f32 %v1752_v40, %v1752_v40  ;;  %v1237_v47 = vadd.f32 %v1221_v42, %v991_v37  ;;  %v1364_v43 = vpop.f32.mrf.mxu2  ;;  %v1499_v22 = vpop.f32.mrf.mxu3 }
 0x123   : > { %v1796_v49 = vadd.f32 %v1795_v31, %v1789_v46  ;;  %v1372_v50 = vadd.f32 %v1356_v9, %v1237_v47 }
 0x125   : > { %v1507_v36 = vadd.f32 %v1491_v33, %v1372_v50 }
 0x127   : > { %v1753_v21 = vadd.f32 %v1737_v44, %v1507_v36 }
 0x128   : > { %v1224_v53 = vpop.f32.mrf.mxu1  ;;  %v1740_v41 = vpop.f32.mrf.mxu0 }
 0x129   : > { %v2629_v56 = vpack.c.bf16 %v1753_v21, %v1752_v40  ;;  %v1776_v59 = vadd.f32 %v1775_v45, %v1753_v21  ;;  %v1790_v60 = vmul.f32 %v1753_v21, %v1753_v21  ;;  %v1238_v54 = vadd.f32 %v1224_v53, %v3092_v51  ;;  %v1366_v10 = vpop.f32.mrf.mxu2  ;;  %v1501_v32 = vpop.f32.mrf.mxu3 }
 0x12a   : > { %v859_v51 = vadd.f32 %v3090_v48, %v3102_v62 }
 0x12b   : > { %2641 = vst [vmem:[%s3113_s30 + $0x8] sm:$0xff] %v2629_v56   ;;  %v1797_v0 = vadd.f32 %v1796_v49, %v1790_v60  ;;  %v1373_v2 = vadd.f32 %v1359_v39, %v1238_v54 }
 0x12c   : > { %v994_v17 = vadd.f32 %v3100_v61, %v859_v51 }
 0x12d   : > { %v1508_v4 = vadd.f32 %v1494_v52, %v1373_v2 }
 0x12f   : > { %v1754_v6 = vadd.f32 %v1740_v41, %v1508_v4 }
 0x130   : > { %v1226_v8 = vpop.f32.mrf.mxu1  ;;  %v1742_v38 = vpop.f32.mrf.mxu0 }
 0x131   : > { %v1777_v9 = vadd.f32 %v1776_v59, %v1754_v6  ;;  %v1791_v11 = vmul.f32 %v1754_v6, %v1754_v6  ;;  %v1239_v13 = vadd.f32 %v1226_v8, %v993_v1  ;;  %v1745_v62 = vpop.f32.mrf.mxu2 }
 0x133   : > { %v1798_v15 = vadd.f32 %v1797_v0, %v1791_v11  ;;  %v1374_v16 = vadd.f32 %v1361_v35, %v1239_v13 }
 0x135   : > { %v1509_v57 = vadd.f32 %v1496_v7, %v1374_v16 }
 0x137   : > { %v1755_v18 = vadd.f32 %v1742_v38, %v1509_v57 }
 0x138   : > { %v1229_v19 = vpop.f32.mrf.mxu1 }
 0x139   : > { %v2634_v55 = vpack.c.bf16 %v1755_v18, %v1754_v6  ;;  %v1778_v14 = vadd.f32 %v1777_v9, %v1755_v18  ;;  %v1792_v20 = vmul.f32 %v1755_v18, %v1755_v18  ;;  %v1240_v39 = vadd.f32 %v1229_v19, %v994_v17  ;;  %v1747_v58 = vpop.f32.mrf.mxu2 }
 0x13b   : > { %2642 = vst [vmem:[%s3113_s30 + $0x10] sm:$0xff] %v2634_v55   ;;  %v1799_v23 = vadd.f32 %v1798_v15, %v1792_v20  ;;  %v1375_v48 = vadd.f32 %v1364_v43, %v1240_v39 }
 0x13d   : > { %v1510_v12 = vadd.f32 %v1499_v22, %v1375_v48 }
 0x13f   : > { %v1756_v61 = vadd.f32 %v1745_v62, %v1510_v12 }
 0x140   : > { %v1231_v26 = vpop.f32.mrf.mxu1 }
 0x141   : > { %v1779_v27 = vadd.f32 %v1778_v14, %v1756_v61  ;;  %v1793_v28 = vmul.f32 %v1756_v61, %v1756_v61  ;;  %v1241_v29 = vadd.f32 %v1231_v26, %v995_v25 }
 0x143   : > { %v1800_v30 = vadd.f32 %v1799_v23, %v1793_v28  ;;  %v1376_v31 = vadd.f32 %v1366_v10, %v1241_v29 }
 0x145   : > { %v1511_v33 = vadd.f32 %v1501_v32, %v1376_v31 }
 0x147   : > { %v1757_v5 = vadd.f32 %v1747_v58, %v1511_v33 }
 0x149   : > { %v2639_v34 = vpack.c.bf16 %v1757_v5, %v1756_v61  ;;  %v1780_v35 = vadd.f32 %v1779_v27, %v1757_v5  ;;  %v1794_v37 = vmul.f32 %v1757_v5, %v1757_v5 }
 0x14b   : > { %2643 = vst [vmem:[%s3113_s30 + $0x18] sm:$0xff] %v2639_v34   ;;  %v1781_v40 = vrot.slane %v1780_v35, 4  ;;  %v1801_v3 = vadd.f32 %v1800_v30, %v1794_v37 }
 0x14d   : > { %v1782_v42 = vadd.f32 %v1781_v40, %v1780_v35  ;;  %v1802_v44 = vrot.slane %v1801_v3, 4 }
 0x14f   : > { %v1783_v45 = vrot.slane %v1782_v42, 2  ;;  %v1803_v46 = vadd.f32 %v1802_v44, %v1801_v3 }
 0x151   : > { %v1784_v47 = vadd.f32 %v1783_v45, %v1782_v42  ;;  %v1804_v49 = vrot.slane %v1803_v46, 2 }
 0x153   : > { %v1785_v50 = vrot.slane %v1784_v47, 1  ;;  %v1805_v36 = vadd.f32 %v1804_v49, %v1803_v46 }
 0x155   : > { %v1786_v52 = vadd.f32 %v1785_v50, %v1784_v47  ;;  %v1806_v21 = vrot.slane %v1805_v36, 1 }
 0x157   : > { %v1807_v43 = vadd.f32 %v1806_v21, %v1805_v36  ;;  %1808 = vst [vmem:[%s220_s8] sm:$0xff] %v1786_v52 }
 0x159   : > { %1809 = vst [vmem:[%s224_s12] sm:$0xff] %v1807_v43 }
 0x15a PF: > { %s15_s15 = sadd.s32 1, %s2675_s15  }
 0x15b   : > { %p12_p6 = scmp.ge.s32.totalorder %s15_s15, 4  }
 0x15d   :  { %14 = sbr.rel (!%p12_p6) target bundleno = 1 (0x1), region = 95 }

// kernel: bottleneck_forward.8
= control target key start
LH: loop header
LB: loop body
LE: loop exit
PB: predicated region body
PF: predicated region fallthrough
CT: control target
= control target key end

     0   :  { %s642_s1 = inlined_call_operand.vmem [shape: bf16[128,128], index: 1, kind: input, shape index: {}]   ;;  %s643_s0 = inlined_call_operand.vmem [shape: bf16[128,128], index: 0, kind: input, shape index: {}]   ;;  %s644_s2 = inlined_call_operand.vmem [shape: bf16[128,128], index: 2, kind: output, shape index: {0}]   ;;  %s645_s3 = inlined_call_operand.vmem [shape: f32[8,128], index: 3, kind: output, shape index: {1}]   ;;  %s646_s4 = inlined_call_operand.vmem [shape: f32[8,128], index: 4, kind: output, shape index: {2}]  }
   0x1   :  { %v461_v0 = vld [vmem:[%s642_s1 + $0x38] sm:$0xff]  ;;  %v460_v1 = vld [vmem:[%s642_s1 + $0x30] sm:$0xff]  ;;  %v459_v2 = vld [vmem:[%s642_s1 + $0x28] sm:$0xff] }
   0x2   :  { %178 = vmatpush.bf16.msra.mxu0 %v461_v0  ;;  %509 = vmatpush.bf16.msra.mxu1 %v461_v0  ;;  %v458_v3 = vld [vmem:[%s642_s1 + $0x20] sm:$0xff]  ;;  %v457_v4 = vld [vmem:[%s642_s1 + $0x18] sm:$0xff]  ;;  %v456_v5 = vld [vmem:[%s642_s1 + $0x10] sm:$0xff] }
   0x3   :  { %510 = vmatpush.bf16.msra.mxu2 %v461_v0  ;;  %511 = vmatpush.bf16.msra.mxu3 %v461_v0  ;;  %v455_v6 = vld [vmem:[%s642_s1 + $0x8] sm:$0xff]  ;;  %v454_v7 = vld [vmem:[%s642_s1] sm:$0xff]  ;;  %v448_v9 = vld [vmem:[%s643_s0 + $0x10] sm:$0xff] }
   0x4   :  { %v446_v8 = vld [vmem:[%s643_s0] sm:$0xff]  ;;  %v452_v11 = vld [vmem:[%s643_s0 + $0x30] sm:$0xff]  ;;  %v447_v12 = vld [vmem:[%s643_s0 + $0x8] sm:$0xff] }
   0x5   :  { %v450_v10 = vld [vmem:[%s643_s0 + $0x20] sm:$0xff]  ;;  %v449_v13 = vld [vmem:[%s643_s0 + $0x18] sm:$0xff]  ;;  %v451_v14 = vld [vmem:[%s643_s0 + $0x28] sm:$0xff] }
   0x6   :  { %179 = vmatpush.bf16.msra.mxu0 %v460_v1  ;;  %512 = vmatpush.bf16.msra.mxu1 %v460_v1  ;;  %v453_v15 = vld [vmem:[%s643_s0 + $0x38] sm:$0xff] }
   0x7   :  { %513 = vmatpush.bf16.msra.mxu2 %v460_v1  ;;  %514 = vmatpush.bf16.msra.mxu3 %v460_v1 }
   0xa   :  { %180 = vmatpush.bf16.msra.mxu0 %v459_v2  ;;  %515 = vmatpush.bf16.msra.mxu1 %v459_v2 }
   0xb   :  { %516 = vmatpush.bf16.msra.mxu2 %v459_v2  ;;  %517 = vmatpush.bf16.msra.mxu3 %v459_v2 }
   0xe   :  { %181 = vmatpush.bf16.msra.mxu0 %v458_v3  ;;  %518 = vmatpush.bf16.msra.mxu1 %v458_v3 }
   0xf   :  { %519 = vmatpush.bf16.msra.mxu2 %v458_v3  ;;  %520 = vmatpush.bf16.msra.mxu3 %v458_v3 }
  0x12   :  { %182 = vmatpush.bf16.msra.mxu0 %v457_v4  ;;  %521 = vmatpush.bf16.msra.mxu1 %v457_v4 }
  0x13   :  { %522 = vmatpush.bf16.msra.mxu2 %v457_v4  ;;  %523 = vmatpush.bf16.msra.mxu3 %v457_v4 }
  0x16   :  { %183 = vmatpush.bf16.msra.mxu0 %v456_v5  ;;  %524 = vmatpush.bf16.msra.mxu1 %v456_v5 }
  0x17   :  { %525 = vmatpush.bf16.msra.mxu2 %v456_v5  ;;  %526 = vmatpush.bf16.msra.mxu3 %v456_v5 }
  0x1a   :  { %184 = vmatpush.bf16.msra.mxu0 %v455_v6  ;;  %527 = vmatpush.bf16.msra.mxu1 %v455_v6 }
  0x1b   :  { %528 = vmatpush.bf16.msra.mxu2 %v455_v6  ;;  %529 = vmatpush.bf16.msra.mxu3 %v455_v6 }
  0x1e   :  { %185 = vmatpush.bf16.msra.mxu0 %v454_v7  ;;  %530 = vmatpush.bf16.msra.mxu1 %v454_v7 }
  0x1f   :  { %531 = vmatpush.bf16.msra.mxu2 %v454_v7  ;;  %532 = vmatpush.bf16.msra.mxu3 %v454_v7 }
  0x21   :  { %186 = vmatmul.bf16.vlgmr.msra.gmra.mxu0 %v446_v8  ;;  %196 = vmatmul.bf16.vlgmr.msra.gmra.mxu1 %v448_v9 }
  0x22   :  { %206 = vmatmul.bf16.vlgmr.msra.gmra.mxu2 %v450_v10  ;;  %216 = vmatmul.bf16.vlgmr.msra.gmra.mxu3 %v452_v11 }
  0x31   :  { %191 = vmatmul.bf16.gmra.mxu0 %v447_v12  ;;  %201 = vmatmul.bf16.gmra.mxu1 %v449_v13 }
  0x32   :  { %211 = vmatmul.bf16.gmra.mxu2 %v451_v14  ;;  %221 = vmatmul.bf16.gmra.mxu3 %v453_v15 }
  0x9e   :  { %v187_v16 = vpop.f32.mrf.mxu0  ;;  %v197_v17 = vpop.f32.mrf.mxu1 }
  0x9f   :  { %v331_v31 = vmul.f32 %v187_v16, %v187_v16  ;;  %v335_v45 = vmul.f32 %v197_v17, %v197_v17 }
  0xa5   :  { %v207_v18 = vpop.f32.mrf.mxu2  ;;  %v606_v19 = vpop.f32.mrf.mxu3 }
  0xa6   :  { %v189_v20 = vpop.f32.mrf.mxu0  ;;  %v199_v21 = vpop.f32.mrf.mxu1  ;;  %v339_v61 = vmul.f32 %v207_v18, %v207_v18  ;;  %v343_v9 = vmul.f32 %v606_v19, %v606_v19 }
  0xa7   :  { %v465_v22 = vpack.c.bf16 %v189_v20, %v187_v16  ;;  %v475_v23 = vpack.c.bf16 %v199_v21, %v197_v17  ;;  %v332_v30 = vmul.f32 %v189_v20, %v189_v20  ;;  %v310_v33 = vadd.f32 %v189_v20, %v187_v16 }
  0xa8   :  { %v336_v48 = vmul.f32 %v199_v21, %v199_v21 }
  0xa9   :  { %466 = vst [vmem:[%s644_s2] sm:$0xff] %v465_v22   ;;  %v347_v34 = vadd.f32 %v332_v30, %v331_v31 }
  0xaa   :  { %503 = vst [vmem:[%s644_s2 + $0x10] sm:$0xff] %v475_v23  }
  0xad   :  { %v209_v24 = vpop.f32.mrf.mxu2  ;;  %v219_v25 = vpop.f32.mrf.mxu3 }
  0xae   :  { %v192_v26 = vpop.f32.mrf.mxu0  ;;  %v202_v27 = vpop.f32.mrf.mxu1  ;;  %v485_v28 = vpack.c.bf16 %v209_v24, %v207_v18  ;;  %v495_v29 = vpack.c.bf16 %v219_v25, %v606_v19  ;;  %v340_v0 = vmul.f32 %v209_v24, %v209_v24  ;;  %v344_v12 = vmul.f32 %v219_v25, %v219_v25 }
  0xaf   :  { %v333_v32 = vmul.f32 %v192_v26, %v192_v26  ;;  %v311_v35 = vadd.f32 %v310_v33, %v192_v26  ;;  %v337_v51 = vmul.f32 %v202_v27, %v202_v27 }
  0xb0   :  { %505 = vst [vmem:[%s644_s2 + $0x20] sm:$0xff] %v485_v28  }
  0xb1   :  { %507 = vst [vmem:[%s644_s2 + $0x30] sm:$0xff] %v495_v29   ;;  %v348_v38 = vadd.f32 %v347_v34, %v333_v32 }
  0xb5   :  { %v212_v36 = vpop.f32.mrf.mxu2  ;;  %v222_v37 = vpop.f32.mrf.mxu3 }
  0xb6   :  { %v194_v39 = vpop.f32.mrf.mxu0  ;;  %v204_v40 = vpop.f32.mrf.mxu1  ;;  %v341_v4 = vmul.f32 %v212_v36, %v212_v36  ;;  %v345_v16 = vmul.f32 %v222_v37, %v222_v37 }
  0xb7   :  { %v470_v41 = vpack.c.bf16 %v194_v39, %v192_v26  ;;  %v312_v42 = vadd.f32 %v311_v35, %v194_v39  ;;  %v334_v43 = vmul.f32 %v194_v39, %v194_v39  ;;  %v480_v44 = vpack.c.bf16 %v204_v40, %v202_v27 }
  0xb8   :  { %v338_v59 = vmul.f32 %v204_v40, %v204_v40 }
  0xb9   :  { %502 = vst [vmem:[%s644_s2 + $0x8] sm:$0xff] %v470_v41   ;;  %v313_v46 = vadd.f32 %v312_v42, %v197_v17  ;;  %v349_v47 = vadd.f32 %v348_v38, %v334_v43 }
  0xba   :  { %504 = vst [vmem:[%s644_s2 + $0x18] sm:$0xff] %v480_v44  }
  0xbb   :  { %v350_v49 = vadd.f32 %v349_v47, %v335_v45  ;;  %v314_v50 = vadd.f32 %v313_v46, %v199_v21 }
  0xbd   :  { %v315_v52 = vadd.f32 %v314_v50, %v202_v27  ;;  %v351_v53 = vadd.f32 %v350_v49, %v336_v48  ;;  %v214_v54 = vpop.f32.mrf.mxu2  ;;  %v224_v55 = vpop.f32.mrf.mxu3 }
  0xbe   :  { %v490_v56 = vpack.c.bf16 %v214_v54, %v212_v36  ;;  %v500_v57 = vpack.c.bf16 %v224_v55, %v222_v37  ;;  %v342_v8 = vmul.f32 %v214_v54, %v214_v54  ;;  %v346_v21 = vmul.f32 %v224_v55, %v224_v55 }
  0xbf   :  { %v316_v58 = vadd.f32 %v315_v52, %v204_v40  ;;  %v352_v60 = vadd.f32 %v351_v53, %v337_v51 }
  0xc0   :  { %506 = vst [vmem:[%s644_s2 + $0x28] sm:$0xff] %v490_v56  }
  0xc1   :  { %v317_v62 = vadd.f32 %v316_v58, %v207_v18  ;;  %v353_v63 = vadd.f32 %v352_v60, %v338_v59  ;;  %508 = vst [vmem:[%s644_s2 + $0x38] sm:$0xff] %v500_v57  }
  0xc3   :  { %v354_v1 = vadd.f32 %v353_v63, %v339_v61  ;;  %v318_v2 = vadd.f32 %v317_v62, %v209_v24 }
  0xc5   :  { %v319_v3 = vadd.f32 %v318_v2, %v212_v36  ;;  %v355_v5 = vadd.f32 %v354_v1, %v340_v0 }
  0xc7   :  { %v356_v6 = vadd.f32 %v355_v5, %v341_v4  ;;  %v320_v7 = vadd.f32 %v319_v3, %v214_v54 }
  0xc9   :  { %v321_v10 = vadd.f32 %v320_v7, %v606_v19  ;;  %v357_v11 = vadd.f32 %v356_v6, %v342_v8 }
  0xcb   :  { %v358_v13 = vadd.f32 %v357_v11, %v343_v9  ;;  %v322_v14 = vadd.f32 %v321_v10, %v219_v25 }
  0xcd   :  { %v323_v15 = vadd.f32 %v322_v14, %v222_v37  ;;  %v359_v17 = vadd.f32 %v358_v13, %v344_v12 }
  0xcf   :  { %v360_v18 = vadd.f32 %v359_v17, %v345_v16  ;;  %v324_v20 = vadd.f32 %v323_v15, %v224_v55 }
  0xd1   :  { %v325_v22 = vrot.slane %v324_v20, 4  ;;  %v361_v23 = vadd.f32 %v360_v18, %v346_v21 }
  0xd3   :  { %v326_v24 = vadd.f32 %v325_v22, %v324_v20  ;;  %v362_v26 = vrot.slane %v361_v23, 4 }
  0xd5   :  { %v327_v27 = vrot.slane %v326_v24, 2  ;;  %v363_v28 = vadd.f32 %v362_v26, %v361_v23 }
  0xd7   :  { %v328_v29 = vadd.f32 %v327_v27, %v326_v24  ;;  %v364_v30 = vrot.slane %v363_v28, 2 }
  0xd9   :  { %v329_v31 = vrot.slane %v328_v29, 1  ;;  %v365_v19 = vadd.f32 %v364_v30, %v363_v28 }
  0xdb   :  { %v330_v32 = vadd.f32 %v329_v31, %v328_v29  ;;  %v366_v33 = vrot.slane %v365_v19, 1 }
  0xdd   :  { %v367_v34 = vadd.f32 %v366_v33, %v365_v19  ;;  %368 = vst [vmem:[%s645_s3] sm:$0xff] %v330_v32 }
  0xdf   :  { %369 = vst [vmem:[%s646_s4] sm:$0xff] %v367_v34 }

// kernel: bottleneck_forward.9
= control target key start
LH: loop header
LB: loop body
LE: loop exit
PB: predicated region body
PF: predicated region fallthrough
CT: control target
= control target key end

     0   :  { %s518_s0 = inlined_call_operand.vmem [shape: bf16[128,128], index: 0, kind: input, shape index: {}]   ;;  %s519_s1 = inlined_call_operand.vmem [shape: f32[1,128], index: 1, kind: input, shape index: {}]   ;;  %s520_s2 = inlined_call_operand.vmem [shape: f32[1,128], index: 2, kind: input, shape index: {}]   ;;  %s521_s3 = inlined_call_operand.vmem [shape: bf16[128,128], index: 3, kind: input, shape index: {}]   ;;  %s522_s4 = inlined_call_operand.vmem [shape: f32[1,128], index: 4, kind: input, shape index: {}]   ;;  %s523_s5 = inlined_call_operand.vmem [shape: f32[1,128], index: 5, kind: input, shape index: {}]   ;;  %s524_s6 = inlined_call_operand.hbm [shape: f32[128,128], index: 6, kind: output, shape index: {}]  }
   0x1   :  { %v235_v0 = vld [vmem:[%s518_s0] sm:$0xff]   ;;  %v298_v12 = vld [vmem:[%s518_s0 + $0x8] sm:$0xff]   ;;  %v299_v18 = vld [vmem:[%s518_s0 + $0x10] sm:$0xff]  }
   0x2   :  { %v389_v1 = vld [vmem:[%s519_s1] ss:$0 sm:$0xff]  ;;  %v236_v2 = vunpack.c.l.bf16 %v235_v0  ;;  %v237_v5 = vunpack.c.h.bf16 %v235_v0  ;;  %v305_v13 = vld [vmem:[%s521_s3 + $0x8] sm:$0xff]   ;;  %v240_v16 = vunpack.c.l.bf16 %v298_v12  ;;  %v306_v19 = vld [vmem:[%s521_s3 + $0x10] sm:$0xff]   ;;  %v241_v22 = vunpack.c.h.bf16 %v298_v12 }
   0x3   :  { %v394_v3 = vld [vmem:[%s520_s2] ss:$0 sm:$0xff]  ;;  %v272_v17 = vunpack.c.l.bf16 %v305_v13  ;;  %v273_v23 = vunpack.c.h.bf16 %v305_v13  ;;  %v244_v30 = vunpack.c.l.bf16 %v299_v18  ;;  %v276_v31 = vunpack.c.l.bf16 %v306_v19 }
   0x4   :  { %v267_v4 = vld [vmem:[%s521_s3] sm:$0xff]   ;;  %v60_v9 = vmul.f32 %v389_v1, %v236_v2  ;;  %v61_v11 = vmul.f32 %v389_v1, %v237_v5  ;;  %v62_v26 = vmul.f32 %v389_v1, %v240_v16  ;;  %v63_v28 = vmul.f32 %v389_v1, %v241_v22 }
   0x5   :  { %v268_v6 = vunpack.c.l.bf16 %v267_v4  ;;  %v402_v7 = vld [vmem:[%s522_s4] ss:$0 sm:$0xff]  ;;  %v269_v8 = vunpack.c.h.bf16 %v267_v4 }
   0x6   :  { %v408_v10 = vld [vmem:[%s523_s5] ss:$0 sm:$0xff]  ;;  %v80_v20 = vadd.f32 %v394_v3, %v60_v9  ;;  %v81_v21 = vadd.f32 %v394_v3, %v61_v11  ;;  %v134_v27 = vmul.f32 %v402_v7, %v272_v17  ;;  %v135_v29 = vmul.f32 %v402_v7, %v273_v23 }
   0x7   :  { %v132_v14 = vmul.f32 %v402_v7, %v268_v6  ;;  %v133_v15 = vmul.f32 %v402_v7, %v269_v8  ;;  %v82_v34 = vadd.f32 %v394_v3, %v62_v26 }
   0x8   :  { %v154_v35 = vadd.f32 %v408_v10, %v134_v27 }
   0x9   :  { %v152_v24 = vadd.f32 %v408_v10, %v132_v14  ;;  %v153_v25 = vadd.f32 %v408_v10, %v133_v15 }
   0xb   :  { %v168_v32 = vadd.f32 %v152_v24, %v80_v20  ;;  %v169_v33 = vadd.f32 %v153_v25, %v81_v21 }
   0xc   :  { %11 = vsyncpa [#allocation3], 0  ;;  %v83_v36 = vadd.f32 %v394_v3, %v63_v28  ;;  %v155_v37 = vadd.f32 %v408_v10, %v135_v29  ;;  %v64_v38 = vmul.f32 %v389_v1, %v244_v30  ;;  %v136_v39 = vmul.f32 %v402_v7, %v276_v31  ;;  %v300_v40 = vld [vmem:[%s518_s0 + $0x18] sm:$0xff]   ;;  %v301_v54 = vld [vmem:[%s518_s0 + $0x20] sm:$0xff]   ;;  %s222_s9 = sshll.u32 %s524_s6, 4  ;;  %s346_s10 = smov 128   ;;  %s223_s9 = int_to_ptr.hbm [resolvable:$true] %s222_s9 }
   0xd   :  { %v307_v41 = vld [vmem:[%s521_s3 + $0x18] sm:$0xff]   ;;  %v184_v42 = vmax.f32 %v168_v32, 0.0  ;;  %v185_v43 = vmax.f32 %v169_v33, 0.0  ;;  %v170_v44 = vadd.f32 %v154_v35, %v82_v34  ;;  %v245_v45 = vunpack.c.h.bf16 %v299_v18  ;;  %v308_v59 = vld [vmem:[%s521_s3 + $0x20] sm:$0xff]   ;;  %v302_v12 = vld [vmem:[%s518_s0 + $0x28] sm:$0xff]   ;;  %s347_s4 = smov 8  }
   0xe   :  { %v171_v46 = vadd.f32 %v155_v37, %v83_v36  ;;  %v84_v47 = vadd.f32 %v394_v3, %v64_v38  ;;  %v156_v48 = vadd.f32 %v408_v10, %v136_v39  ;;  %v277_v49 = vunpack.c.h.bf16 %v306_v19  ;;  %v309_v21 = vld [vmem:[%s521_s3 + $0x28] sm:$0xff]   ;;  %v303_v30 = vld [vmem:[%s518_s0 + $0x30] sm:$0xff]  }
   0xf   :  { %200 = vst [vmem:[#allocation2] sm:$0xff] %v184_v42  ;;  %v186_v50 = vmax.f32 %v170_v44, 0.0  ;;  %v65_v51 = vmul.f32 %v389_v1, %v245_v45  ;;  %v248_v52 = vunpack.c.l.bf16 %v300_v40  ;;  %v280_v53 = vunpack.c.l.bf16 %v307_v41  ;;  %v310_v35 = vld [vmem:[%s521_s3 + $0x30] sm:$0xff]  }
  0x10   :  { %201 = vst [vmem:[#allocation2 + $0x8] sm:$0xff] %v185_v43  ;;  %v187_v55 = vmax.f32 %v171_v46, 0.0  ;;  %v172_v56 = vadd.f32 %v156_v48, %v84_v47  ;;  %v137_v57 = vmul.f32 %v402_v7, %v277_v49  ;;  %v249_v58 = vunpack.c.h.bf16 %v300_v40  ;;  %v304_v48 = vld [vmem:[%s518_s0 + $0x38] sm:$0xff]   ;;  %s345_s0 = smov [#allocation2]  }
  0x11   :  { %202 = vst [vmem:[#allocation2 + $0x10] sm:$0xff] %v186_v50  ;;  %v85_v60 = vadd.f32 %v394_v3, %v65_v51  ;;  %v66_v61 = vmul.f32 %v389_v1, %v248_v52  ;;  %v138_v62 = vmul.f32 %v402_v7, %v280_v53  ;;  %v281_v63 = vunpack.c.h.bf16 %v307_v41  ;;  %v311_v53 = vld [vmem:[%s521_s3 + $0x38] sm:$0xff]   ;;  %s220_s3 = sshll.u32 %s345_s0, 4  ;;  %s221_s3 = int_to_ptr.vmem [resolvable:$true] %s220_s3 }
  0x12   :  { %203 = vst [vmem:[#allocation2 + $0x18] sm:$0xff] %v187_v55  ;;  %v188_v0 = vmax.f32 %v172_v56, 0.0  ;;  %v157_v2 = vadd.f32 %v408_v10, %v137_v57  ;;  %v67_v4 = vmul.f32 %v389_v1, %v249_v58  ;;  %v252_v5 = vunpack.c.l.bf16 %v301_v54 }
  0x13   :  { %v86_v6 = vadd.f32 %v394_v3, %v66_v61  ;;  %v158_v8 = vadd.f32 %v408_v10, %v138_v62  ;;  %v139_v9 = vmul.f32 %v402_v7, %v281_v63  ;;  %v284_v11 = vunpack.c.l.bf16 %v308_v59 }
  0x14   :  { %204 = vst [vmem:[#allocation2 + $0x20] sm:$0xff] %v188_v0  ;;  %v173_v13 = vadd.f32 %v157_v2, %v85_v60  ;;  %v87_v14 = vadd.f32 %v394_v3, %v67_v4  ;;  %v68_v15 = vmul.f32 %v389_v1, %v252_v5  ;;  %v253_v16 = vunpack.c.h.bf16 %v301_v54 }
  0x15   :  { %v174_v17 = vadd.f32 %v158_v8, %v86_v6  ;;  %v159_v18 = vadd.f32 %v408_v10, %v139_v9  ;;  %v140_v19 = vmul.f32 %v402_v7, %v284_v11  ;;  %v285_v20 = vunpack.c.h.bf16 %v308_v59 }
  0x16   :  { %v189_v22 = vmax.f32 %v173_v13, 0.0  ;;  %v88_v23 = vadd.f32 %v394_v3, %v68_v15  ;;  %v69_v24 = vmul.f32 %v389_v1, %v253_v16  ;;  %v256_v25 = vunpack.c.l.bf16 %v302_v12 }
  0x17   :  { %v190_v26 = vmax.f32 %v174_v17, 0.0  ;;  %v175_v27 = vadd.f32 %v159_v18, %v87_v14  ;;  %v160_v28 = vadd.f32 %v408_v10, %v140_v19  ;;  %v141_v29 = vmul.f32 %v402_v7, %v285_v20 }
  0x18   :  { %205 = vst [vmem:[#allocation2 + $0x28] sm:$0xff] %v189_v22  ;;  %v89_v31 = vadd.f32 %v394_v3, %v69_v24  ;;  %v70_v32 = vmul.f32 %v389_v1, %v256_v25  ;;  %v288_v33 = vunpack.c.l.bf16 %v309_v21  ;;  %v257_v34 = vunpack.c.h.bf16 %v302_v12 }
  0x19   :  { %206 = vst [vmem:[#allocation2 + $0x30] sm:$0xff] %v190_v26  ;;  %v191_v36 = vmax.f32 %v175_v27, 0.0  ;;  %v176_v37 = vadd.f32 %v160_v28, %v88_v23  ;;  %v161_v38 = vadd.f32 %v408_v10, %v141_v29  ;;  %v289_v39 = vunpack.c.h.bf16 %v309_v21 }
  0x1a   :  { %v90_v40 = vadd.f32 %v394_v3, %v70_v32  ;;  %v142_v41 = vmul.f32 %v402_v7, %v288_v33  ;;  %v71_v42 = vmul.f32 %v389_v1, %v257_v34  ;;  %v260_v43 = vunpack.c.l.bf16 %v303_v30 }
  0x1b   :  { %207 = vst [vmem:[#allocation2 + $0x38] sm:$0xff] %v191_v36  ;;  %v192_v44 = vmax.f32 %v176_v37, 0.0  ;;  %v177_v45 = vadd.f32 %v161_v38, %v89_v31  ;;  %v143_v46 = vmul.f32 %v402_v7, %v289_v39  ;;  %v292_v47 = vunpack.c.l.bf16 %v310_v35 }
  0x1c   :  { %v162_v49 = vadd.f32 %v408_v10, %v142_v41  ;;  %v91_v50 = vadd.f32 %v394_v3, %v71_v42  ;;  %v72_v51 = vmul.f32 %v389_v1, %v260_v43  ;;  %v261_v52 = vunpack.c.h.bf16 %v303_v30 }
  0x1d   :  { %208 = vst [vmem:[#allocation2 + $0x40] sm:$0xff] %v192_v44  ;;  %v193_v54 = vmax.f32 %v177_v45, 0.0  ;;  %v163_v55 = vadd.f32 %v408_v10, %v143_v46  ;;  %v144_v56 = vmul.f32 %v402_v7, %v292_v47  ;;  %v293_v57 = vunpack.c.h.bf16 %v310_v35 }
  0x1e   :  { %v178_v58 = vadd.f32 %v162_v49, %v90_v40  ;;  %v92_v59 = vadd.f32 %v394_v3, %v72_v51  ;;  %v73_v60 = vmul.f32 %v389_v1, %v261_v52  ;;  %v264_v61 = vunpack.c.l.bf16 %v304_v48 }
  0x1f   :  { %209 = vst [vmem:[#allocation2 + $0x48] sm:$0xff] %v193_v54  ;;  %v179_v62 = vadd.f32 %v163_v55, %v91_v50  ;;  %v164_v63 = vadd.f32 %v408_v10, %v144_v56  ;;  %v145_v0 = vmul.f32 %v402_v7, %v293_v57  ;;  %v296_v2 = vunpack.c.l.bf16 %v311_v53 }
  0x20   :  { %v194_v4 = vmax.f32 %v178_v58, 0.0  ;;  %v93_v5 = vadd.f32 %v394_v3, %v73_v60  ;;  %v74_v6 = vmul.f32 %v389_v1, %v264_v61  ;;  %v265_v8 = vunpack.c.h.bf16 %v304_v48 }
  0x21   :  { %v195_v9 = vmax.f32 %v179_v62, 0.0  ;;  %v180_v11 = vadd.f32 %v164_v63, %v92_v59  ;;  %v165_v12 = vadd.f32 %v408_v10, %v145_v0  ;;  %v146_v13 = vmul.f32 %v402_v7, %v296_v2 }
  0x22   :  { %210 = vst [vmem:[#allocation2 + $0x50] sm:$0xff] %v194_v4  ;;  %v94_v14 = vadd.f32 %v394_v3, %v74_v6  ;;  %v75_v15 = vmul.f32 %v389_v1, %v265_v8  ;;  %v297_v16 = vunpack.c.h.bf16 %v311_v53 }
  0x23   :  { %211 = vst [vmem:[#allocation2 + $0x58] sm:$0xff] %v195_v9  ;;  %v196_v17 = vmax.f32 %v180_v11, 0.0  ;;  %v181_v18 = vadd.f32 %v165_v12, %v93_v5  ;;  %v166_v19 = vadd.f32 %v408_v10, %v146_v13 }
  0x24   :  { %v95_v20 = vadd.f32 %v394_v3, %v75_v15  ;;  %v147_v21 = vmul.f32 %v402_v7, %v297_v16 }
  0x25   :  { %212 = vst [vmem:[#allocation2 + $0x60] sm:$0xff] %v196_v17  ;;  %v197_v22 = vmax.f32 %v181_v18, 0.0  ;;  %v182_v23 = vadd.f32 %v166_v19, %v94_v14 }
  0x26   :  { %v167_v24 = vadd.f32 %v408_v10, %v147_v21 }
  0x27   :  { %213 = vst [vmem:[#allocation2 + $0x68] sm:$0xff] %v197_v22  ;;  %v198_v25 = vmax.f32 %v182_v23, 0.0 }
  0x28   :  { %v183_v1 = vadd.f32 %v167_v24, %v95_v20 }
  0x29   :  { %214 = vst [vmem:[#allocation2 + $0x70] sm:$0xff] %v198_v25 }
  0x2a   :  { %v199_v26 = vmax.f32 %v183_v1, 0.0 }
  0x2c   :  { %215 = vst [vmem:[#allocation2 + $0x78] sm:$0xff] %v199_v26 }
  0x2d   :  { %228 = dma.vmem_to_hbm [thread:$0]  %s221_s3, 2048, %s223_s9, [#allocation3], %s346_s10, %s346_s10, %s347_s4  }
  0x2e   :  { %343 = dma.done.wait [#allocation3], 2048  }
  0x2f   :  { %344 = vsyncadd [#allocation3], 4294965248 }
  0x30   :  { %233 = vsyncpa [#allocation3], 1 }

</bundles_post_ra>
